<compile_context>
chip_gen: v5e
topology: v5e:2x2
jax: 0.10.0
libtpu: 0.0.40
codegen_flags: <defaults>
</compile_context>

<pallas_src>
import functools
import numpy as np

import jax
import jax.numpy as jnp
from jax.experimental import pallas as pl
from jax.experimental.pallas import tpu as pltpu

EPS = 1e-5                      # nn.LayerNorm default eps
_VMEM_LIMIT = 64 * 1024 * 1024  # scoped VMEM cap (safe on v5e/v6e/v7x)


# ----------------------------------------------------------------------------
# In-kernel exact (erf-based) GELU.  Abramowitz & Stegun 7.1.26 polynomial,
# |abs err| < 1.5e-7.  Exact division here (approx reciprocal is reserved for
# the softmax denominator per the correctness review).
# ----------------------------------------------------------------------------
def _erf_approx(x):
    p = 0.3275911
    a1, a2, a3, a4, a5 = (0.254829592, -0.284496736, 1.421413741,
                          -1.453152027, 1.061405429)
    ax = jnp.abs(x)
    t = 1.0 / (1.0 + p * ax)
    poly = ((((a5 * t + a4) * t + a3) * t + a2) * t + a1) * t
    r = 1.0 - poly * jnp.exp(-ax * ax)
    return jnp.where(x >= 0, r, -r)


def _gelu_exact(x):
    # TODO(synk): evaluate the polynomial in bf16 on v6e/v7x (bf16-native
    # VALU/EUP) once validated against tolerance; keep f32 on v5e.
    return 0.5 * x * (1.0 + _erf_approx(x * np.float32(1.0 / np.sqrt(2.0))))


# ----------------------------------------------------------------------------
# Generation-aware tiling caps + tiling helpers.
# ----------------------------------------------------------------------------
def _gen_caps():
    """Row-tile / attention-row targets per TPU generation."""
    kind = ""
    try:
        kind = jax.devices()[0].device_kind.lower()
    except Exception:
        pass
    if "v6" in kind:
        # 128 MiB VMEM, 2x256 MXU: bigger tiles pay off.
        return {"k1_tile": 512, "k3_tile": 512, "attn_rows": 512}
    if "v5" in kind:
        # 4x128 MXU saturates at M=128; f32 VALU is usually the binding slot.
        return {"k1_tile": 256, "k3_tile": 256, "attn_rows": 256}
    # v7x / unknown: 64 MiB VMEM per TC -> keep tiles modest.
    return {"k1_tile": 256, "k3_tile": 256, "attn_rows": 256}


def _row_tile(rows, cap=512):
    """Largest multiple-of-8 divisor of `rows` <= cap, preferring an even
    number of grid steps >= 2 (v7x: 2 TCs).  Falls back to the full dim
    (exempt from the (8,128) rule) when no such divisor exists."""
    cap = max(8, min(cap, rows))
    divs = [t for t in range(8, cap + 1, 8) if rows % t == 0]
    if not divs:
        return rows
    even = [t for t in divs if (rows // t) >= 2 and (rows // t) % 2 == 0]
    return max(even) if even else max(divs)


def _choose_window_group(nWB, nW, N, need_mask, target_rows=256):
    """Windows per attention grid step.  Targets ~target_rows attention rows
    per step, keeps the shift mask addressable as a rectangular block
    (nW % g == 0 or g % nW == 0) and prefers an even grid-step count."""
    def legal(g):
        if nWB % g != 0:
            return False
        if need_mask and not (nW % g == 0 or g % nW == 0):
            return False
        return True

    cands = [g for g in range(1, nWB + 1) if legal(g)]
    want = max(1, target_rows // N)

    def steps(g):
        return nWB // g

    pref = [g for g in cands if g <= want and steps(g) >= 2 and steps(g) % 2 == 0]
    if pref:
        return max(pref)
    pref = [g for g in cands if g <= want and steps(g) >= 2]
    if pref:
        return max(pref)
    pref = [g for g in cands if g <= want]
    if pref:
        return max(pref)
    return min(cands)


# ----------------------------------------------------------------------------
# Kernel 1: LayerNorm1 + QKV projection (scale pre-folded into Q columns).
# ----------------------------------------------------------------------------
def _ln_qkv_kernel(x_ref, g_ref, b_ref, w_ref, wb_ref, o_ref):
    x = x_ref[...]                                        # (T, C) f32
    mu = jnp.mean(x, axis=-1, keepdims=True)
    var = jnp.mean((x - mu) ** 2, axis=-1, keepdims=True)
    xn = (x - mu) * jax.lax.rsqrt(var + EPS) * g_ref[...] + b_ref[...]
    qkv = jnp.dot(xn.astype(jnp.bfloat16), w_ref[...],
                  preferred_element_type=jnp.float32) + wb_ref[...]
    o_ref[...] = qkv.astype(o_ref.dtype)


def ln_qkv_pallas(x2d, gamma, beta, w_bf16, bias, *, tile_cap=512):
    R, C = x2d.shape
    C3 = w_bf16.shape[1]
    tile = _row_tile(R, cap=tile_cap)
    return pl.pallas_call(
        _ln_qkv_kernel,
        out_shape=jax.ShapeDtypeStruct((R, C3), jnp.bfloat16),
        grid=(R // tile,),
        in_specs=[
            pl.BlockSpec((tile, C), lambda i: (i, 0)),
            pl.BlockSpec((1, C), lambda i: (0, 0)),
            pl.BlockSpec((1, C), lambda i: (0, 0)),
            pl.BlockSpec((C, C3), lambda i: (0, 0)),      # resident bf16 weight
            pl.BlockSpec((1, C3), lambda i: (0, 0)),
        ],
        out_specs=pl.BlockSpec((tile, C3), lambda i: (i, 0)),
        compiler_params=pltpu.CompilerParams(
            dimension_semantics=("parallel",),
            vmem_limit_bytes=_VMEM_LIMIT),
    )(x2d, gamma.reshape(1, C), beta.reshape(1, C), w_bf16, bias.reshape(1, C3))


# ----------------------------------------------------------------------------
# Kernel 2: window attention with lane-dense (group, N, C) blocks.
# q/k/v arrive channel-minor; heads are split with static lane slices and
# per-head batched einsums over the whole window group; head outputs are
# merged back onto the lane axis before a single full-width store.
# ----------------------------------------------------------------------------
def _wmsa_kernel(q_ref, k_ref, v_ref, bias_ref, *rest, num_heads, has_mask):
    if has_mask:
        mask_ref, o_ref = rest
    else:
        (o_ref,) = rest
    G, N, C = q_ref.shape
    hd = C // num_heads

    q = q_ref[...]                                        # (G, N, C) bf16, scale pre-folded
    k = k_ref[...]
    v = v_ref[...]
    bias = bias_ref[...]                                  # (nH, N, N) f32
    if has_mask:
        m = mask_ref[...]                                 # (G, N, N) f32

    outs = []
    for h in range(num_heads):                            # static, small
        sl = slice(h * hd, (h + 1) * hd)
        s = jnp.einsum("gnd,gmd->gnm", q[:, :, sl], k[:, :, sl],
                       preferred_element_type=jnp.float32)    # (G, N, N) f32
        s = s + bias[h][None, :, :]
        if has_mask:
            s = s + m
        s = s - jnp.max(s, axis=-1, keepdims=True)
        p = jnp.exp(s)
        p = p * pl.reciprocal(jnp.sum(p, axis=-1, keepdims=True), approx=True)
        o_h = jnp.einsum("gnm,gmd->gnd", p.astype(v.dtype), v[:, :, sl],
                         preferred_element_type=jnp.float32)  # (G, N, hd) f32
        outs.append(o_h)

    o = jnp.concatenate(outs, axis=-1)                    # (G, N, C): lane dense
    o_ref[...] = o.astype(o_ref.dtype)


def window_attention_pallas(q, k, v, rel_bias, mask, group, num_heads):
    nWB, N, C = q.shape
    has_mask = mask is not None
    kernel = functools.partial(_wmsa_kernel, num_heads=num_heads,
                               has_mask=has_mask)
    qkv_spec = pl.BlockSpec((group, N, C), lambda i: (i, 0, 0))
    in_specs = [qkv_spec, qkv_spec, qkv_spec,
                pl.BlockSpec((num_heads, N, N), lambda i: (0, 0, 0))]  # resident bias
    args = [q, k, v, rel_bias]
    if has_mask:
        n_blk = mask.shape[0] // group
        if n_blk <= 1:                                    # resident mask block
            in_specs.append(pl.BlockSpec((group, N, N), lambda i: (0, 0, 0)))
        else:                                             # modulo block index (never tiled by batch)
            in_specs.append(
                pl.BlockSpec((group, N, N), lambda i, n=n_blk: (i % n, 0, 0)))
        args.append(mask)
    return pl.pallas_call(
        kernel,
        out_shape=jax.ShapeDtypeStruct((nWB, N, C), q.dtype),
        grid=(nWB // group,),
        in_specs=in_specs,
        out_specs=pl.BlockSpec((group, N, C), lambda i: (i, 0, 0)),
        compiler_params=pltpu.CompilerParams(
            dimension_semantics=("parallel",),
            vmem_limit_bytes=_VMEM_LIMIT),
    )(*args)


# ----------------------------------------------------------------------------
# Kernel 3: out-proj + residual1 + LayerNorm2 + MLP (fc1, GELU, fc2) + residual2
# ----------------------------------------------------------------------------
def _proj_ln_mlp_kernel(a_ref, sc_ref, pw_ref, pb_ref, g2_ref, bt2_ref,
                        w1_ref, mb1_ref, w2_ref, mb2_ref, o_ref):
    y = jnp.dot(a_ref[...], pw_ref[...],
                preferred_element_type=jnp.float32) + pb_ref[...]
    x1 = sc_ref[...] + y                                  # residual 1 (fused)
    mu = jnp.mean(x1, axis=-1, keepdims=True)
    var = jnp.mean((x1 - mu) ** 2, axis=-1, keepdims=True)
    xn = (x1 - mu) * jax.lax.rsqrt(var + EPS) * g2_ref[...] + bt2_ref[...]
    h = jnp.dot(xn.astype(jnp.bfloat16), w1_ref[...],
                preferred_element_type=jnp.float32) + mb1_ref[...]
    h = _gelu_exact(h)
    y2 = jnp.dot(h.astype(jnp.bfloat16), w2_ref[...],
                 preferred_element_type=jnp.float32) + mb2_ref[...]
    o_ref[...] = x1 + y2                                  # residual 2 (fused)


def proj_ln_mlp_pallas(attn2d, shortcut2d, proj_w, proj_b, gamma2, beta2,
                       w1, b1, w2, b2, *, tile_cap=256):
    R, C = shortcut2d.shape
    Hd = w1.shape[1]
    tile = _row_tile(R, cap=tile_cap)
    return pl.pallas_call(
        _proj_ln_mlp_kernel,
        out_shape=jax.ShapeDtypeStruct((R, C), shortcut2d.dtype),
        grid=(R // tile,),
        in_specs=[
            pl.BlockSpec((tile, C), lambda i: (i, 0)),    # attention tokens (bf16)
            pl.BlockSpec((tile, C), lambda i: (i, 0)),    # shortcut (f32)
            pl.BlockSpec((C, C), lambda i: (0, 0)),       # proj_w (bf16, resident)
            pl.BlockSpec((1, C), lambda i: (0, 0)),
            pl.BlockSpec((1, C), lambda i: (0, 0)),
            pl.BlockSpec((1, C), lambda i: (0, 0)),
            pl.BlockSpec((C, Hd), lambda i: (0, 0)),      # w1 (bf16, resident)
            pl.BlockSpec((1, Hd), lambda i: (0, 0)),
            pl.BlockSpec((Hd, C), lambda i: (0, 0)),      # w2 (bf16, resident)
            pl.BlockSpec((1, C), lambda i: (0, 0)),
        ],
        out_specs=pl.BlockSpec((tile, C), lambda i: (i, 0)),
        compiler_params=pltpu.CompilerParams(
            dimension_semantics=("parallel",),
            vmem_limit_bytes=_VMEM_LIMIT),
    )(attn2d, shortcut2d, proj_w, proj_b.reshape(1, C),
      gamma2.reshape(1, C), beta2.reshape(1, C),
      w1, b1.reshape(1, Hd), w2, b2.reshape(1, C))


# ----------------------------------------------------------------------------
# Plain-JAX glue / parameter setup.
# ----------------------------------------------------------------------------
def window_partition_j(x, ws):
    B, H, W, C = x.shape
    x = x.reshape(B, H // ws, ws, W // ws, ws, C)
    return x.transpose(0, 1, 3, 2, 4, 5).reshape(-1, ws, ws, C)


def window_reverse_j(windows, ws, H, W):
    B = windows.shape[0] // (H * W // ws // ws)
    x = windows.reshape(B, H // ws, W // ws, ws, ws, -1)
    return x.transpose(0, 1, 3, 2, 4, 5).reshape(B, H, W, -1)


def make_rel_pos_index(ws):
    coords = np.stack(np.meshgrid(np.arange(ws), np.arange(ws), indexing="ij"))
    cf = coords.reshape(2, -1)
    rel = cf[:, :, None] - cf[:, None, :]
    rel = rel.transpose(1, 2, 0).astype(np.int32)
    rel[:, :, 0] += ws - 1
    rel[:, :, 1] += ws - 1
    rel[:, :, 0] *= 2 * ws - 1
    return rel.sum(-1)                                    # (N, N) int32


def create_attn_mask(Hp, Wp, ws, ss):
    nW = (Hp // ws) * (Wp // ws)
    N = ws * ws
    if ss == 0:
        return jnp.zeros((nW, N, N), jnp.float32)
    img_mask = np.zeros((1, Hp, Wp, 1), np.float32)
    slices = (slice(0, -ws), slice(-ws, -ss), slice(-ss, None))
    cnt = 0
    for hs in slices:
        for wss in slices:
            img_mask[:, hs, wss, :] = cnt
            cnt += 1
    mw = (img_mask.reshape(1, Hp // ws, ws, Wp // ws, ws, 1)
          .transpose(0, 1, 3, 2, 4, 5).reshape(-1, N))
    am = mw[:, None, :] - mw[:, :, None]
    return jnp.asarray(np.where(am != 0, -100.0, 0.0).astype(np.float32))


# ----------------------------------------------------------------------------
# Full SwinTransformerBlock forward (eval mode: dropout / drop-path = identity)
# ----------------------------------------------------------------------------
def swin_block_pallas(x, attn_mask, p, *, H, W, window_size, shift_size, num_heads):
    B, L, C = x.shape
    assert L == H * W
    ws, ss = window_size, shift_size
    nH = num_heads
    hd = C // nH
    scale = float(hd) ** -0.5

    # Fold the attention scale into the Q columns of qkv_w / qkv_b (free), and
    # make bf16 copies of the matmul weights (MXU operands; accumulation f32).
    qkv_w = p["qkv_w"].at[:, :C].multiply(scale).astype(jnp.bfloat16)
    qkv_b = p["qkv_b"].at[:C].multiply(scale)
    proj_w = p["proj_w"].astype(jnp.bfloat16)
    w1 = p["w1"].astype(jnp.bfloat16)
    w2 = p["w2"].astype(jnp.bfloat16)

    caps = _gen_caps()

    # --- Kernel 1: LN1 + QKV over all tokens ---
    qkv = ln_qkv_pallas(x.reshape(B * L, C), p["g1"], p["b1"], qkv_w, qkv_b,
                        tile_cap=caps["k1_tile"])
    qkv = qkv.reshape(B, H, W, 3 * C)

    # --- pad + cyclic shift (glue, bf16) ---
    pad_r = (ws - W % ws) % ws
    pad_b = (ws - H % ws) % ws
    Hp, Wp = H + pad_b, W + pad_r
    if pad_r or pad_b:
        qkv = jnp.pad(qkv, ((0, 0), (0, pad_b), (0, pad_r), (0, 0)))
        # reference pads the normalized tokens with zeros before QKV, so padded
        # tokens must carry qkv == (scale-folded) bias
        valid = ((jnp.arange(Hp) < H)[None, :, None, None]
                 & (jnp.arange(Wp) < W)[None, None, :, None])
        qkv = jnp.where(valid, qkv, qkv_b.astype(qkv.dtype))
    if ss > 0:
        qkv = jnp.roll(qkv, shift=(-ss, -ss), axis=(1, 2))

    # --- window partition with channels kept minor (cheap spatial-only copy) ---
    nWh, nWw = Hp // ws, Wp // ws
    nW, nWB, N = nWh * nWw, B * nWh * nWw, ws * ws
    qkv = qkv.reshape(B, nWh, ws, nWw, ws, 3 * C)
    qkv = qkv.transpose(0, 1, 3, 2, 4, 5).reshape(nWB, N, 3 * C)
    q, k, v = qkv[..., :C], qkv[..., C:2 * C], qkv[..., 2 * C:]

    # relative-position bias (parameter setup, stays in JAX)
    idx = jnp.asarray(make_rel_pos_index(ws).reshape(-1))
    rel_bias = (p["rel_table"][idx].reshape(N, N, nH)
                .transpose(2, 0, 1).astype(jnp.float32))          # (nH, N, N)

    group = _choose_window_group(nWB, nW, N, need_mask=(ss > 0),
                                 target_rows=caps["attn_rows"])
    if ss > 0:
        if group > nW:           # group % nW == 0: small resident, batch-free tile
            mask = jnp.tile(attn_mask, (group // nW, 1, 1))
        else:                    # nW % group == 0: modulo block index
            mask = attn_mask
    else:
        mask = None              # shift==0: no mask stream, no add in the kernel

    # --- Kernel 2: window attention, lane-dense blocks ---
    attn = window_attention_pallas(q, k, v, rel_bias, mask, group, nH)  # (nWB,N,C)

    # --- window reverse (channels minor) + un-shift + un-pad (glue) ---
    o = (attn.reshape(B, nWh, nWw, ws, ws, C)
         .transpose(0, 1, 3, 2, 4, 5).reshape(B, Hp, Wp, C))
    if ss > 0:
        o = jnp.roll(o, shift=(ss, ss), axis=(1, 2))
    o = o[:, :H, :W, :].reshape(B * L, C)

    # --- Kernel 3: proj + residual + LN2 + MLP + residual ---
    out = proj_ln_mlp_pallas(o, x.reshape(B * L, C), proj_w, p["proj_b"],
                             p["g2"], p["b2"], w1, p["b1m"], w2, p["b2m"],
                             tile_cap=caps["k3_tile"])
    return out.reshape(B, L, C)


# ----------------------------------------------------------------------------
# Pure-JAX f32 reference (mirrors the PyTorch forward exactly) for validation.
# ----------------------------------------------------------------------------
def swin_block_ref(x, attn_mask, p, *, H, W, window_size, shift_size, num_heads):
    B, L, C = x.shape
    ws, ss = window_size, shift_size

    def ln(v, g, b):
        mu = v.mean(-1, keepdims=True)
        var = ((v - mu) ** 2).mean(-1, keepdims=True)
        return (v - mu) / jnp.sqrt(var + EPS) * g + b

    shortcut = x
    xn = ln(x, p["g1"], p["b1"]).reshape(B, H, W, C)
    pad_r = (ws - W % ws) % ws
    pad_b = (ws - H % ws) % ws
    xn = jnp.pad(xn, ((0, 0), (0, pad_b), (0, pad_r), (0, 0)))
    Hp, Wp = H + pad_b, W + pad_r
    if ss > 0:
        sx = jnp.roll(xn, (-ss, -ss), (1, 2))
        mask = attn_mask
    else:
        sx, mask = xn, None
    N = ws * ws
    xw = window_partition_j(sx, ws).reshape(-1, N, C)
    B_ = xw.shape[0]
    hd = C // num_heads
    scale = hd ** -0.5

    qkv = (xw @ p["qkv_w"] + p["qkv_b"]).reshape(B_, N, 3, num_heads, hd).transpose(2, 0, 3, 1, 4)
    q, k, v = qkv[0], qkv[1], qkv[2]
    attn = (q * scale) @ jnp.swapaxes(k, -2, -1)
    idx = jnp.asarray(make_rel_pos_index(ws).reshape(-1))
    rel_bias = p["rel_table"][idx].reshape(N, N, num_heads).transpose(2, 0, 1)
    attn = attn + rel_bias[None]
    if mask is not None:
        nW = mask.shape[0]
        attn = attn.reshape(B_ // nW, nW, num_heads, N, N) + mask[None, :, None]
        attn = attn.reshape(-1, num_heads, N, N)
    attn = jax.nn.softmax(attn, axis=-1)
    out = (attn @ v).transpose(0, 2, 1, 3).reshape(B_, N, C)
    out = out @ p["proj_w"] + p["proj_b"]

    sx = window_reverse_j(out.reshape(-1, ws, ws, C), ws, Hp, Wp)
    if ss > 0:
        sx = jnp.roll(sx, (ss, ss), (1, 2))
    xr = sx[:, :H, :W, :].reshape(B, L, C)
    x1 = shortcut + xr
    xn2 = ln(x1, p["g2"], p["b2"])
    h = jax.nn.gelu(xn2 @ p["w1"] + p["b1m"], approximate=False)
    return x1 + (h @ p["w2"] + p["b2m"])


# ----------------------------------------------------------------------------
if __name__ == "__main__":
    # Small shapes: dim=32, heads=4, window=4, 8x8 tokens; test shift=2 and 0.
    B, H, W = 2, 8, 8
    C, num_heads, window_size = 32, 4, 4
    mlp_ratio = 4.0
    hidden = int(C * mlp_ratio)
    L = H * W
    ws = window_size

    key = jax.random.PRNGKey(0)
    ks = jax.random.split(key, 12)

    def init(k, shape):
        return (0.02 * jax.random.normal(k, shape)).astype(jnp.float32)

    params = {
        "g1": jnp.ones((C,), jnp.float32),
        "b1": jnp.zeros((C,), jnp.float32),
        "qkv_w": init(ks[0], (C, 3 * C)),
        "qkv_b": init(ks[1], (3 * C,)),
        "rel_table": init(ks[2], ((2 * ws - 1) * (2 * ws - 1), num_heads)),
        "proj_w": init(ks[3], (C, C)),
        "proj_b": init(ks[4], (C,)),
        "g2": jnp.ones((C,), jnp.float32),
        "b2": jnp.zeros((C,), jnp.float32),
        "w1": init(ks[5], (C, hidden)),
        "b1m": init(ks[6], (hidden,)),
        "w2": init(ks[7], (hidden, C)),
        "b2m": init(ks[8], (C,)),
    }

    x = jax.random.normal(ks[9], (B, L, C), jnp.float32)

    for shift_size in (2, 0):          # SW-MSA (masked) and W-MSA (mask-free)
        attn_mask = create_attn_mask(H, W, window_size, shift_size)
        fwd = jax.jit(functools.partial(
            swin_block_pallas, H=H, W=W, window_size=window_size,
            shift_size=shift_size, num_heads=num_heads))
        out = jax.block_until_ready(fwd(x, attn_mask, params))
        ref = swin_block_ref(x, attn_mask, params, H=H, W=W,
                             window_size=window_size, shift_size=shift_size,
                             num_heads=num_heads)
        np.testing.assert_allclose(np.asarray(out), np.asarray(ref),
                                   rtol=2e-3, atol=3e-3)

    print("KERNEL_OK")
</pallas_src>

<mosaic_0001>
module attributes {stable_mosaic.version = 11 : i64} {
  func.func @_ln_qkv_kernel(%arg0: i32, %arg1: memref<64x32xf32, #tpu.memory_space<vmem>>, %arg2: memref<1x32xf32, #tpu.memory_space<vmem>>, %arg3: memref<1x32xf32, #tpu.memory_space<vmem>>, %arg4: memref<32x96xbf16, #tpu.memory_space<vmem>>, %arg5: memref<1x96xf32, #tpu.memory_space<vmem>>, %arg6: memref<64x96xbf16, #tpu.memory_space<vmem>>) attributes {dimension_semantics = [#tpu.dimension_semantics<parallel>], iteration_bounds = array<i64: 2>, scalar_prefetch = 0 : i64, scratch_operands = 0 : i64, tpu.core_type = #tpu.core_type<tc>, window_params = [{transform_indices = @transform_0, window_bounds = array<i64: 64, 32>}, {pipeline_mode = #tpu.pipeline_mode<synchronous>, transform_indices = @transform_1, window_bounds = array<i64: 1, 32>}, {pipeline_mode = #tpu.pipeline_mode<synchronous>, transform_indices = @transform_2, window_bounds = array<i64: 1, 32>}, {pipeline_mode = #tpu.pipeline_mode<synchronous>, transform_indices = @transform_3, window_bounds = array<i64: 32, 96>}, {pipeline_mode = #tpu.pipeline_mode<synchronous>, transform_indices = @transform_4, window_bounds = array<i64: 1, 96>}, {transform_indices = @transform_5, window_bounds = array<i64: 64, 96>}]} {
    %c0 = arith.constant 0 : index
    %c0_0 = arith.constant 0 : index
    %0 = vector.load %arg1[%c0, %c0_0] : memref<64x32xf32, #tpu.memory_space<vmem>>, vector<64x32xf32>
    %cst = arith.constant dense<0.000000e+00> : vector<64xf32>
    %1 = vector.multi_reduction <add>, %0, %cst [1] : vector<64x32xf32> to vector<64xf32>
    %2 = vector.shape_cast %1 : vector<64xf32> to vector<64x1xf32>
    %cst_1 = arith.constant 3.200000e+01 : f32
    %3 = vector.broadcast %cst_1 : f32 to vector<64x1xf32>
    %4 = arith.divf %2, %3 : vector<64x1xf32>
    %5 = vector.broadcast %4 : vector<64x1xf32> to vector<64x32xf32>
    %6 = arith.subf %0, %5 : vector<64x32xf32>
    %7 = arith.mulf %6, %6 : vector<64x32xf32>
    %cst_2 = arith.constant dense<0.000000e+00> : vector<64xf32>
    %8 = vector.multi_reduction <add>, %7, %cst_2 [1] : vector<64x32xf32> to vector<64xf32>
    %9 = vector.shape_cast %8 : vector<64xf32> to vector<64x1xf32>
    %cst_3 = arith.constant 3.200000e+01 : f32
    %10 = vector.broadcast %cst_3 : f32 to vector<64x1xf32>
    %11 = arith.divf %9, %10 : vector<64x1xf32>
    %12 = vector.broadcast %4 : vector<64x1xf32> to vector<64x32xf32>
    %13 = arith.subf %0, %12 : vector<64x32xf32>
    %cst_4 = arith.constant 9.99999974E-6 : f32
    %14 = vector.broadcast %cst_4 : f32 to vector<64x1xf32>
    %15 = arith.addf %11, %14 : vector<64x1xf32>
    %16 = math.rsqrt %15 : vector<64x1xf32>
    %17 = vector.broadcast %16 : vector<64x1xf32> to vector<64x32xf32>
    %18 = arith.mulf %13, %17 : vector<64x32xf32>
    %c0_5 = arith.constant 0 : index
    %c0_6 = arith.constant 0 : index
    %19 = vector.load %arg2[%c0_5, %c0_6] : memref<1x32xf32, #tpu.memory_space<vmem>>, vector<1x32xf32>
    %20 = vector.broadcast %19 : vector<1x32xf32> to vector<64x32xf32>
    %21 = arith.mulf %18, %20 : vector<64x32xf32>
    %c0_7 = arith.constant 0 : index
    %c0_8 = arith.constant 0 : index
    %22 = vector.load %arg3[%c0_7, %c0_8] : memref<1x32xf32, #tpu.memory_space<vmem>>, vector<1x32xf32>
    %23 = vector.broadcast %22 : vector<1x32xf32> to vector<64x32xf32>
    %24 = arith.addf %21, %23 : vector<64x32xf32>
    %25 = arith.truncf %24 : vector<64x32xf32> to vector<64x32xbf16>
    %c0_9 = arith.constant 0 : index
    %c0_10 = arith.constant 0 : index
    %26 = vector.load %arg4[%c0_9, %c0_10] : memref<32x96xbf16, #tpu.memory_space<vmem>>, vector<32x96xbf16>
    %cst_11 = arith.constant dense<0.000000e+00> : vector<64x96xf32>
    %27 = tpu.matmul %25, %26, %cst_11 {dimension_numbers = #tpu.dot_dimension_numbers<[1], [0], [0], [1], [0, 0, 1, 1], [], []>} : vector<64x32xbf16>, vector<32x96xbf16>, vector<64x96xf32> -> vector<64x96xf32>
    %c0_12 = arith.constant 0 : index
    %c0_13 = arith.constant 0 : index
    %28 = vector.load %arg5[%c0_12, %c0_13] : memref<1x96xf32, #tpu.memory_space<vmem>>, vector<1x96xf32>
    %29 = vector.broadcast %28 : vector<1x96xf32> to vector<64x96xf32>
    %30 = arith.addf %27, %29 : vector<64x96xf32>
    %31 = arith.truncf %30 : vector<64x96xf32> to vector<64x96xbf16>
    %c0_14 = arith.constant 0 : index
    %c0_15 = arith.constant 0 : index
    %32 = vector.load %arg6[%c0_14, %c0_15] : memref<64x96xbf16, #tpu.memory_space<vmem>>, vector<64x96xbf16>
    tpu.vector_store %arg6[%c0_14, %c0_15], %31 {strides = array<i32>} : memref<64x96xbf16, #tpu.memory_space<vmem>>, vector<64x96xbf16>,
    return
  }
  func.func @transform_0(%arg0: i32) -> (i32, i32) {
    %c0_i32 = arith.constant 0 : i32
    %c0_i32_0 = arith.constant 0 : i32
    return %arg0, %c0_i32 : i32, i32
  }
  func.func @transform_1(%arg0: i32) -> (i32, i32) {
    %c0_i32 = arith.constant 0 : i32
    %c0_i32_0 = arith.constant 0 : i32
    %c0_i32_1 = arith.constant 0 : i32
    return %c0_i32, %c0_i32_0 : i32, i32
  }
  func.func @transform_2(%arg0: i32) -> (i32, i32) {
    %c0_i32 = arith.constant 0 : i32
    %c0_i32_0 = arith.constant 0 : i32
    %c0_i32_1 = arith.constant 0 : i32
    return %c0_i32, %c0_i32_0 : i32, i32
  }
  func.func @transform_3(%arg0: i32) -> (i32, i32) {
    %c0_i32 = arith.constant 0 : i32
    %c0_i32_0 = arith.constant 0 : i32
    %c0_i32_1 = arith.constant 0 : i32
    return %c0_i32, %c0_i32_0 : i32, i32
  }
  func.func @transform_4(%arg0: i32) -> (i32, i32) {
    %c0_i32 = arith.constant 0 : i32
    %c0_i32_0 = arith.constant 0 : i32
    %c0_i32_1 = arith.constant 0 : i32
    return %c0_i32, %c0_i32_0 : i32, i32
  }
  func.func @transform_5(%arg0: i32) -> (i32, i32) {
    %c0_i32 = arith.constant 0 : i32
    %c0_i32_0 = arith.constant 0 : i32
    return %arg0, %c0_i32 : i32, i32
  }
}

module attributes {stable_mosaic.version = 11 : i64} {
  func.func @_wmsa_kernel(%arg0: i32, %arg1: memref<4x16x32xbf16, #tpu.memory_space<vmem>>, %arg2: memref<4x16x32xbf16, #tpu.memory_space<vmem>>, %arg3: memref<4x16x32xbf16, #tpu.memory_space<vmem>>, %arg4: memref<4x16x16xf32, #tpu.memory_space<vmem>>, %arg5: memref<4x16x16xf32, #tpu.memory_space<vmem>>, %arg6: memref<4x16x32xbf16, #tpu.memory_space<vmem>>) attributes {dimension_semantics = [#tpu.dimension_semantics<parallel>], iteration_bounds = array<i64: 2>, scalar_prefetch = 0 : i64, scratch_operands = 0 : i64, tpu.core_type = #tpu.core_type<tc>, window_params = [{transform_indices = @transform_0, window_bounds = array<i64: 4, 16, 32>}, {transform_indices = @transform_1, window_bounds = array<i64: 4, 16, 32>}, {transform_indices = @transform_2, window_bounds = array<i64: 4, 16, 32>}, {pipeline_mode = #tpu.pipeline_mode<synchronous>, transform_indices = @transform_3, window_bounds = array<i64: 4, 16, 16>}, {pipeline_mode = #tpu.pipeline_mode<synchronous>, transform_indices = @transform_4, window_bounds = array<i64: 4, 16, 16>}, {transform_indices = @transform_5, window_bounds = array<i64: 4, 16, 32>}]} {
    %c0 = arith.constant 0 : index
    %c0_0 = arith.constant 0 : index
    %c0_1 = arith.constant 0 : index
    %0 = vector.load %arg1[%c0, %c0_0, %c0_1] : memref<4x16x32xbf16, #tpu.memory_space<vmem>>, vector<4x16x32xbf16>
    %c0_2 = arith.constant 0 : index
    %c0_3 = arith.constant 0 : index
    %c0_4 = arith.constant 0 : index
    %1 = vector.load %arg2[%c0_2, %c0_3, %c0_4] : memref<4x16x32xbf16, #tpu.memory_space<vmem>>, vector<4x16x32xbf16>
    %c0_5 = arith.constant 0 : index
    %c0_6 = arith.constant 0 : index
    %c0_7 = arith.constant 0 : index
    %2 = vector.load %arg3[%c0_5, %c0_6, %c0_7] : memref<4x16x32xbf16, #tpu.memory_space<vmem>>, vector<4x16x32xbf16>
    %c0_8 = arith.constant 0 : index
    %c0_9 = arith.constant 0 : index
    %c0_10 = arith.constant 0 : index
    %3 = vector.load %arg4[%c0_8, %c0_9, %c0_10] : memref<4x16x16xf32, #tpu.memory_space<vmem>>, vector<4x16x16xf32>
    %c0_11 = arith.constant 0 : index
    %c0_12 = arith.constant 0 : index
    %c0_13 = arith.constant 0 : index
    %4 = vector.load %arg5[%c0_11, %c0_12, %c0_13] : memref<4x16x16xf32, #tpu.memory_space<vmem>>, vector<4x16x16xf32>
    %5 = vector.extract_strided_slice %0 {offsets = [0, 0, 0], sizes = [4, 16, 8], strides = [1, 1, 1]} : vector<4x16x32xbf16> to vector<4x16x8xbf16>
    %6 = vector.extract_strided_slice %1 {offsets = [0, 0, 0], sizes = [4, 16, 8], strides = [1, 1, 1]} : vector<4x16x32xbf16> to vector<4x16x8xbf16>
    "tpu.trace_start"() <{level = 10 : i32, message = "gnd,gmd->gnm"}> : () -> ()
    %cst = arith.constant dense<0.000000e+00> : vector<4x16x16xf32>
    %7 = tpu.matmul %5, %6, %cst {dimension_numbers = #tpu.dot_dimension_numbers<[2], [2], [1], [1], [0, 0, 0, 1, 1, 1], [0], [0]>} : vector<4x16x8xbf16>, vector<4x16x8xbf16>, vector<4x16x16xf32> -> vector<4x16x16xf32>
    "tpu.trace_stop"() : () -> ()
    %8 = vector.extract_strided_slice %3 {offsets = [0, 0, 0], sizes = [1, 16, 16], strides = [1, 1, 1]} : vector<4x16x16xf32> to vector<1x16x16xf32>
    %9 = vector.shape_cast %8 : vector<1x16x16xf32> to vector<16x16xf32>
    %10 = vector.shape_cast %9 : vector<16x16xf32> to vector<1x16x16xf32>
    %11 = vector.broadcast %10 : vector<1x16x16xf32> to vector<4x16x16xf32>
    %12 = arith.addf %7, %11 : vector<4x16x16xf32>
    %13 = arith.addf %12, %4 : vector<4x16x16xf32>
    %cst_14 = arith.constant dense<0xFF800000> : vector<4x16xf32>
    %14 = vector.multi_reduction <maximumf>, %13, %cst_14 [2] : vector<4x16x16xf32> to vector<4x16xf32>
    %15 = vector.shape_cast %14 : vector<4x16xf32> to vector<4x16x1xf32>
    %16 = vector.broadcast %15 : vector<4x16x1xf32> to vector<4x16x16xf32>
    %17 = arith.subf %13, %16 : vector<4x16x16xf32>
    %18 = math.exp %17 : vector<4x16x16xf32>
    %cst_15 = arith.constant dense<0.000000e+00> : vector<4x16xf32>
    %19 = vector.multi_reduction <add>, %18, %cst_15 [2] : vector<4x16x16xf32> to vector<4x16xf32>
    %20 = vector.shape_cast %19 : vector<4x16xf32> to vector<4x16x1xf32>
    %21 = tpu.reciprocal %20 {approx = true} : vector<4x16x1xf32> -> vector<4x16x1xf32>
    %22 = vector.broadcast %21 : vector<4x16x1xf32> to vector<4x16x16xf32>
    %23 = arith.mulf %18, %22 : vector<4x16x16xf32>
    %24 = arith.truncf %23 : vector<4x16x16xf32> to vector<4x16x16xbf16>
    %25 = vector.extract_strided_slice %2 {offsets = [0, 0, 0], sizes = [4, 16, 8], strides = [1, 1, 1]} : vector<4x16x32xbf16> to vector<4x16x8xbf16>
    "tpu.trace_start"() <{level = 10 : i32, message = "gnm,gmd->gnd"}> : () -> ()
    %cst_16 = arith.constant dense<0.000000e+00> : vector<4x16x8xf32>
    %26 = tpu.matmul %24, %25, %cst_16 {dimension_numbers = #tpu.dot_dimension_numbers<[2], [1], [1], [2], [0, 0, 0, 1, 1, 2], [0], [0]>} : vector<4x16x16xbf16>, vector<4x16x8xbf16>, vector<4x16x8xf32> -> vector<4x16x8xf32>
    "tpu.trace_stop"() : () -> ()
    %27 = vector.extract_strided_slice %0 {offsets = [0, 0, 8], sizes = [4, 16, 8], strides = [1, 1, 1]} : vector<4x16x32xbf16> to vector<4x16x8xbf16>
    %28 = vector.extract_strided_slice %1 {offsets = [0, 0, 8], sizes = [4, 16, 8], strides = [1, 1, 1]} : vector<4x16x32xbf16> to vector<4x16x8xbf16>
    "tpu.trace_start"() <{level = 10 : i32, message = "gnd,gmd->gnm"}> : () -> ()
    %cst_17 = arith.constant dense<0.000000e+00> : vector<4x16x16xf32>
    %29 = tpu.matmul %27, %28, %cst_17 {dimension_numbers = #tpu.dot_dimension_numbers<[2], [2], [1], [1], [0, 0, 0, 1, 1, 1], [0], [0]>} : vector<4x16x8xbf16>, vector<4x16x8xbf16>, vector<4x16x16xf32> -> vector<4x16x16xf32>
    "tpu.trace_stop"() : () -> ()
    %30 = vector.extract_strided_slice %3 {offsets = [1, 0, 0], sizes = [1, 16, 16], strides = [1, 1, 1]} : vector<4x16x16xf32> to vector<1x16x16xf32>
    %31 = vector.shape_cast %30 : vector<1x16x16xf32> to vector<16x16xf32>
    %32 = vector.shape_cast %31 : vector<16x16xf32> to vector<1x16x16xf32>
    %33 = vector.broadcast %32 : vector<1x16x16xf32> to vector<4x16x16xf32>
    %34 = arith.addf %29, %33 : vector<4x16x16xf32>
    %35 = arith.addf %34, %4 : vector<4x16x16xf32>
    %cst_18 = arith.constant dense<0xFF800000> : vector<4x16xf32>
    %36 = vector.multi_reduction <maximumf>, %35, %cst_18 [2] : vector<4x16x16xf32> to vector<4x16xf32>
    %37 = vector.shape_cast %36 : vector<4x16xf32> to vector<4x16x1xf32>
    %38 = vector.broadcast %37 : vector<4x16x1xf32> to vector<4x16x16xf32>
    %39 = arith.subf %35, %38 : vector<4x16x16xf32>
    %40 = math.exp %39 : vector<4x16x16xf32>
    %cst_19 = arith.constant dense<0.000000e+00> : vector<4x16xf32>
    %41 = vector.multi_reduction <add>, %40, %cst_19 [2] : vector<4x16x16xf32> to vector<4x16xf32>
    %42 = vector.shape_cast %41 : vector<4x16xf32> to vector<4x16x1xf32>
    %43 = tpu.reciprocal %42 {approx = true} : vector<4x16x1xf32> -> vector<4x16x1xf32>
    %44 = vector.broadcast %43 : vector<4x16x1xf32> to vector<4x16x16xf32>
    %45 = arith.mulf %40, %44 : vector<4x16x16xf32>
    %46 = arith.truncf %45 : vector<4x16x16xf32> to vector<4x16x16xbf16>
    %47 = vector.extract_strided_slice %2 {offsets = [0, 0, 8], sizes = [4, 16, 8], strides = [1, 1, 1]} : vector<4x16x32xbf16> to vector<4x16x8xbf16>
    "tpu.trace_start"() <{level = 10 : i32, message = "gnm,gmd->gnd"}> : () -> ()
    %cst_20 = arith.constant dense<0.000000e+00> : vector<4x16x8xf32>
    %48 = tpu.matmul %46, %47, %cst_20 {dimension_numbers = #tpu.dot_dimension_numbers<[2], [1], [1], [2], [0, 0, 0, 1, 1, 2], [0], [0]>} : vector<4x16x16xbf16>, vector<4x16x8xbf16>, vector<4x16x8xf32> -> vector<4x16x8xf32>
    "tpu.trace_stop"() : () -> ()
    %49 = vector.extract_strided_slice %0 {offsets = [0, 0, 16], sizes = [4, 16, 8], strides = [1, 1, 1]} : vector<4x16x32xbf16> to vector<4x16x8xbf16>
    %50 = vector.extract_strided_slice %1 {offsets = [0, 0, 16], sizes = [4, 16, 8], strides = [1, 1, 1]} : vector<4x16x32xbf16> to vector<4x16x8xbf16>
    "tpu.trace_start"() <{level = 10 : i32, message = "gnd,gmd->gnm"}> : () -> ()
    %cst_21 = arith.constant dense<0.000000e+00> : vector<4x16x16xf32>
    %51 = tpu.matmul %49, %50, %cst_21 {dimension_numbers = #tpu.dot_dimension_numbers<[2], [2], [1], [1], [0, 0, 0, 1, 1, 1], [0], [0]>} : vector<4x16x8xbf16>, vector<4x16x8xbf16>, vector<4x16x16xf32> -> vector<4x16x16xf32>
    "tpu.trace_stop"() : () -> ()
    %52 = vector.extract_strided_slice %3 {offsets = [2, 0, 0], sizes = [1, 16, 16], strides = [1, 1, 1]} : vector<4x16x16xf32> to vector<1x16x16xf32>
    %53 = vector.shape_cast %52 : vector<1x16x16xf32> to vector<16x16xf32>
    %54 = vector.shape_cast %53 : vector<16x16xf32> to vector<1x16x16xf32>
    %55 = vector.broadcast %54 : vector<1x16x16xf32> to vector<4x16x16xf32>
    %56 = arith.addf %51, %55 : vector<4x16x16xf32>
    %57 = arith.addf %56, %4 : vector<4x16x16xf32>
    %cst_22 = arith.constant dense<0xFF800000> : vector<4x16xf32>
    %58 = vector.multi_reduction <maximumf>, %57, %cst_22 [2] : vector<4x16x16xf32> to vector<4x16xf32>
    %59 = vector.shape_cast %58 : vector<4x16xf32> to vector<4x16x1xf32>
    %60 = vector.broadcast %59 : vector<4x16x1xf32> to vector<4x16x16xf32>
    %61 = arith.subf %57, %60 : vector<4x16x16xf32>
    %62 = math.exp %61 : vector<4x16x16xf32>
    %cst_23 = arith.constant dense<0.000000e+00> : vector<4x16xf32>
    %63 = vector.multi_reduction <add>, %62, %cst_23 [2] : vector<4x16x16xf32> to vector<4x16xf32>
    %64 = vector.shape_cast %63 : vector<4x16xf32> to vector<4x16x1xf32>
    %65 = tpu.reciprocal %64 {approx = true} : vector<4x16x1xf32> -> vector<4x16x1xf32>
    %66 = vector.broadcast %65 : vector<4x16x1xf32> to vector<4x16x16xf32>
    %67 = arith.mulf %62, %66 : vector<4x16x16xf32>
    %68 = arith.truncf %67 : vector<4x16x16xf32> to vector<4x16x16xbf16>
    %69 = vector.extract_strided_slice %2 {offsets = [0, 0, 16], sizes = [4, 16, 8], strides = [1, 1, 1]} : vector<4x16x32xbf16> to vector<4x16x8xbf16>
    "tpu.trace_start"() <{level = 10 : i32, message = "gnm,gmd->gnd"}> : () -> ()
    %cst_24 = arith.constant dense<0.000000e+00> : vector<4x16x8xf32>
    %70 = tpu.matmul %68, %69, %cst_24 {dimension_numbers = #tpu.dot_dimension_numbers<[2], [1], [1], [2], [0, 0, 0, 1, 1, 2], [0], [0]>} : vector<4x16x16xbf16>, vector<4x16x8xbf16>, vector<4x16x8xf32> -> vector<4x16x8xf32>
    "tpu.trace_stop"() : () -> ()
    %71 = vector.extract_strided_slice %0 {offsets = [0, 0, 24], sizes = [4, 16, 8], strides = [1, 1, 1]} : vector<4x16x32xbf16> to vector<4x16x8xbf16>
    %72 = vector.extract_strided_slice %1 {offsets = [0, 0, 24], sizes = [4, 16, 8], strides = [1, 1, 1]} : vector<4x16x32xbf16> to vector<4x16x8xbf16>
    "tpu.trace_start"() <{level = 10 : i32, message = "gnd,gmd->gnm"}> : () -> ()
    %cst_25 = arith.constant dense<0.000000e+00> : vector<4x16x16xf32>
    %73 = tpu.matmul %71, %72, %cst_25 {dimension_numbers = #tpu.dot_dimension_numbers<[2], [2], [1], [1], [0, 0, 0, 1, 1, 1], [0], [0]>} : vector<4x16x8xbf16>, vector<4x16x8xbf16>, vector<4x16x16xf32> -> vector<4x16x16xf32>
    "tpu.trace_stop"() : () -> ()
    %74 = vector.extract_strided_slice %3 {offsets = [3, 0, 0], sizes = [1, 16, 16], strides = [1, 1, 1]} : vector<4x16x16xf32> to vector<1x16x16xf32>
    %75 = vector.shape_cast %74 : vector<1x16x16xf32> to vector<16x16xf32>
    %76 = vector.shape_cast %75 : vector<16x16xf32> to vector<1x16x16xf32>
    %77 = vector.broadcast %76 : vector<1x16x16xf32> to vector<4x16x16xf32>
    %78 = arith.addf %73, %77 : vector<4x16x16xf32>
    %79 = arith.addf %78, %4 : vector<4x16x16xf32>
    %cst_26 = arith.constant dense<0xFF800000> : vector<4x16xf32>
    %80 = vector.multi_reduction <maximumf>, %79, %cst_26 [2] : vector<4x16x16xf32> to vector<4x16xf32>
    %81 = vector.shape_cast %80 : vector<4x16xf32> to vector<4x16x1xf32>
    %82 = vector.broadcast %81 : vector<4x16x1xf32> to vector<4x16x16xf32>
    %83 = arith.subf %79, %82 : vector<4x16x16xf32>
    %84 = math.exp %83 : vector<4x16x16xf32>
    %cst_27 = arith.constant dense<0.000000e+00> : vector<4x16xf32>
    %85 = vector.multi_reduction <add>, %84, %cst_27 [2] : vector<4x16x16xf32> to vector<4x16xf32>
    %86 = vector.shape_cast %85 : vector<4x16xf32> to vector<4x16x1xf32>
    %87 = tpu.reciprocal %86 {approx = true} : vector<4x16x1xf32> -> vector<4x16x1xf32>
    %88 = vector.broadcast %87 : vector<4x16x1xf32> to vector<4x16x16xf32>
    %89 = arith.mulf %84, %88 : vector<4x16x16xf32>
    %90 = arith.truncf %89 : vector<4x16x16xf32> to vector<4x16x16xbf16>
    %91 = vector.extract_strided_slice %2 {offsets = [0, 0, 24], sizes = [4, 16, 8], strides = [1, 1, 1]} : vector<4x16x32xbf16> to vector<4x16x8xbf16>
    "tpu.trace_start"() <{level = 10 : i32, message = "gnm,gmd->gnd"}> : () -> ()
    %cst_28 = arith.constant dense<0.000000e+00> : vector<4x16x8xf32>
    %92 = tpu.matmul %90, %91, %cst_28 {dimension_numbers = #tpu.dot_dimension_numbers<[2], [1], [1], [2], [0, 0, 0, 1, 1, 2], [0], [0]>} : vector<4x16x16xbf16>, vector<4x16x8xbf16>, vector<4x16x8xf32> -> vector<4x16x8xf32>
    "tpu.trace_stop"() : () -> ()
    %93 = tpu.concatenate %26, %48, %70, %92 in 2 : vector<4x16x8xf32>, vector<4x16x8xf32>, vector<4x16x8xf32>, vector<4x16x8xf32> -> vector<4x16x32xf32>
    %94 = arith.truncf %93 : vector<4x16x32xf32> to vector<4x16x32xbf16>
    %c0_29 = arith.constant 0 : index
    %c0_30 = arith.constant 0 : index
    %c0_31 = arith.constant 0 : index
    %95 = vector.load %arg6[%c0_29, %c0_30, %c0_31] : memref<4x16x32xbf16, #tpu.memory_space<vmem>>, vector<4x16x32xbf16>
    tpu.vector_store %arg6[%c0_29, %c0_30, %c0_31], %94 {strides = array<i32>} : memref<4x16x32xbf16, #tpu.memory_space<vmem>>, vector<4x16x32xbf16>,
    return
  }
  func.func @transform_0(%arg0: i32) -> (i32, i32, i32) {
    %c0_i32 = arith.constant 0 : i32
    %c0_i32_0 = arith.constant 0 : i32
    %c0_i32_1 = arith.constant 0 : i32
    return %arg0, %c0_i32, %c0_i32_0 : i32, i32, i32
  }
  func.func @transform_1(%arg0: i32) -> (i32, i32, i32) {
    %c0_i32 = arith.constant 0 : i32
    %c0_i32_0 = arith.constant 0 : i32
    %c0_i32_1 = arith.constant 0 : i32
    return %arg0, %c0_i32, %c0_i32_0 : i32, i32, i32
  }
  func.func @transform_2(%arg0: i32) -> (i32, i32, i32) {
    %c0_i32 = arith.constant 0 : i32
    %c0_i32_0 = arith.constant 0 : i32
    %c0_i32_1 = arith.constant 0 : i32
    return %arg0, %c0_i32, %c0_i32_0 : i32, i32, i32
  }
  func.func @transform_3(%arg0: i32) -> (i32, i32, i32) {
    %c0_i32 = arith.constant 0 : i32
    %c0_i32_0 = arith.constant 0 : i32
    %c0_i32_1 = arith.constant 0 : i32
    %c0_i32_2 = arith.constant 0 : i32
    return %c0_i32, %c0_i32_0, %c0_i32_1 : i32, i32, i32
  }
  func.func @transform_4(%arg0: i32) -> (i32, i32, i32) {
    %c0_i32 = arith.constant 0 : i32
    %c0_i32_0 = arith.constant 0 : i32
    %c0_i32_1 = arith.constant 0 : i32
    %c0_i32_2 = arith.constant 0 : i32
    return %c0_i32, %c0_i32_0, %c0_i32_1 : i32, i32, i32
  }
  func.func @transform_5(%arg0: i32) -> (i32, i32, i32) {
    %c0_i32 = arith.constant 0 : i32
    %c0_i32_0 = arith.constant 0 : i32
    %c0_i32_1 = arith.constant 0 : i32
    return %arg0, %c0_i32, %c0_i32_0 : i32, i32, i32
  }
}

module attributes {stable_mosaic.version = 11 : i64} {
  func.func @_proj_ln_mlp_kernel(%arg0: i32, %arg1: memref<64x32xbf16, #tpu.memory_space<vmem>>, %arg2: memref<64x32xf32, #tpu.memory_space<vmem>>, %arg3: memref<32x32xbf16, #tpu.memory_space<vmem>>, %arg4: memref<1x32xf32, #tpu.memory_space<vmem>>, %arg5: memref<1x32xf32, #tpu.memory_space<vmem>>, %arg6: memref<1x32xf32, #tpu.memory_space<vmem>>, %arg7: memref<32x128xbf16, #tpu.memory_space<vmem>>, %arg8: memref<1x128xf32, #tpu.memory_space<vmem>>, %arg9: memref<128x32xbf16, #tpu.memory_space<vmem>>, %arg10: memref<1x32xf32, #tpu.memory_space<vmem>>, %arg11: memref<64x32xf32, #tpu.memory_space<vmem>>) attributes {dimension_semantics = [#tpu.dimension_semantics<parallel>], iteration_bounds = array<i64: 2>, scalar_prefetch = 0 : i64, scratch_operands = 0 : i64, tpu.core_type = #tpu.core_type<tc>, window_params = [{transform_indices = @transform_0, window_bounds = array<i64: 64, 32>}, {transform_indices = @transform_1, window_bounds = array<i64: 64, 32>}, {pipeline_mode = #tpu.pipeline_mode<synchronous>, transform_indices = @transform_2, window_bounds = array<i64: 32, 32>}, {pipeline_mode = #tpu.pipeline_mode<synchronous>, transform_indices = @transform_3, window_bounds = array<i64: 1, 32>}, {pipeline_mode = #tpu.pipeline_mode<synchronous>, transform_indices = @transform_4, window_bounds = array<i64: 1, 32>}, {pipeline_mode = #tpu.pipeline_mode<synchronous>, transform_indices = @transform_5, window_bounds = array<i64: 1, 32>}, {pipeline_mode = #tpu.pipeline_mode<synchronous>, transform_indices = @transform_6, window_bounds = array<i64: 32, 128>}, {pipeline_mode = #tpu.pipeline_mode<synchronous>, transform_indices = @transform_7, window_bounds = array<i64: 1, 128>}, {pipeline_mode = #tpu.pipeline_mode<synchronous>, transform_indices = @transform_8, window_bounds = array<i64: 128, 32>}, {pipeline_mode = #tpu.pipeline_mode<synchronous>, transform_indices = @transform_9, window_bounds = array<i64: 1, 32>}, {transform_indices = @transform_10, window_bounds = array<i64: 64, 32>}]} {
    %c0 = arith.constant 0 : index
    %c0_0 = arith.constant 0 : index
    %0 = vector.load %arg1[%c0, %c0_0] : memref<64x32xbf16, #tpu.memory_space<vmem>>, vector<64x32xbf16>
    %c0_1 = arith.constant 0 : index
    %c0_2 = arith.constant 0 : index
    %1 = vector.load %arg3[%c0_1, %c0_2] : memref<32x32xbf16, #tpu.memory_space<vmem>>, vector<32x32xbf16>
    %cst = arith.constant dense<0.000000e+00> : vector<64x32xf32>
    %2 = tpu.matmul %0, %1, %cst {dimension_numbers = #tpu.dot_dimension_numbers<[1], [0], [0], [1], [0, 0, 1, 1], [], []>} : vector<64x32xbf16>, vector<32x32xbf16>, vector<64x32xf32> -> vector<64x32xf32>
    %c0_3 = arith.constant 0 : index
    %c0_4 = arith.constant 0 : index
    %3 = vector.load %arg4[%c0_3, %c0_4] : memref<1x32xf32, #tpu.memory_space<vmem>>, vector<1x32xf32>
    %4 = vector.broadcast %3 : vector<1x32xf32> to vector<64x32xf32>
    %5 = arith.addf %2, %4 : vector<64x32xf32>
    %c0_5 = arith.constant 0 : index
    %c0_6 = arith.constant 0 : index
    %6 = vector.load %arg2[%c0_5, %c0_6] : memref<64x32xf32, #tpu.memory_space<vmem>>, vector<64x32xf32>
    %7 = arith.addf %6, %5 : vector<64x32xf32>
    %cst_7 = arith.constant dense<0.000000e+00> : vector<64xf32>
    %8 = vector.multi_reduction <add>, %7, %cst_7 [1] : vector<64x32xf32> to vector<64xf32>
    %9 = vector.shape_cast %8 : vector<64xf32> to vector<64x1xf32>
    %cst_8 = arith.constant 3.200000e+01 : f32
    %10 = vector.broadcast %cst_8 : f32 to vector<64x1xf32>
    %11 = arith.divf %9, %10 : vector<64x1xf32>
    %12 = vector.broadcast %11 : vector<64x1xf32> to vector<64x32xf32>
    %13 = arith.subf %7, %12 : vector<64x32xf32>
    %14 = arith.mulf %13, %13 : vector<64x32xf32>
    %cst_9 = arith.constant dense<0.000000e+00> : vector<64xf32>
    %15 = vector.multi_reduction <add>, %14, %cst_9 [1] : vector<64x32xf32> to vector<64xf32>
    %16 = vector.shape_cast %15 : vector<64xf32> to vector<64x1xf32>
    %cst_10 = arith.constant 3.200000e+01 : f32
    %17 = vector.broadcast %cst_10 : f32 to vector<64x1xf32>
    %18 = arith.divf %16, %17 : vector<64x1xf32>
    %19 = vector.broadcast %11 : vector<64x1xf32> to vector<64x32xf32>
    %20 = arith.subf %7, %19 : vector<64x32xf32>
    %cst_11 = arith.constant 9.99999974E-6 : f32
    %21 = vector.broadcast %cst_11 : f32 to vector<64x1xf32>
    %22 = arith.addf %18, %21 : vector<64x1xf32>
    %23 = math.rsqrt %22 : vector<64x1xf32>
    %24 = vector.broadcast %23 : vector<64x1xf32> to vector<64x32xf32>
    %25 = arith.mulf %20, %24 : vector<64x32xf32>
    %c0_12 = arith.constant 0 : index
    %c0_13 = arith.constant 0 : index
    %26 = vector.load %arg5[%c0_12, %c0_13] : memref<1x32xf32, #tpu.memory_space<vmem>>, vector<1x32xf32>
    %27 = vector.broadcast %26 : vector<1x32xf32> to vector<64x32xf32>
    %28 = arith.mulf %25, %27 : vector<64x32xf32>
    %c0_14 = arith.constant 0 : index
    %c0_15 = arith.constant 0 : index
    %29 = vector.load %arg6[%c0_14, %c0_15] : memref<1x32xf32, #tpu.memory_space<vmem>>, vector<1x32xf32>
    %30 = vector.broadcast %29 : vector<1x32xf32> to vector<64x32xf32>
    %31 = arith.addf %28, %30 : vector<64x32xf32>
    %32 = arith.truncf %31 : vector<64x32xf32> to vector<64x32xbf16>
    %c0_16 = arith.constant 0 : index
    %c0_17 = arith.constant 0 : index
    %33 = vector.load %arg7[%c0_16, %c0_17] : memref<32x128xbf16, #tpu.memory_space<vmem>>, vector<32x128xbf16>
    %cst_18 = arith.constant dense<0.000000e+00> : vector<64x128xf32>
    %34 = tpu.matmul %32, %33, %cst_18 {dimension_numbers = #tpu.dot_dimension_numbers<[1], [0], [0], [1], [0, 0, 1, 1], [], []>} : vector<64x32xbf16>, vector<32x128xbf16>, vector<64x128xf32> -> vector<64x128xf32>
    %c0_19 = arith.constant 0 : index
    %c0_20 = arith.constant 0 : index
    %35 = vector.load %arg8[%c0_19, %c0_20] : memref<1x128xf32, #tpu.memory_space<vmem>>, vector<1x128xf32>
    %36 = vector.broadcast %35 : vector<1x128xf32> to vector<64x128xf32>
    %37 = arith.addf %34, %36 : vector<64x128xf32>
    %cst_21 = arith.constant 5.000000e-01 : f32
    %38 = vector.broadcast %cst_21 : f32 to vector<64x128xf32>
    %39 = arith.mulf %38, %37 : vector<64x128xf32>
    %cst_22 = arith.constant 0.707106769 : f32
    %40 = vector.broadcast %cst_22 : f32 to vector<64x128xf32>
    %41 = arith.mulf %37, %40 : vector<64x128xf32>
    %42 = math.absf %41 : vector<64x128xf32>
    %cst_23 = arith.constant 0.327591091 : f32
    %43 = vector.broadcast %cst_23 : f32 to vector<64x128xf32>
    %44 = arith.mulf %43, %42 : vector<64x128xf32>
    %cst_24 = arith.constant 1.000000e+00 : f32
    %45 = vector.broadcast %cst_24 : f32 to vector<64x128xf32>
    %46 = arith.addf %45, %44 : vector<64x128xf32>
    %cst_25 = arith.constant 1.000000e+00 : f32
    %47 = vector.broadcast %cst_25 : f32 to vector<64x128xf32>
    %48 = arith.divf %47, %46 : vector<64x128xf32>
    %cst_26 = arith.constant 1.06140542 : f32
    %49 = vector.broadcast %cst_26 : f32 to vector<64x128xf32>
    %50 = arith.mulf %49, %48 : vector<64x128xf32>
    %cst_27 = arith.constant -1.45315206 : f32
    %51 = vector.broadcast %cst_27 : f32 to vector<64x128xf32>
    %52 = arith.addf %50, %51 : vector<64x128xf32>
    %53 = arith.mulf %52, %48 : vector<64x128xf32>
    %cst_28 = arith.constant 1.42141378 : f32
    %54 = vector.broadcast %cst_28 : f32 to vector<64x128xf32>
    %55 = arith.addf %53, %54 : vector<64x128xf32>
    %56 = arith.mulf %55, %48 : vector<64x128xf32>
    %cst_29 = arith.constant -0.284496725 : f32
    %57 = vector.broadcast %cst_29 : f32 to vector<64x128xf32>
    %58 = arith.addf %56, %57 : vector<64x128xf32>
    %59 = arith.mulf %58, %48 : vector<64x128xf32>
    %cst_30 = arith.constant 0.254829586 : f32
    %60 = vector.broadcast %cst_30 : f32 to vector<64x128xf32>
    %61 = arith.addf %59, %60 : vector<64x128xf32>
    %62 = arith.mulf %61, %48 : vector<64x128xf32>
    %cst_31 = arith.constant 0.000000e+00 : f32
    %63 = vector.broadcast %cst_31 : f32 to vector<64x128xf32>
    %64 = arith.subf %63, %42 : vector<64x128xf32>
    %65 = arith.mulf %64, %42 : vector<64x128xf32>
    %66 = math.exp %65 : vector<64x128xf32>
    %67 = arith.mulf %62, %66 : vector<64x128xf32>
    %cst_32 = arith.constant 1.000000e+00 : f32
    %68 = vector.broadcast %cst_32 : f32 to vector<64x128xf32>
    %69 = arith.subf %68, %67 : vector<64x128xf32>
    %cst_33 = arith.constant 0.000000e+00 : f32
    %70 = vector.broadcast %cst_33 : f32 to vector<64x128xf32>
    %71 = arith.cmpf oge, %41, %70 : vector<64x128xf32>
    %cst_34 = arith.constant 0.000000e+00 : f32
    %72 = vector.broadcast %cst_34 : f32 to vector<64x128xf32>
    %73 = arith.subf %72, %69 : vector<64x128xf32>
    %74 = arith.select %71, %69, %73 : vector<64x128xi1>, vector<64x128xf32>
    %cst_35 = arith.constant 1.000000e+00 : f32
    %75 = vector.broadcast %cst_35 : f32 to vector<64x128xf32>
    %76 = arith.addf %75, %74 : vector<64x128xf32>
    %77 = arith.mulf %39, %76 : vector<64x128xf32>
    %78 = arith.truncf %77 : vector<64x128xf32> to vector<64x128xbf16>
    %c0_36 = arith.constant 0 : index
    %c0_37 = arith.constant 0 : index
    %79 = vector.load %arg9[%c0_36, %c0_37] : memref<128x32xbf16, #tpu.memory_space<vmem>>, vector<128x32xbf16>
    %cst_38 = arith.constant dense<0.000000e+00> : vector<64x32xf32>
    %80 = tpu.matmul %78, %79, %cst_38 {dimension_numbers = #tpu.dot_dimension_numbers<[1], [0], [0], [1], [0, 0, 1, 1], [], []>} : vector<64x128xbf16>, vector<128x32xbf16>, vector<64x32xf32> -> vector<64x32xf32>
    %c0_39 = arith.constant 0 : index
    %c0_40 = arith.constant 0 : index
    %81 = vector.load %arg10[%c0_39, %c0_40] : memref<1x32xf32, #tpu.memory_space<vmem>>, vector<1x32xf32>
    %82 = vector.broadcast %81 : vector<1x32xf32> to vector<64x32xf32>
    %83 = arith.addf %80, %82 : vector<64x32xf32>
    %84 = arith.addf %7, %83 : vector<64x32xf32>
    %c0_41 = arith.constant 0 : index
    %c0_42 = arith.constant 0 : index
    %85 = vector.load %arg11[%c0_41, %c0_42] : memref<64x32xf32, #tpu.memory_space<vmem>>, vector<64x32xf32>
    tpu.vector_store %arg11[%c0_41, %c0_42], %84 {strides = array<i32>} : memref<64x32xf32, #tpu.memory_space<vmem>>, vector<64x32xf32>,
    return
  }
  func.func @transform_0(%arg0: i32) -> (i32, i32) {
    %c0_i32 = arith.constant 0 : i32
    %c0_i32_0 = arith.constant 0 : i32
    return %arg0, %c0_i32 : i32, i32
  }
  func.func @transform_1(%arg0: i32) -> (i32, i32) {
    %c0_i32 = arith.constant 0 : i32
    %c0_i32_0 = arith.constant 0 : i32
    return %arg0, %c0_i32 : i32, i32
  }
  func.func @transform_2(%arg0: i32) -> (i32, i32) {
    %c0_i32 = arith.constant 0 : i32
    %c0_i32_0 = arith.constant 0 : i32
    %c0_i32_1 = arith.constant 0 : i32
    return %c0_i32, %c0_i32_0 : i32, i32
  }
  func.func @transform_3(%arg0: i32) -> (i32, i32) {
    %c0_i32 = arith.constant 0 : i32
    %c0_i32_0 = arith.constant 0 : i32
    %c0_i32_1 = arith.constant 0 : i32
    return %c0_i32, %c0_i32_0 : i32, i32
  }
  func.func @transform_4(%arg0: i32) -> (i32, i32) {
    %c0_i32 = arith.constant 0 : i32
    %c0_i32_0 = arith.constant 0 : i32
    %c0_i32_1 = arith.constant 0 : i32
    return %c0_i32, %c0_i32_0 : i32, i32
  }
  func.func @transform_5(%arg0: i32) -> (i32, i32) {
    %c0_i32 = arith.constant 0 : i32
    %c0_i32_0 = arith.constant 0 : i32
    %c0_i32_1 = arith.constant 0 : i32
    return %c0_i32, %c0_i32_0 : i32, i32
  }
  func.func @transform_6(%arg0: i32) -> (i32, i32) {
    %c0_i32 = arith.constant 0 : i32
    %c0_i32_0 = arith.constant 0 : i32
    %c0_i32_1 = arith.constant 0 : i32
    return %c0_i32, %c0_i32_0 : i32, i32
  }
  func.func @transform_7(%arg0: i32) -> (i32, i32) {
    %c0_i32 = arith.constant 0 : i32
    %c0_i32_0 = arith.constant 0 : i32
    %c0_i32_1 = arith.constant 0 : i32
    return %c0_i32, %c0_i32_0 : i32, i32
  }
  func.func @transform_8(%arg0: i32) -> (i32, i32) {
    %c0_i32 = arith.constant 0 : i32
    %c0_i32_0 = arith.constant 0 : i32
    %c0_i32_1 = arith.constant 0 : i32
    return %c0_i32, %c0_i32_0 : i32, i32
  }
  func.func @transform_9(%arg0: i32) -> (i32, i32) {
    %c0_i32 = arith.constant 0 : i32
    %c0_i32_0 = arith.constant 0 : i32
    %c0_i32_1 = arith.constant 0 : i32
    return %c0_i32, %c0_i32_0 : i32, i32
  }
  func.func @transform_10(%arg0: i32) -> (i32, i32) {
    %c0_i32 = arith.constant 0 : i32
    %c0_i32_0 = arith.constant 0 : i32
    return %arg0, %c0_i32 : i32, i32
  }
}

</mosaic_0001>

<bundles_post_ra>
// kernel: swin_block_pallas.3
= control target key start
LH: loop header
LB: loop body
LE: loop exit
PB: predicated region body
PF: predicated region fallthrough
CT: control target
= control target key end

     0   :  { %s683_s18 = smov 0   ;;  %s875_s0 = inlined_call_operand.vmem [shape: f32[128,32], index: 0, kind: input, shape index: {}]   ;;  %s876_s1 = inlined_call_operand.vmem [shape: f32[1,32], index: 1, kind: input, shape index: {}]   ;;  %s877_s2 = inlined_call_operand.vmem [shape: f32[1,32], index: 2, kind: input, shape index: {}]   ;;  %s878_s3 = inlined_call_operand.vmem [shape: bf16[32,96], index: 3, kind: input, shape index: {}]   ;;  %s879_s4 = inlined_call_operand.vmem [shape: f32[1,96], index: 4, kind: input, shape index: {}]   ;;  %s880_s5 = inlined_call_operand.vmem [shape: bf16[128,96], index: 5, kind: output, shape index: {}]  }
   0x1 LB: > { %s583_s19 = sadd.s32 4294967295, %s650_s18   ;;  %p587_p0 = scmp.ge.s32.totalorder %s650_s18, 1  ;;  %s650_s18 = sphi %s683_s18, %s15_s18  }
   0x2   : > { %p188_p1 = scmp.lt.s32.totalorder %s650_s18, 3 }
   0x4   : > { %p189_p2 = pnand %p587_p0, %p188_p1 }
   0x5   : > { %s588_s20 = sshll.u32 (!%p189_p2), %s583_s19, 3 }
   0x6   : > { %192 = sbr.rel (%p189_p2) target bundleno = 449 (0x1c1), region = 40  ;;  %p217_p3 = scmp.lt.s32.totalorder (!%p189_p2), %s588_s20, 15 }
   0xb   : > { %s888_s20 = smov (!%p217_p3, %s588_s20), 15  ;;  %vm237_vm0 = vcmask 261120   ;;  %v652_v16 = vmov 32.0  }
   0xc   : > { %s589_s21 = sshll.u32 %s888_s20, 3  ;;  %626 = vrcp.f32 %v652_v16  ;;  %s591_s10 = sshll.u32 %s888_s20, 2 }
   0xd   : > { %s220_s24 = scalar_lea.vmem %s875_s0, %s589_s21  ;;  %s854_s13 = scalar_lea.vmem %s880_s5, %s591_s10 }
   0xe   : > { %v235_v0 = vld [vmem:[%s220_s24 + $0x30] sm:$0xff]  ;;  %v233_v1 = vld [vmem:[%s220_s24 + $0x20] sm:$0xff]  ;;  %v236_v6 = vld [vmem:[%s220_s24 + $0x38] sm:$0xff] }
   0xf   : > { %v229_v2 = vld [vmem:[%s220_s24] sm:$0xff]  ;;  %v256_v3 = vsel %vm237_vm0, %v235_v0, 0.0  ;;  %v250_v4 = vsel %vm237_vm0, %v233_v1, 0.0  ;;  %v234_v7 = vld [vmem:[%s220_s24 + $0x28] sm:$0xff]  ;;  %v259_v9 = vsel %vm237_vm0, %v236_v6, 0.0  ;;  %v231_v12 = vld [vmem:[%s220_s24 + $0x10] sm:$0xff] }
  0x10   : > { %v238_v5 = vsel %vm237_vm0, %v229_v2, 0.0  ;;  %257 = vadd.xlane.f32.xlu1 %v256_v3  ;;  %251 = vadd.xlane.f32.xlu0 %v250_v4  ;;  %v230_v8 = vld [vmem:[%s220_s24 + $0x8] sm:$0xff]  ;;  %v253_v10 = vsel %vm237_vm0, %v234_v7, 0.0  ;;  %v232_v13 = vld [vmem:[%s220_s24 + $0x18] sm:$0xff]  ;;  %v244_v14 = vsel %vm237_vm0, %v231_v12, 0.0 }
  0x11   : > { %239 = vadd.xlane.f32.xlu2 %v238_v5  ;;  %v241_v11 = vsel %vm237_vm0, %v230_v8, 0.0  ;;  %v247_v15 = vsel %vm237_vm0, %v232_v13, 0.0  ;;  %v607_v3 = vld [vmem:[%s878_s3 + $0x8] sm:$0xff] }
  0x12   : > { %v627_v17 = vpop.eup %626  ;;  %609 = vmatpush.bf16.msra.mxu2 %v607_v3  ;;  %610 = vmatpush.bf16.msra.mxu3 %v607_v3 }
  0x13   : > { %v263_v18 = vmul.f32 32.0, %v627_v17  ;;  %vm267_vm1 = vweird.f32 %v627_v17  ;;  %487 = vmatpush.bf16.msra.mxu0 %v607_v3  ;;  %608 = vmatpush.bf16.msra.mxu1 %v607_v3 }
  0x15   : > { %v264_v19 = vsub.f32 1.0, %v263_v18 }
  0x17   : > { %v265_v20 = vmul.f32 %v627_v17, %v264_v19 }
  0x18   : > { %260 = vadd.xlane.f32.xlu1 %v259_v9  ;;  %254 = vadd.xlane.f32.xlu0 %v253_v10 }
  0x19   : > { %242 = vadd.xlane.f32.xlu2 %v241_v11  ;;  %v266_v21 = vadd.f32 %v627_v17, %v265_v20 }
  0x1b   : > { %v705_v22 = vsel %vm267_vm1, %v627_v17, %v266_v21 }
  0x20   : > { %245 = vadd.xlane.f32.xlu0 %v244_v14  ;;  %248 = vadd.xlane.f32.xlu1 %v247_v15 }
  0x83   : > { %v258_v23 = vpop.xlane.xlu1 %257  ;;  %v252_v24 = vpop.xlane.xlu0 %251 }
  0x84   : > { %v275_v25 = vmul.f32 %v705_v22, %v258_v23  ;;  %v273_v26 = vmul.f32 %v705_v22, %v252_v24  ;;  %v240_v27 = vpop.xlane.xlu2 %239 }
  0x85   : > { %v269_v36 = vmul.f32 %v705_v22, %v240_v27 }
  0x86   : > { %v709_v28 = vsub.f32 %v235_v0, %v275_v25  ;;  %v711_v29 = vsub.f32 %v233_v1, %v273_v26 }
  0x87   : > { %v729_v44 = vsub.f32 %v229_v2, %v269_v36 }
  0x88   : > { %v291_v30 = vmul.f32 %v709_v28, %v709_v28  ;;  %v289_v31 = vmul.f32 %v711_v29, %v711_v29 }
  0x89   : > { %v285_v55 = vmul.f32 %v729_v44, %v729_v44 }
  0x8a   : > { %v311_v32 = vsel %vm237_vm0, %v291_v30, 0.0  ;;  %v305_v33 = vsel %vm237_vm0, %v289_v31, 0.0 }
  0x8b   : > { %v261_v34 = vpop.xlane.xlu1 %260  ;;  %v255_v35 = vpop.xlane.xlu0 %254  ;;  %312 = vadd.xlane.f32.xlu1 %v311_v32  ;;  %306 = vadd.xlane.f32.xlu2 %v305_v33  ;;  %v293_v59 = vsel %vm237_vm0, %v285_v55, 0.0 }
  0x8c   : > { %v276_v37 = vmul.f32 %v705_v22, %v261_v34  ;;  %v274_v38 = vmul.f32 %v705_v22, %v255_v35  ;;  %v243_v39 = vpop.xlane.xlu2 %242 }
  0x8d   : > { %v270_v40 = vmul.f32 %v705_v22, %v243_v39 }
  0x8e   : > { %v723_v41 = vsub.f32 %v236_v6, %v276_v37  ;;  %v725_v42 = vsub.f32 %v234_v7, %v274_v38  ;;  %v606_v6 = vld [vmem:[%s878_s3] sm:$0xff] }
  0x8f   : > { %v727_v43 = vsub.f32 %v230_v8, %v270_v40  ;;  %612 = vmatpush.bf16.msra.mxu2 %v606_v6  ;;  %613 = vmatpush.bf16.msra.mxu3 %v606_v6 }
  0x90   : > { %v290_v45 = vmul.f32 %v725_v42, %v725_v42  ;;  %v292_v46 = vmul.f32 %v723_v41, %v723_v41  ;;  %488 = vmatpush.bf16.msra.mxu0 %v606_v6  ;;  %611 = vmatpush.bf16.msra.mxu1 %v606_v6 }
  0x91   : > { %v286_v47 = vmul.f32 %v727_v43, %v727_v43 }
  0x92   : > { %v308_v48 = vsel %vm237_vm0, %v290_v45, 0.0  ;;  %v314_v49 = vsel %vm237_vm0, %v292_v46, 0.0 }
  0x93   : > { %309 = vadd.xlane.f32.xlu0 %v308_v48  ;;  %v246_v50 = vpop.xlane.xlu0 %245  ;;  %315 = vadd.xlane.f32.xlu2 %v314_v49  ;;  %v296_v51 = vsel %vm237_vm0, %v286_v47, 0.0  ;;  %v249_v52 = vpop.xlane.xlu1 %248 }
  0x94   : > { %v271_v53 = vmul.f32 %v705_v22, %v246_v50  ;;  %297 = vadd.xlane.f32.xlu1 %v296_v51  ;;  %v272_v54 = vmul.f32 %v705_v22, %v249_v52 }
  0x96   : > { %v744_v56 = vsub.f32 %v231_v12, %v271_v53  ;;  %v746_v57 = vsub.f32 %v232_v13, %v272_v54 }
  0x98   : > { %v287_v58 = vmul.f32 %v744_v56, %v744_v56  ;;  %v288_v61 = vmul.f32 %v746_v57, %v746_v57 }
  0x9a   : > { %v299_v60 = vsel %vm237_vm0, %v287_v58, 0.0  ;;  %v302_v62 = vsel %vm237_vm0, %v288_v61, 0.0 }
  0x9b   : > { %300 = vadd.xlane.f32.xlu2 %v299_v60  ;;  %294 = vadd.xlane.f32.xlu0 %v293_v59 }
  0xa3   : > { %303 = vadd.xlane.f32.xlu0 %v302_v62 }
  0xfe   : > { %v313_v63 = vpop.xlane.xlu1 %312  ;;  %v307_v0 = vpop.xlane.xlu2 %306 }
  0xff   : > { %v323_v1 = vmul.f32 %v313_v63, %v705_v22  ;;  %v321_v2 = vmul.f32 %v307_v0, %v705_v22  ;;  %v802_v63 = vld [vmem:[%s876_s1] ss:$0 sm:$0xff] }
 0x101   : > { %v331_v4 = vadd.f32 1e-05, %v323_v1  ;;  %v329_v5 = vadd.f32 1e-05, %v321_v2 }
 0x103   : > { %628 = vrsqrt.f32 %v331_v4  ;;  %vm399_vm2 = vweird.f32 %v331_v4  ;;  %vm379_vm5 = vweird.f32 %v329_v5 }
 0x104   : > { %630 = vrsqrt.f32 %v329_v5 }
 0x106   : > { %v310_v7 = vpop.xlane.xlu0 %309  ;;  %v316_v8 = vpop.xlane.xlu2 %315 }
 0x107   : > { %v322_v9 = vmul.f32 %v310_v7, %v705_v22  ;;  %v298_v10 = vpop.xlane.xlu1 %297  ;;  %v324_v11 = vmul.f32 %v316_v8, %v705_v22 }
 0x108   : > { %v318_v12 = vmul.f32 %v298_v10, %v705_v22 }
 0x109   : > { %v629_v13 = vpop.eup %628  ;;  %v330_v14 = vadd.f32 1e-05, %v322_v9  ;;  %v766_v15 = vadd.f32 1e-05, %v324_v11  ;;  %v624_v11 = vld [vmem:[%s877_s2] ss:$0 sm:$0xff] }
 0x10a   : > { %v631_v16 = vpop.eup %630  ;;  %v394_v17 = vmul.f32 %v629_v13, %v331_v4  ;;  %v326_v18 = vadd.f32 1e-05, %v318_v12  ;;  %vm400_vm4 = vweird.f32 %v629_v13 }
 0x10b   : > { %v374_v19 = vmul.f32 %v631_v16, %v329_v5  ;;  %632 = vrsqrt.f32 %v330_v14  ;;  %vm380_vm3 = vweird.f32 %v631_v16  ;;  %vm389_vm7 = vweird.f32 %v330_v14  ;;  %vm789_vm8 = vmor %vm399_vm2, %vm400_vm4 }
 0x10c   : > { %v395_v20 = vmul.f32 %v629_v13, %v394_v17  ;;  %634 = vrsqrt.f32 %v326_v18  ;;  %vm779_vm6 = vmor %vm379_vm5, %vm380_vm3  ;;  %vm349_vm9 = vweird.f32 %v326_v18  ;;  %vm409_vm12 = vweird.f32 %v766_v15 }
 0x10d   : > { %v375_v21 = vmul.f32 %v631_v16, %v374_v19  ;;  %636 = vrsqrt.f32 %v766_v15 }
 0x10e   : > { %v396_v23 = vmul.f32 0.5, %v395_v20  ;;  %v295_v24 = vpop.xlane.xlu0 %294  ;;  %v301_v25 = vpop.xlane.xlu2 %300 }
 0x10f   : > { %v376_v26 = vmul.f32 0.5, %v375_v21  ;;  %v317_v27 = vmul.f32 %v295_v24, %v705_v22  ;;  %v319_v30 = vmul.f32 %v301_v25, %v705_v22 }
 0x110   : > { %v397_v31 = vsub.f32 1.5, %v396_v23 }
 0x111   : > { %v633_v32 = vpop.eup %632  ;;  %v377_v33 = vsub.f32 1.5, %v376_v26  ;;  %v771_v34 = vadd.f32 1e-05, %v317_v27  ;;  %v775_v37 = vadd.f32 1e-05, %v319_v30 }
 0x112   : > { %v773_v35 = vpop.eup %634  ;;  %v384_v36 = vmul.f32 %v633_v32, %v330_v14  ;;  %v398_v39 = vmul.f32 %v629_v13, %v397_v31  ;;  %vm390_vm10 = vweird.f32 %v633_v32 }
 0x113   : > { %v637_v38 = vpop.eup %636  ;;  %v378_v40 = vmul.f32 %v631_v16, %v377_v33  ;;  %v344_v45 = vmul.f32 %v773_v35, %v326_v18  ;;  %638 = vrsqrt.f32 %v771_v34  ;;  %vm350_vm11 = vweird.f32 %v773_v35  ;;  %vm391_vm14 = vmor %vm389_vm7, %vm390_vm10 }
 0x114   : > { %v385_v47 = vmul.f32 %v633_v32, %v384_v36  ;;  %v404_v48 = vmul.f32 %v637_v38, %v766_v15  ;;  %640 = vrsqrt.f32 %v775_v37  ;;  %v402_v55 = vsel %vm789_vm8, %v629_v13, %v398_v39  ;;  %vm811_vm15 = vmor %vm349_vm9, %vm350_vm11 }
 0x115   : > { %v382_v49 = vsel %vm779_vm6, %v631_v16, %v378_v40  ;;  %v345_v50 = vmul.f32 %v773_v35, %v344_v45  ;;  %vm410_vm13 = vweird.f32 %v637_v38  ;;  %v419_v3 = vmul.f32 %v402_v55, %v709_v28 }
 0x116   : > { %v386_v52 = vmul.f32 0.5, %v385_v47  ;;  %v405_v53 = vmul.f32 %v637_v38, %v404_v48  ;;  %v304_v54 = vpop.xlane.xlu0 %303  ;;  %v417_v60 = vmul.f32 %v382_v49, %v711_v29  ;;  %vm411_vm1 = vmor %vm409_vm12, %vm410_vm13  ;;  %vm339_vm2 = vweird.f32 %v771_v34 }
 0x117   : > { %v346_v58 = vmul.f32 0.5, %v345_v50  ;;  %v320_v59 = vmul.f32 %v304_v54, %v705_v22  ;;  %v431_v18 = vmul.f32 %v802_v63, %v419_v3  ;;  %vm359_vm4 = vweird.f32 %v775_v37 }
 0x118   : > { %v387_v61 = vsub.f32 1.5, %v386_v52  ;;  %v406_v62 = vmul.f32 0.5, %v405_v53  ;;  %v429_v28 = vmul.f32 %v802_v63, %v417_v60  ;;  %vm518_vm11 = vcmask 781312  }
 0x119   : > { %v639_v0 = vpop.eup %638  ;;  %v347_v1 = vsub.f32 1.5, %v346_v58  ;;  %v328_v2 = vadd.f32 1e-05, %v320_v59 }
 0x11a   : > { %v388_v22 = vmul.f32 %v633_v32, %v387_v61  ;;  %v407_v29 = vsub.f32 1.5, %v406_v62  ;;  %v334_v4 = vmul.f32 %v639_v0, %v771_v34  ;;  %v641_v7 = vpop.eup %640  ;;  %vm340_vm3 = vweird.f32 %v639_v0 }
 0x11b   : > { %v348_v5 = vmul.f32 %v773_v35, %v347_v1  ;;  %642 = vrsqrt.f32 %v328_v2  ;;  %v354_v13 = vmul.f32 %v641_v7, %v775_v37  ;;  %v441_v15 = vadd.f32 %v624_v11, %v429_v28  ;;  %vm341_vm5 = vmor %vm339_vm2, %vm340_vm3 }
 0x11c   : > { %v392_v8 = vsel %vm391_vm14, %v633_v32, %v388_v22  ;;  %v408_v9 = vmul.f32 %v637_v38, %v407_v29  ;;  %v335_v10 = vmul.f32 %v639_v0, %v334_v4  ;;  %vm360_vm6 = vweird.f32 %v641_v7 }
 0x11d   : > { %v418_v12 = vmul.f32 %v392_v8, %v725_v42  ;;  %v352_v14 = vsel %vm811_vm15, %v773_v35, %v348_v5  ;;  %v355_v20 = vmul.f32 %v641_v7, %v354_v13  ;;  %vm361_vm7 = vmor %vm359_vm4, %vm360_vm6  ;;  %vm369_vm9 = vweird.f32 %v328_v2 }
 0x11e   : > { %v412_v16 = vsel %vm411_vm1, %v637_v38, %v408_v9  ;;  %v336_v17 = vmul.f32 0.5, %v335_v10  ;;  %v414_v24 = vmul.f32 %v352_v14, %v727_v43 }
 0x11f   : > { %v420_v19 = vmul.f32 %v412_v16, %v723_v41  ;;  %v430_v21 = vmul.f32 %v802_v63, %v418_v12  ;;  %v356_v25 = vmul.f32 0.5, %v355_v20  ;;  %v443_v41 = vadd.f32 %v624_v11, %v431_v18 }
 0x120   : > { %v337_v42 = vsub.f32 1.5, %v336_v17  ;;  %v426_v40 = vmul.f32 %v802_v63, %v414_v24 }
 0x121   : > { %v643_v23 = vpop.eup %642  ;;  %v442_v26 = vadd.f32 %v624_v11, %v430_v21  ;;  %v432_v27 = vmul.f32 %v802_v63, %v420_v19  ;;  %v357_v32 = vsub.f32 1.5, %v356_v25 }
 0x122   : > { %v338_v30 = vmul.f32 %v639_v0, %v337_v42  ;;  %v364_v31 = vmul.f32 %v643_v23, %v328_v2  ;;  %vm370_vm8 = vweird.f32 %v643_v23  ;;  %v438_v50 = vadd.f32 %v624_v11, %v426_v40 }
 0x123   : > { %v447_v33 = vpack.c.bf16 %v442_v26, %v441_v15  ;;  %v444_v35 = vadd.f32 %v624_v11, %v432_v27  ;;  %v358_v39 = vmul.f32 %v641_v7, %v357_v32  ;;  %vm371_vm10 = vmor %vm369_vm9, %vm370_vm8 }
 0x124   : > { %v342_v34 = vsel %vm341_vm5, %v639_v0, %v338_v30  ;;  %v365_v36 = vmul.f32 %v643_v23, %v364_v31 }
 0x125   : > { %v413_v38 = vmul.f32 %v342_v34, %v729_v44  ;;  %602 = vmatmul.msk.bf16.vlgmr.msra.gmra.mxu2 %vm237_vm0, %v447_v33  ;;  %v448_v43 = vpack.c.bf16 %v444_v35, %v443_v41  ;;  %v362_v46 = vsel %vm361_vm7, %v641_v7, %v358_v39 }
 0x126   : > { %v366_v45 = vmul.f32 0.5, %v365_v36  ;;  %v415_v49 = vmul.f32 %v362_v46, %v744_v56  ;;  %v625_v56 = vld [vmem:[%s879_s4] ss:$0 sm:$0xff] }
 0x127   : > { %603 = vmatmul.msk.bf16.vlgmr.msra.gmra.mxu3 %vm237_vm0, %v448_v43  ;;  %v425_v47 = vmul.f32 %v802_v63, %v413_v38 }
 0x128   : > { %v367_v48 = vsub.f32 1.5, %v366_v45  ;;  %v427_v54 = vmul.f32 %v802_v63, %v415_v49 }
 0x129   : > { %v437_v44 = vadd.f32 %v624_v11, %v425_v47 }
 0x12a   : > { %v368_v51 = vmul.f32 %v643_v23, %v367_v48  ;;  %v439_v58 = vadd.f32 %v624_v11, %v427_v54 }
 0x12b   : > { %v445_v52 = vpack.c.bf16 %v438_v50, %v437_v44 }
 0x12c   : > { %v372_v53 = vsel %vm371_vm10, %v643_v23, %v368_v51 }
 0x12d   : > { %v416_v37 = vmul.f32 %v372_v53, %v746_v57  ;;  %600 = vmatmul.msk.bf16.vlgmr.msra.gmra.mxu0 %vm237_vm0, %v445_v52 }
 0x12f   : > { %v428_v55 = vmul.f32 %v802_v63, %v416_v37 }
 0x131   : > { %v440_v59 = vadd.f32 %v624_v11, %v428_v55 }
 0x133   : > { %v446_v60 = vpack.c.bf16 %v440_v59, %v439_v58 }
 0x135   : > { %601 = vmatmul.msk.bf16.vlgmr.msra.gmra.mxu1 %vm237_vm0, %v446_v60 }
 0x1a8   : > { %v500_v61 = vpop.f32.mrf.mxu2 }
 0x1a9   : > { %v501_v62 = vadd.f32 %v625_v56, %v500_v61 }
 0x1aa   : > { %v505_v57 = vpop.f32.mrf.mxu3  ;;  %v490_v63 = vpop.f32.mrf.mxu0 }
 0x1ab   : > { %v514_v0 = vpack.c.bf16 %v501_v62, %v501_v62  ;;  %v506_v1 = vadd.f32 %v625_v56, %v505_v57  ;;  %v491_v2 = vadd.f32 %v625_v56, %v490_v63 }
 0x1ad   : > { %523 = vst.msk [vmem:[%s854_s13 + $0x10] sm:$0xf] %vm518_vm11, %v514_v0  ;;  %v516_v3 = vpack.c.bf16 %v506_v1, %v506_v1  ;;  %v510_v22 = vpack.c.bf16 %v491_v2, %v491_v2 }
 0x1af   : > { %525 = vst.msk [vmem:[%s854_s13 + $0x18] sm:$0xf] %vm518_vm11, %v516_v3 }
 0x1b0   : > { %519 = vst.msk [vmem:[%s854_s13] sm:$0xf] %vm518_vm11, %v510_v22  ;;  %v502_v29 = vpop.f32.mrf.mxu2 }
 0x1b1   : > { %v503_v4 = vadd.f32 %v625_v56, %v502_v29 }
 0x1b2   : > { %v507_v5 = vpop.f32.mrf.mxu3  ;;  %v492_v6 = vpop.f32.mrf.mxu0 }
 0x1b3   : > { %v515_v7 = vpack.c.bf16 %v503_v4, %v503_v4  ;;  %v508_v8 = vadd.f32 %v625_v56, %v507_v5  ;;  %v493_v9 = vadd.f32 %v625_v56, %v492_v6  ;;  %v495_v10 = vpop.f32.mrf.mxu1 }
 0x1b4   : > { %v496_v28 = vadd.f32 %v625_v56, %v495_v10 }
 0x1b5   : > { %524 = vst.msk [vmem:[%s854_s13 + $0x14] sm:$0xf] %vm518_vm11, %v515_v7  ;;  %v517_v11 = vpack.c.bf16 %v508_v8, %v508_v8  ;;  %v511_v12 = vpack.c.bf16 %v493_v9, %v493_v9 }
 0x1b6   : > { %v512_v13 = vpack.c.bf16 %v496_v28, %v496_v28 }
 0x1b7   : > { %526 = vst.msk [vmem:[%s854_s13 + $0x1c] sm:$0xf] %vm518_vm11, %v517_v11 }
 0x1b8   : > { %520 = vst.msk [vmem:[%s854_s13 + $0x4] sm:$0xf] %vm518_vm11, %v511_v12 }
 0x1b9   : > { %521 = vst.msk [vmem:[%s854_s13 + $0x8] sm:$0xf] %vm518_vm11, %v512_v13 }
 0x1bb   : > { %v497_v14 = vpop.f32.mrf.mxu1 }
 0x1bc   : > { %v498_v16 = vadd.f32 %v625_v56, %v497_v14 }
 0x1be   : > { %v513_v17 = vpack.c.bf16 %v498_v16, %v498_v16 }
 0x1c0   : > { %522 = vst.msk [vmem:[%s854_s13 + $0xc] sm:$0xf] %vm518_vm11, %v513_v17 }
 0x1c1 PF: > { %s15_s18 = sadd.s32 1, %s650_s18  }
 0x1c2   : > { %p12_p4 = scmp.ge.s32.totalorder %s15_s18, 4  }
 0x1c4   :  { %14 = sbr.rel (!%p12_p4) target bundleno = 1 (0x1), region = 70 }

// kernel: swin_block_pallas.5
= control target key start
LH: loop header
LB: loop body
LE: loop exit
PB: predicated region body
PF: predicated region fallthrough
CT: control target
= control target key end

     0   :  { %s1506_s13 = smov 0   ;;  %s1943_s0 = inlined_call_operand.vmem [shape: bf16[128,32], index: 0, kind: input, shape index: {}]   ;;  %s1944_s1 = inlined_call_operand.vmem [shape: f32[128,32], index: 1, kind: input, shape index: {}]   ;;  %s1945_s2 = inlined_call_operand.vmem [shape: bf16[32,32], index: 2, kind: input, shape index: {}]   ;;  %s1946_s3 = inlined_call_operand.vmem [shape: f32[1,32], index: 3, kind: input, shape index: {}]   ;;  %s1947_s4 = inlined_call_operand.vmem [shape: f32[1,32], index: 4, kind: input, shape index: {}]   ;;  %s1948_s5 = inlined_call_operand.vmem [shape: f32[1,32], index: 5, kind: input, shape index: {}]   ;;  %s1949_s6 = inlined_call_operand.vmem [shape: bf16[32,128], index: 6, kind: input, shape index: {}]   ;;  %s1950_s7 = inlined_call_operand.vmem [shape: f32[1,128], index: 7, kind: input, shape index: {}]   ;;  %s1951_s8 = inlined_call_operand.vmem [shape: bf16[128,32], index: 8, kind: input, shape index: {}]   ;;  %s1952_s9 = inlined_call_operand.vmem [shape: f32[1,32], index: 9, kind: input, shape index: {}]   ;;  %s1953_s10 = inlined_call_operand.vmem [shape: f32[128,32], index: 10, kind: output, shape index: {}]  }
   0x1 LB: > { %s1269_s14 = sadd.s32 4294967295, %s1448_s13   ;;  %p1273_p0 = scmp.ge.s32.totalorder %s1448_s13, 1  ;;  %s1448_s13 = sphi %s1506_s13, %s20_s13  }
   0x2   : > { %p324_p1 = scmp.lt.s32.totalorder %s1448_s13, 3 }
   0x4   : > { %p325_p2 = pnand %p1273_p0, %p324_p1 }
   0x5   : > { %s1274_s17 = sshll.u32 (!%p325_p2), %s1269_s14, 3 }
   0x6   : > { %328 = sbr.rel (%p325_p2) target bundleno = 887 (0x377), region = 60  ;;  %p368_p3 = scmp.lt.s32.totalorder (!%p325_p2), %s1274_s17, 15 }
   0xb   : > { %v1359_v0 = vld [vmem:[%s1945_s2 + $0x8] sm:$0xff]  ;;  %v1358_v1 = vld [vmem:[%s1945_s2] sm:$0xff]  ;;  %s1963_s17 = smov (!%p368_p3, %s1274_s17), 15  ;;  %vm434_vm0 = vcmask 261120   ;;  %v1450_v42 = vmov 32.0  }
   0xc   : > { %453 = vmatpush.bf16.msra.mxu0 %v1359_v0  ;;  %s1275_s20 = sshll.u32 %s1963_s17, 2  ;;  %s1277_s24 = sshll.u32 %s1963_s17, 3  ;;  %v1387_v6 = vld [vmem:[%s1946_s3] ss:$0 sm:$0xff]  ;;  %1392 = vrcp.f32 %v1450_v42 }
   0xd   : > { %s371_s23 = scalar_lea.vmem %s1943_s0, %s1275_s20  ;;  %s1536_s27 = scalar_lea.vmem %s1944_s1, %s1277_s24 }
   0xe   : > { %v1354_v2 = vld [vmem:[%s371_s23] sm:$0xff]  ;;  %v1355_v3 = vld [vmem:[%s371_s23 + $0x8] sm:$0xff]  ;;  %v1356_v4 = vld [vmem:[%s371_s23 + $0x10] sm:$0xff]  ;;  %s383_s26 = scalar_lea.vmem %s1953_s10, %s1277_s24 }
   0xf   : > { %v1357_v5 = vld [vmem:[%s371_s23 + $0x18] sm:$0xff]  ;;  %v476_v8 = vld [vmem:[%s1536_s27] sm:$0xff]  ;;  %v477_v13 = vld [vmem:[%s1536_s27 + $0x8] sm:$0xff] }
  0x10   : > { %454 = vmatpush.bf16.msra.mxu0 %v1358_v1  ;;  %v478_v18 = vld [vmem:[%s1536_s27 + $0x10] sm:$0xff]  ;;  %v479_v23 = vld [vmem:[%s1536_s27 + $0x18] sm:$0xff]  ;;  %v480_v28 = vld [vmem:[%s1536_s27 + $0x20] sm:$0xff] }
  0x11   : > { %v481_v33 = vld [vmem:[%s1536_s27 + $0x28] sm:$0xff]  ;;  %v482_v38 = vld [vmem:[%s1536_s27 + $0x30] sm:$0xff]  ;;  %v483_v56 = vld [vmem:[%s1536_s27 + $0x38] sm:$0xff] }
  0x12   : > { %v1393_v43 = vpop.eup %1392 }
  0x13   : > { %1304 = vmatmul.msk.bf16.vlgmr.msra.gmra.mxu0 %vm434_vm0, %v1354_v2  ;;  %v517_v44 = vmul.f32 32.0, %v1393_v43  ;;  %vm521_vm1 = vweird.f32 %v1393_v43 }
  0x15   : > { %v518_v45 = vsub.f32 1.0, %v517_v44 }
  0x17   : > { %v519_v46 = vmul.f32 %v1393_v43, %v518_v45 }
  0x19   : > { %v520_v47 = vadd.f32 %v1393_v43, %v519_v46 }
  0x1b   : > { %v1576_v48 = vsel %vm521_vm1, %v1393_v43, %v520_v47 }
  0x23   : > { %1305 = vmatmul.msk.bf16.gmra.mxu0 %vm434_vm0, %v1355_v3 }
  0x33   : > { %1306 = vmatmul.msk.bf16.gmra.mxu0 %vm434_vm0, %v1356_v4 }
  0x43   : > { %1307 = vmatmul.msk.bf16.gmra.mxu0 %vm434_vm0, %v1357_v5 }
  0x90   : > { %v456_v7 = vpop.f32.mrf.mxu0 }
  0x91   : > { %v457_v9 = vadd.f32 %v1387_v6, %v456_v7 }
  0x93   : > { %v1542_v10 = vadd.f32 %v476_v8, %v457_v9 }
  0x95   : > { %v492_v11 = vsel %vm434_vm0, %v1542_v10, 0.0 }
  0x96   : > { %493 = vadd.xlane.f32.xlu0 %v492_v11 }
  0x98   : > { %v458_v12 = vpop.f32.mrf.mxu0 }
  0x99   : > { %v459_v14 = vadd.f32 %v1387_v6, %v458_v12 }
  0x9b   : > { %v1547_v15 = vadd.f32 %v477_v13, %v459_v14 }
  0x9d   : > { %v495_v16 = vsel %vm434_vm0, %v1547_v15, 0.0 }
  0x9e   : > { %496 = vadd.xlane.f32.xlu0 %v495_v16 }
  0xa0   : > { %v461_v17 = vpop.f32.mrf.mxu0 }
  0xa1   : > { %v462_v19 = vadd.f32 %v1387_v6, %v461_v17 }
  0xa3   : > { %v1552_v20 = vadd.f32 %v478_v18, %v462_v19 }
  0xa5   : > { %v498_v21 = vsel %vm434_vm0, %v1552_v20, 0.0 }
  0xa6   : > { %499 = vadd.xlane.f32.xlu1 %v498_v21 }
  0xa8   : > { %v463_v22 = vpop.f32.mrf.mxu0 }
  0xa9   : > { %v464_v24 = vadd.f32 %v1387_v6, %v463_v22 }
  0xab   : > { %v1557_v25 = vadd.f32 %v479_v23, %v464_v24 }
  0xad   : > { %v501_v26 = vsel %vm434_vm0, %v1557_v25, 0.0 }
  0xae   : > { %502 = vadd.xlane.f32.xlu1 %v501_v26 }
  0xb0   : > { %v466_v27 = vpop.f32.mrf.mxu0 }
  0xb1   : > { %v467_v29 = vadd.f32 %v1387_v6, %v466_v27 }
  0xb3   : > { %v1562_v30 = vadd.f32 %v480_v28, %v467_v29  ;;  %v1361_v29 = vld [vmem:[%s1949_s6 + $0x8] sm:$0xff] }
  0xb4   : > { %741 = vmatpush.bf16.msra.mxu1 %v1361_v29 }
  0xb5   : > { %v504_v31 = vsel %vm434_vm0, %v1562_v30, 0.0 }
  0xb6   : > { %505 = vadd.xlane.f32.xlu2 %v504_v31 }
  0xb8   : > { %v468_v32 = vpop.f32.mrf.mxu0 }
  0xb9   : > { %v469_v34 = vadd.f32 %v1387_v6, %v468_v32 }
  0xbb   : > { %v1567_v35 = vadd.f32 %v481_v33, %v469_v34  ;;  %v1360_v33 = vld [vmem:[%s1949_s6] sm:$0xff] }
  0xbc   : > { %742 = vmatpush.bf16.msra.mxu1 %v1360_v33 }
  0xbd   : > { %v507_v36 = vsel %vm434_vm0, %v1567_v35, 0.0 }
  0xbe   : > { %508 = vadd.xlane.f32.xlu2 %v507_v36 }
  0xc0   : > { %v471_v37 = vpop.f32.mrf.mxu0 }
  0xc1   : > { %v472_v39 = vadd.f32 %v1387_v6, %v471_v37 }
  0xc3   : > { %v1572_v40 = vadd.f32 %v482_v38, %v472_v39 }
  0xc5   : > { %v510_v41 = vsel %vm434_vm0, %v1572_v40, 0.0 }
  0xc6   : > { %511 = vadd.xlane.f32.xlu2 %v510_v41 }
  0xc8   : > { %v473_v52 = vpop.f32.mrf.mxu0 }
  0xc9   : > { %v474_v54 = vadd.f32 %v1387_v6, %v473_v52 }
  0xcb   : > { %v1587_v59 = vadd.f32 %v483_v56, %v474_v54 }
  0xcd   : > { %v513_v62 = vsel %vm434_vm0, %v1587_v59, 0.0 }
 0x109   : > { %v494_v49 = vpop.xlane.xlu0 %493 }
 0x10a   : > { %v523_v50 = vmul.f32 %v1576_v48, %v494_v49 }
 0x10c   : > { %v1580_v51 = vsub.f32 %v1542_v10, %v523_v50 }
 0x10e   : > { %v539_v53 = vmul.f32 %v1580_v51, %v1580_v51 }
 0x110   : > { %v547_v55 = vsel %vm434_vm0, %v539_v53, 0.0 }
 0x111   : > { %548 = vadd.xlane.f32.xlu0 %v547_v55  ;;  %v497_v57 = vpop.xlane.xlu0 %496 }
 0x112   : > { %v524_v58 = vmul.f32 %v1576_v48, %v497_v57 }
 0x114   : > { %v1590_v60 = vsub.f32 %v1547_v15, %v524_v58 }
 0x116   : > { %v540_v61 = vmul.f32 %v1590_v60, %v1590_v60 }
 0x118   : > { %v550_v63 = vsel %vm434_vm0, %v540_v61, 0.0 }
 0x119   : > { %v500_v0 = vpop.xlane.xlu1 %499  ;;  %514 = vadd.xlane.f32.xlu0 %v513_v62  ;;  %551 = vadd.xlane.f32.xlu1 %v550_v63 }
 0x11a   : > { %v525_v1 = vmul.f32 %v1576_v48, %v500_v0 }
 0x11c   : > { %v1599_v2 = vsub.f32 %v1552_v20, %v525_v1 }
 0x11e   : > { %v541_v3 = vmul.f32 %v1599_v2, %v1599_v2 }
 0x120   : > { %v553_v4 = vsel %vm434_vm0, %v541_v3, 0.0 }
 0x121   : > { %v503_v5 = vpop.xlane.xlu1 %502  ;;  %554 = vadd.xlane.f32.xlu1 %v553_v4 }
 0x122   : > { %v526_v6 = vmul.f32 %v1576_v48, %v503_v5 }
 0x124   : > { %v1606_v7 = vsub.f32 %v1557_v25, %v526_v6  ;;  %v1653_v6 = vld [vmem:[%s1947_s4] ss:$0 sm:$0xff] }
 0x126   : > { %v542_v8 = vmul.f32 %v1606_v7, %v1606_v7 }
 0x128   : > { %v556_v9 = vsel %vm434_vm0, %v542_v8, 0.0 }
 0x129   : > { %v506_v11 = vpop.xlane.xlu2 %505  ;;  %557 = vadd.xlane.f32.xlu2 %v556_v9 }
 0x12a   : > { %v527_v12 = vmul.f32 %v1576_v48, %v506_v11 }
 0x12c   : > { %v1613_v13 = vsub.f32 %v1562_v30, %v527_v12 }
 0x12e   : > { %v543_v14 = vmul.f32 %v1613_v13, %v1613_v13 }
 0x130   : > { %v559_v16 = vsel %vm434_vm0, %v543_v14, 0.0 }
 0x131   : > { %v509_v17 = vpop.xlane.xlu2 %508  ;;  %560 = vadd.xlane.f32.xlu0 %v559_v16 }
 0x132   : > { %v528_v18 = vmul.f32 %v1576_v48, %v509_v17 }
 0x134   : > { %v1620_v19 = vsub.f32 %v1567_v35, %v528_v18 }
 0x136   : > { %v544_v21 = vmul.f32 %v1620_v19, %v1620_v19 }
 0x138   : > { %v562_v22 = vsel %vm434_vm0, %v544_v21, 0.0 }
 0x139   : > { %v512_v23 = vpop.xlane.xlu2 %511  ;;  %563 = vadd.xlane.f32.xlu1 %v562_v22 }
 0x13a   : > { %v529_v24 = vmul.f32 %v1576_v48, %v512_v23 }
 0x13c   : > { %v1627_v26 = vsub.f32 %v1572_v40, %v529_v24 }
 0x13e   : > { %v545_v27 = vmul.f32 %v1627_v26, %v1627_v26 }
 0x140   : > { %v565_v28 = vsel %vm434_vm0, %v545_v27, 0.0 }
 0x141   : > { %566 = vadd.xlane.f32.xlu2 %v565_v28 }
 0x184   : > { %v549_v31 = vpop.xlane.xlu0 %548 }
 0x185   : > { %v571_v32 = vmul.f32 %v549_v31, %v1576_v48 }
 0x187   : > { %v579_v34 = vadd.f32 1e-05, %v571_v32 }
 0x189   : > { %1394 = vrsqrt.f32 %v579_v34  ;;  %vm593_vm3 = vweird.f32 %v579_v34 }
 0x18c   : > { %v552_v36 = vpop.xlane.xlu1 %551  ;;  %v515_v37 = vpop.xlane.xlu0 %514 }
 0x18d   : > { %v572_v38 = vmul.f32 %v552_v36, %v1576_v48  ;;  %v530_v39 = vmul.f32 %v1576_v48, %v515_v37 }
 0x18f   : > { %v1395_v41 = vpop.eup %1394  ;;  %v580_v42 = vadd.f32 1e-05, %v572_v38  ;;  %v1642_v43 = vsub.f32 %v1587_v59, %v530_v39 }
 0x190   : > { %v588_v44 = vmul.f32 %v1395_v41, %v579_v34  ;;  %vm594_vm2 = vweird.f32 %v1395_v41 }
 0x191   : > { %1396 = vrsqrt.f32 %v580_v42  ;;  %v546_v45 = vmul.f32 %v1642_v43, %v1642_v43  ;;  %vm595_vm4 = vmor %vm593_vm3, %vm594_vm2  ;;  %vm603_vm6 = vweird.f32 %v580_v42 }
 0x192   : > { %v589_v46 = vmul.f32 %v1395_v41, %v588_v44 }
 0x193   : > { %v568_v47 = vsel %vm434_vm0, %v546_v45, 0.0 }
 0x194   : > { %v590_v49 = vmul.f32 0.5, %v589_v46  ;;  %v555_v50 = vpop.xlane.xlu1 %554  ;;  %569 = vadd.xlane.f32.xlu0 %v568_v47 }
 0x195   : > { %v573_v52 = vmul.f32 %v555_v50, %v1576_v48 }
 0x196   : > { %v591_v53 = vsub.f32 1.5, %v590_v49 }
 0x197   : > { %v1397_v54 = vpop.eup %1396  ;;  %v581_v55 = vadd.f32 1e-05, %v573_v52 }
 0x198   : > { %v592_v56 = vmul.f32 %v1395_v41, %v591_v53  ;;  %v598_v57 = vmul.f32 %v1397_v54, %v580_v42  ;;  %vm604_vm5 = vweird.f32 %v1397_v54 }
 0x199   : > { %1398 = vrsqrt.f32 %v581_v55  ;;  %vm605_vm7 = vmor %vm603_vm6, %vm604_vm5  ;;  %vm613_vm9 = vweird.f32 %v581_v55 }
 0x19a   : > { %v599_v58 = vmul.f32 %v1397_v54, %v598_v57  ;;  %v596_v61 = vsel %vm595_vm4, %v1395_v41, %v592_v56 }
 0x19b   : > { %v667_v4 = vmul.f32 %v596_v61, %v1580_v51  ;;  %v1660_v51 = vld [vmem:[%s1948_s5] ss:$0 sm:$0xff] }
 0x19c   : > { %v600_v62 = vmul.f32 0.5, %v599_v58  ;;  %v558_v63 = vpop.xlane.xlu2 %557 }
 0x19d   : > { %v574_v0 = vmul.f32 %v558_v63, %v1576_v48  ;;  %v679_v16 = vmul.f32 %v1653_v6, %v667_v4 }
 0x19e   : > { %v601_v1 = vsub.f32 1.5, %v600_v62 }
 0x19f   : > { %v1399_v3 = vpop.eup %1398  ;;  %v582_v5 = vadd.f32 1e-05, %v574_v0  ;;  %v691_v28 = vadd.f32 %v1660_v51, %v679_v16 }
 0x1a0   : > { %v602_v8 = vmul.f32 %v1397_v54, %v601_v1  ;;  %v608_v9 = vmul.f32 %v1399_v3, %v581_v55  ;;  %vm614_vm8 = vweird.f32 %v1399_v3 }
 0x1a1   : > { %1400 = vrsqrt.f32 %v582_v5  ;;  %vm615_vm10 = vmor %vm613_vm9, %vm614_vm8  ;;  %vm623_vm12 = vweird.f32 %v582_v5 }
 0x1a2   : > { %v606_v11 = vsel %vm605_vm7, %v1397_v54, %v602_v8  ;;  %v609_v12 = vmul.f32 %v1399_v3, %v608_v9 }
 0x1a3   : > { %v668_v14 = vmul.f32 %v606_v11, %v1590_v60 }
 0x1a4   : > { %v610_v17 = vmul.f32 0.5, %v609_v12  ;;  %v561_v18 = vpop.xlane.xlu0 %560 }
 0x1a5   : > { %v575_v21 = vmul.f32 %v561_v18, %v1576_v48  ;;  %v680_v22 = vmul.f32 %v1653_v6, %v668_v14 }
 0x1a6   : > { %v611_v23 = vsub.f32 1.5, %v610_v17 }
 0x1a7   : > { %v1401_v24 = vpop.eup %1400  ;;  %v583_v27 = vadd.f32 1e-05, %v575_v21  ;;  %v692_v60 = vadd.f32 %v1660_v51, %v680_v22 }
 0x1a8   : > { %v612_v29 = vmul.f32 %v1399_v3, %v611_v23  ;;  %v618_v31 = vmul.f32 %v1401_v24, %v582_v5  ;;  %vm624_vm11 = vweird.f32 %v1401_v24 }
 0x1a9   : > { %1402 = vrsqrt.f32 %v583_v27  ;;  %v699_v32 = vpack.c.bf16 %v692_v60, %v691_v28  ;;  %vm625_vm13 = vmor %vm623_vm12, %vm624_vm11  ;;  %vm633_vm15 = vweird.f32 %v583_v27 }
 0x1aa   : > { %v619_v33 = vmul.f32 %v1401_v24, %v618_v31  ;;  %v616_v34 = vsel %vm615_vm10, %v1399_v3, %v612_v29 }
 0x1ab   : > { %1316 = vmatmul.msk.bf16.vlgmr.msra.gmra.mxu1 %vm434_vm0, %v699_v32  ;;  %v669_v42 = vmul.f32 %v616_v34, %v1599_v2 }
 0x1ac   : > { %v620_v36 = vmul.f32 0.5, %v619_v33  ;;  %v564_v37 = vpop.xlane.xlu1 %563 }
 0x1ad   : > { %v576_v38 = vmul.f32 %v564_v37, %v1576_v48  ;;  %v681_v52 = vmul.f32 %v1653_v6, %v669_v42 }
 0x1ae   : > { %v621_v39 = vsub.f32 1.5, %v620_v36 }
 0x1af   : > { %v1403_v41 = vpop.eup %1402  ;;  %v584_v44 = vadd.f32 1e-05, %v576_v38  ;;  %v693_v57 = vadd.f32 %v1660_v51, %v681_v52 }
 0x1b0   : > { %v622_v45 = vmul.f32 %v1401_v24, %v621_v39  ;;  %v628_v46 = vmul.f32 %v1403_v41, %v583_v27  ;;  %vm634_vm14 = vweird.f32 %v1403_v41 }
 0x1b1   : > { %1404 = vrsqrt.f32 %v584_v44  ;;  %vm635_vm1 = vmor %vm633_vm15, %vm634_vm14  ;;  %vm643_vm3 = vweird.f32 %v584_v44 }
 0x1b2   : > { %v626_v47 = vsel %vm625_vm13, %v1401_v24, %v622_v45  ;;  %v629_v49 = vmul.f32 %v1403_v41, %v628_v46 }
 0x1b3   : > { %v670_v50 = vmul.f32 %v626_v47, %v1606_v7 }
 0x1b4   : > { %v630_v53 = vmul.f32 0.5, %v629_v49  ;;  %v567_v17 = vpop.xlane.xlu2 %566  ;;  %v1693_v49 = vld [vmem:[%s1950_s7] ss:$0 sm:$0xff] }
 0x1b5   : > { %v682_v54 = vmul.f32 %v1653_v6, %v670_v50 }
 0x1b6   : > { %v631_v55 = vsub.f32 1.5, %v630_v53 }
 0x1b7   : > { %v1405_v56 = vpop.eup %1404  ;;  %v694_v2 = vadd.f32 %v1660_v51, %v682_v54  ;;  %v1368_v54 = vld [vmem:[%s1951_s8 + $0x30] sm:$0xff] }
 0x1b8   : > { %v632_v58 = vmul.f32 %v1403_v41, %v631_v55  ;;  %v638_v61 = vmul.f32 %v1405_v56, %v584_v44  ;;  %vm644_vm2 = vweird.f32 %v1405_v56 }
 0x1b9   : > { %v700_v62 = vpack.c.bf16 %v694_v2, %v693_v57  ;;  %vm645_vm4 = vmor %vm643_vm3, %vm644_vm2  ;;  %v1367_v2 = vld [vmem:[%s1951_s8 + $0x28] sm:$0xff] }
 0x1ba   : > { %v639_v63 = vmul.f32 %v1405_v56, %v638_v61  ;;  %v636_v7 = vsel %vm635_vm1, %v1403_v41, %v632_v58 }
 0x1bb   : > { %1317 = vmatmul.msk.bf16.gmra.mxu1 %vm434_vm0, %v700_v62  ;;  %v671_v3 = vmul.f32 %v636_v7, %v1613_v13  ;;  %v577_v13 = vmul.f32 %v567_v17, %v1576_v48  ;;  %v1364_v17 = vld [vmem:[%s1951_s8 + $0x10] sm:$0xff] }
 0x1bc   : > { %v640_v0 = vmul.f32 0.5, %v639_v63  ;;  %v1366_v63 = vld [vmem:[%s1951_s8 + $0x20] sm:$0xff] }
 0x1bd   : > { %v683_v9 = vmul.f32 %v1653_v6, %v671_v3  ;;  %v585_v18 = vadd.f32 1e-05, %v577_v13 }
 0x1be   : > { %v641_v1 = vsub.f32 1.5, %v640_v0 }
 0x1bf   : > { %v695_v12 = vadd.f32 %v1660_v51, %v683_v9  ;;  %1406 = vrsqrt.f32 %v585_v18  ;;  %vm653_vm6 = vweird.f32 %v585_v18 }
 0x1c0   : > { %v642_v4 = vmul.f32 %v1405_v56, %v641_v1 }
 0x1c2   : > { %v646_v5 = vsel %vm645_vm4, %v1405_v56, %v642_v4 }
 0x1c3   : > { %v672_v8 = vmul.f32 %v646_v5, %v1620_v19 }
 0x1c5   : > { %v684_v11 = vmul.f32 %v1653_v6, %v672_v8  ;;  %v1407_v21 = vpop.eup %1406  ;;  %v1365_v8 = vld [vmem:[%s1951_s8 + $0x18] sm:$0xff] }
 0x1c6   : > { %v648_v22 = vmul.f32 %v1407_v21, %v585_v18  ;;  %vm654_vm5 = vweird.f32 %v1407_v21 }
 0x1c7   : > { %v696_v14 = vadd.f32 %v1660_v51, %v684_v11  ;;  %vm655_vm7 = vmor %vm653_vm6, %vm654_vm5 }
 0x1c8   : > { %v649_v23 = vmul.f32 %v1407_v21, %v648_v22 }
 0x1c9   : > { %v701_v16 = vpack.c.bf16 %v696_v14, %v695_v12 }
 0x1ca   : > { %v650_v28 = vmul.f32 0.5, %v649_v23 }
 0x1cb   : > { %1318 = vmatmul.msk.bf16.gmra.mxu1 %vm434_vm0, %v701_v16 }
 0x1cc   : > { %v651_v60 = vsub.f32 1.5, %v650_v28 }
 0x1ce   : > { %v652_v31 = vmul.f32 %v1407_v21, %v651_v60 }
 0x1d0   : > { %v656_v34 = vsel %vm655_vm7, %v1407_v21, %v652_v31 }
 0x1d1   : > { %v673_v38 = vmul.f32 %v656_v34, %v1627_v26 }
 0x1d3   : > { %v685_v42 = vmul.f32 %v1653_v6, %v673_v38 }
 0x1d5   : > { %v697_v45 = vadd.f32 %v1660_v51, %v685_v42 }
 0x207   : > { %v570_v19 = vpop.xlane.xlu0 %569 }
 0x208   : > { %v578_v24 = vmul.f32 %v570_v19, %v1576_v48 }
 0x20a   : > { %v586_v27 = vadd.f32 1e-05, %v578_v24 }
 0x20c   : > { %1408 = vrsqrt.f32 %v586_v27  ;;  %vm663_vm9 = vweird.f32 %v586_v27 }
 0x212   : > { %v1409_v29 = vpop.eup %1408 }
 0x213   : > { %v658_v32 = vmul.f32 %v1409_v29, %v586_v27  ;;  %vm664_vm8 = vweird.f32 %v1409_v29 }
 0x214   : > { %vm665_vm10 = vmor %vm663_vm9, %vm664_vm8 }
 0x215   : > { %v659_v33 = vmul.f32 %v1409_v29, %v658_v32 }
 0x217   : > { %v660_v36 = vmul.f32 0.5, %v659_v33  ;;  %v1363_v33 = vld [vmem:[%s1951_s8 + $0x8] sm:$0xff] }
 0x219   : > { %v661_v37 = vsub.f32 1.5, %v660_v36 }
 0x21b   : > { %v662_v39 = vmul.f32 %v1409_v29, %v661_v37 }
 0x21d   : > { %v666_v48 = vsel %vm665_vm10, %v1409_v29, %v662_v39  ;;  %v1362_v39 = vld [vmem:[%s1951_s8] sm:$0xff] }
 0x21e   : > { %v674_v41 = vmul.f32 %v666_v48, %v1642_v43 }
 0x220   : > { %v686_v44 = vmul.f32 %v1653_v6, %v674_v41  ;;  %v1369_v6 = vld [vmem:[%s1951_s8 + $0x38] sm:$0xff] }
 0x221   : > { %1156 = vmatpush.bf16.msra.mxu2 %v1369_v6  ;;  %1370 = vmatpush.bf16.msra.mxu3 %v1369_v6 }
 0x222   : > { %v698_v46 = vadd.f32 %v1660_v51, %v686_v44 }
 0x224   : > { %v702_v47 = vpack.c.bf16 %v698_v46, %v697_v45 }
 0x225   : > { %1157 = vmatpush.bf16.msra.mxu2 %v1368_v54  ;;  %1371 = vmatpush.bf16.msra.mxu3 %v1368_v54 }
 0x226   : > { %1319 = vmatmul.msk.bf16.gmra.mxu1 %vm434_vm0, %v702_v47 }
 0x228   : > { %v744_v26 = vpop.f32.mrf.mxu1 }
 0x229   : > { %v1697_v50 = vadd.f32 %v1693_v49, %v744_v26  ;;  %1158 = vmatpush.bf16.msra.mxu2 %v1367_v2  ;;  %1372 = vmatpush.bf16.msra.mxu3 %v1367_v2 }
 0x22b   : > { %v1700_v43 = vmul.f32 0.70710677, %v1697_v50 }
 0x22d   : > { %v1706_v51 = vand.u32 2147483647, %v1700_v43  ;;  %1159 = vmatpush.bf16.msra.mxu2 %v1366_v63  ;;  %1373 = vmatpush.bf16.msra.mxu3 %v1366_v63  ;;  %vm1044_vm10 = vcmp.ge.f32.partialorder %v1700_v43, 0.0 }
 0x22f   : > { %v788_v52 = vmul.f32 0.3275911, %v1706_v51  ;;  %v996_v60 = vsub.f32 0.0, %v1706_v51 }
 0x230   : > { %v746_v53 = vpop.f32.mrf.mxu1 }
 0x231   : > { %v796_v55 = vadd.f32 1.0, %v788_v52  ;;  %v1713_v56 = vadd.f32 %v1693_v49, %v746_v53  ;;  %1160 = vmatpush.bf16.msra.mxu2 %v1365_v8  ;;  %1374 = vmatpush.bf16.msra.mxu3 %v1365_v8  ;;  %v1004_v41 = vmul.f32 %v996_v60, %v1706_v51 }
 0x233   : > { %1410 = vrcp.f32 %v796_v55  ;;  %v1716_v57 = vmul.f32 0.70710677, %v1713_v56  ;;  %v815_v12 = vand.u32 2147483648, %v796_v55  ;;  %vm809_vm12 = vweird.f32 %v796_v55 }
 0x234   : > { %v813_v18 = vand.u32 2147483647, %v796_v55  ;;  %v1012_v63 = vmul.f32 1.442695, %v1004_v41 }
 0x235   : > { %v781_v58 = vand.u32 2147483647, %v1716_v57  ;;  %1161 = vmatpush.bf16.msra.mxu2 %v1364_v17  ;;  %1375 = vmatpush.bf16.msra.mxu3 %v1364_v17  ;;  %v816_v27 = vor.u32 1.1754944e-38, %v815_v12 }
 0x236   : > { %vm814_vm14 = vcmp.eq.f32.partialorder %v813_v18, 8.507059e+37 }
 0x237   : > { %v789_v61 = vmul.f32 0.3275911, %v781_v58  ;;  %v997_v29 = vsub.f32 0.0, %v781_v58 }
 0x238   : > { %v749_v62 = vpop.f32.mrf.mxu1 }
 0x239   : > { %v1411_v7 = vpop.eup %1410  ;;  %v1726_v0 = vadd.f32 %v1693_v49, %v749_v62  ;;  %v1728_v3 = vadd.f32 1.0, %v789_v61  ;;  %1162 = vmatpush.bf16.msra.mxu2 %v1363_v33  ;;  %1376 = vmatpush.bf16.msra.mxu3 %v1363_v33  ;;  %v1005_v42 = vmul.f32 %v997_v29, %v781_v58 }
 0x23a   : > { %v805_v1 = vmul.f32 %v1411_v7, %v796_v55  ;;  %vm810_vm11 = vweird.f32 %v1411_v7 }
 0x23b   : > { %v1731_v4 = vmul.f32 0.70710677, %v1726_v0  ;;  %1412 = vrcp.f32 %v1728_v3  ;;  %vm1744_vm13 = vmor %vm809_vm12, %vm810_vm11  ;;  %v830_v38 = vand.u32 2147483648, %v1728_v3  ;;  %v828_v46 = vand.u32 2147483647, %v1728_v3 }
 0x23c   : > { %v806_v5 = vsub.f32 1.0, %v805_v1  ;;  %vm824_vm1 = vweird.f32 %v1728_v3 }
 0x23d   : > { %v1738_v9 = vand.u32 2147483647, %v1731_v4  ;;  %v831_v55 = vor.u32 1.1754944e-38, %v830_v38  ;;  %1163 = vmatpush.bf16.msra.mxu2 %v1362_v39  ;;  %1377 = vmatpush.bf16.msra.mxu3 %v1362_v39  ;;  %vm829_vm3 = vcmp.eq.f32.partialorder %v828_v46, 8.507059e+37 }
 0x23e   : > { %v807_v11 = vmul.f32 %v1411_v7, %v806_v5 }
 0x23f   : > { %v790_v14 = vmul.f32 0.3275911, %v1738_v9 }
 0x240   : > { %v751_v16 = vpop.f32.mrf.mxu1  ;;  %v808_v13 = vadd.f32 %v1411_v7, %v807_v11 }
 0x241   : > { %v1748_v22 = vadd.f32 1.0, %v790_v14  ;;  %v1751_v23 = vadd.f32 %v1693_v49, %v751_v16  ;;  %v1413_v19 = vpop.eup %1412  ;;  %v998_v14 = vsub.f32 0.0, %v1738_v9 }
 0x242   : > { %v812_v24 = vsel %vm1744_vm13, %v1411_v7, %v808_v13  ;;  %v820_v28 = vmul.f32 %v1413_v19, %v1728_v3  ;;  %vm825_vm15 = vweird.f32 %v1413_v19  ;;  %v1014_v7 = vmul.f32 1.442695, %v1005_v42 }
 0x243   : > { %1414 = vrcp.f32 %v1748_v22  ;;  %v1759_v31 = vmul.f32 0.70710677, %v1751_v23  ;;  %v1764_v34 = vsel %vm814_vm14, %v816_v27, %v812_v24  ;;  %vm1782_vm2 = vmor %vm824_vm1, %vm825_vm15  ;;  %vm839_vm5 = vweird.f32 %v1748_v22 }
 0x244   : > { %v821_v32 = vsub.f32 1.0, %v820_v28  ;;  %v924_v48 = vmul.f32 1.0614054, %v1764_v34  ;;  %v845_v12 = vand.u32 2147483648, %v1748_v22  ;;  %v1809_v24 = vmul.f32 0.5, %v1697_v50 }
 0x245   : > { %v1767_v36 = vand.u32 2147483647, %v1759_v31  ;;  %v1824_v50 = vmul.f32 0.5, %v1713_v56  ;;  %v1006_v39 = vmul.f32 %v998_v14, %v1738_v9  ;;  %vm1045_vm15 = vcmp.ge.f32.partialorder %v1716_v57, 0.0 }
 0x246   : > { %v822_v37 = vmul.f32 %v1413_v19, %v821_v32  ;;  %v932_v52 = vadd.f32 -1.4531521, %v924_v48 }
 0x247   : > { %v791_v44 = vmul.f32 0.3275911, %v1767_v36  ;;  %v999_v46 = vsub.f32 0.0, %v1767_v36 }
 0x248   : > { %v754_v45 = vpop.f32.mrf.mxu1  ;;  %v823_v6 = vadd.f32 %v1413_v19, %v822_v37  ;;  %v940_v61 = vmul.f32 %v932_v52, %v1764_v34  ;;  %v846_v37 = vor.u32 1.1754944e-38, %v845_v12 }
 0x249   : > { %v1415_v47 = vpop.eup %1414  ;;  %v1779_v26 = vadd.f32 %v1693_v49, %v754_v45  ;;  %v1787_v54 = vadd.f32 1.0, %v791_v44 }
 0x24a   : > { %v835_v51 = vmul.f32 %v1415_v47, %v1748_v22  ;;  %v827_v58 = vsel %vm1782_vm2, %v1413_v19, %v823_v6  ;;  %vm840_vm4 = vweird.f32 %v1415_v47  ;;  %v948_v11 = vadd.f32 1.4214138, %v940_v61 }
 0x24b   : > { %v1790_v2 = vmul.f32 0.70710677, %v1779_v26  ;;  %1416 = vrcp.f32 %v1787_v54  ;;  %v1799_v3 = vsel %vm829_vm3, %v831_v55, %v827_v58  ;;  %v843_v19 = vand.u32 2147483647, %v1748_v22  ;;  %vm1811_vm6 = vmor %vm839_vm5, %vm840_vm4 }
 0x24c   : > { %v836_v62 = vsub.f32 1.0, %v835_v51  ;;  %v925_v8 = vmul.f32 1.0614054, %v1799_v3  ;;  %v956_v18 = vmul.f32 %v948_v11, %v1764_v34  ;;  %1418 = vpow2.f32 %v1012_v63 }
 0x24d   : > { %v1797_v1 = vand.u32 2147483647, %v1790_v2  ;;  %vm844_vm7 = vcmp.eq.f32.partialorder %v843_v19, 8.507059e+37  ;;  %v860_v56 = vand.u32 2147483648, %v1787_v54  ;;  %v1016_v55 = vmul.f32 1.442695, %v1006_v39 }
 0x24e   : > { %v837_v5 = vmul.f32 %v1415_v47, %v836_v62  ;;  %v933_v13 = vadd.f32 -1.4531521, %v925_v8  ;;  %v964_v33 = vadd.f32 -0.28449672, %v956_v18  ;;  %vm854_vm9 = vweird.f32 %v1787_v54 }
 0x24f   : > { %v792_v16 = vmul.f32 0.3275911, %v1797_v1  ;;  %v858_v61 = vand.u32 2147483647, %v1787_v54  ;;  %v861_v14 = vor.u32 1.1754944e-38, %v860_v56 }
 0x250   : > { %v756_v17 = vpop.f32.mrf.mxu1  ;;  %v838_v21 = vadd.f32 %v1415_v47, %v837_v5  ;;  %v941_v32 = vmul.f32 %v933_v13, %v1799_v3  ;;  %v972_v44 = vmul.f32 %v964_v33, %v1764_v34 }
 0x251   : > { %v1815_v28 = vadd.f32 1.0, %v792_v16  ;;  %v1818_v60 = vadd.f32 %v1693_v49, %v756_v17  ;;  %v1417_v29 = vpop.eup %1416  ;;  %v1007_v16 = vmul.f32 %v999_v46, %v1767_v36  ;;  %vm859_vm12 = vcmp.eq.f32.partialorder %v858_v61, 8.507059e+37 }
 0x252   : > { %v842_v22 = vsel %vm1811_vm6, %v1415_v47, %v838_v21  ;;  %v850_v38 = vmul.f32 %v1417_v29, %v1787_v54  ;;  %v949_v42 = vadd.f32 1.4214138, %v941_v32  ;;  %vm855_vm8 = vweird.f32 %v1417_v29  ;;  %v1419_v51 = vpop.eup %1418 }
 0x253   : > { %1420 = vrcp.f32 %v1815_v28  ;;  %v1830_v48 = vmul.f32 0.70710677, %v1818_v60  ;;  %v1833_v45 = vsel %vm844_vm7, %v846_v37, %v842_v22  ;;  %v980_v52 = vadd.f32 0.2548296, %v972_v44  ;;  %vm1848_vm11 = vmor %vm854_vm9, %vm855_vm8 }
 0x254   : > { %1422 = vpow2.f32 %v1014_v7  ;;  %v851_v41 = vsub.f32 1.0, %v850_v38  ;;  %v957_v9 = vmul.f32 %v949_v42, %v1799_v3  ;;  %v926_v53 = vmul.f32 1.0614054, %v1833_v45 }
 0x255   : > { %v1838_v47 = vand.u32 2147483647, %v1830_v48  ;;  %v988_v7 = vmul.f32 %v980_v52, %v1764_v34  ;;  %v875_v27 = vand.u32 2147483648, %v1815_v28  ;;  %v873_v22 = vand.u32 2147483647, %v1815_v28 }
 0x256   : > { %v852_v6 = vmul.f32 %v1417_v29, %v851_v41  ;;  %v965_v63 = vadd.f32 -0.28449672, %v957_v9  ;;  %v934_v8 = vadd.f32 -1.4531521, %v926_v53  ;;  %v1000_v41 = vsub.f32 0.0, %v1797_v1 }
 0x257   : > { %v793_v58 = vmul.f32 0.3275911, %v1838_v47  ;;  %v1028_v34 = vmul.f32 %v1419_v51, %v988_v7  ;;  %vm869_vm14 = vweird.f32 %v1815_v28  ;;  %v876_v9 = vor.u32 1.1754944e-38, %v875_v27 }
 0x258   : > { %v853_v5 = vadd.f32 %v1417_v29, %v852_v6  ;;  %v973_v13 = vmul.f32 %v965_v63, %v1799_v3  ;;  %v942_v21 = vmul.f32 %v934_v8, %v1833_v45  ;;  %vm874_vm2 = vcmp.eq.f32.partialorder %v873_v22, 8.507059e+37 }
 0x259   : > { %v1421_v62 = vpop.eup %1420  ;;  %v1854_v54 = vadd.f32 1.0, %v793_v58  ;;  %v1036_v36 = vsub.f32 1.0, %v1028_v34  ;;  %vm1046_vm7 = vcmp.ge.f32.partialorder %v1731_v4, 0.0  ;;  %vm1047_vm8 = vcmp.ge.f32.partialorder %v1759_v31, 0.0 }
 0x25a   : > { %v1423_v11 = vpop.eup %1422  ;;  %v865_v17 = vmul.f32 %v1421_v62, %v1815_v28  ;;  %v857_v18 = vsel %vm1848_vm11, %v1417_v29, %v853_v5  ;;  %v981_v32 = vadd.f32 0.2548296, %v973_v13  ;;  %vm870_vm13 = vweird.f32 %v1421_v62 }
 0x25b   : > { %1424 = vrcp.f32 %v1854_v54  ;;  %v1862_v33 = vsel %vm859_vm12, %v861_v14, %v857_v18  ;;  %v950_v39 = vadd.f32 1.4214138, %v942_v21  ;;  %v1018_v29 = vmul.f32 1.442695, %v1007_v16  ;;  %vm871_vm1 = vmor %vm869_vm14, %vm870_vm13 }
 0x25c   : > { %v866_v19 = vsub.f32 1.0, %v865_v17  ;;  %v927_v38 = vmul.f32 1.0614054, %v1862_v33  ;;  %v989_v42 = vmul.f32 %v981_v32, %v1799_v3  ;;  %v1052_v44 = vsub.f32 0.0, %v1036_v36 }
 0x25d   : > { %v958_v46 = vmul.f32 %v950_v39, %v1833_v45  ;;  %1426 = vpow2.f32 %v1016_v55  ;;  %v1008_v5 = vmul.f32 %v1000_v41, %v1797_v1  ;;  %v890_v12 = vand.u32 2147483648, %v1854_v54 }
 0x25e   : > { %v867_v37 = vmul.f32 %v1421_v62, %v866_v19  ;;  %v935_v56 = vadd.f32 -1.4531521, %v927_v38  ;;  %v1029_v52 = vmul.f32 %v1423_v11, %v989_v42  ;;  %v1060_v28 = vsel %vm1044_vm10, %v1036_v36, %v1052_v44 }
 0x25f   : > { %v966_v58 = vadd.f32 -0.28449672, %v958_v46  ;;  %1428 = vpow2.f32 %v1018_v29  ;;  %v888_v34 = vand.u32 2147483647, %v1854_v54  ;;  %v1020_v19 = vmul.f32 1.442695, %v1008_v5 }
 0x260   : > { %v868_v6 = vadd.f32 %v1421_v62, %v867_v37  ;;  %v943_v51 = vmul.f32 %v935_v56, %v1862_v33  ;;  %v1037_v63 = vsub.f32 1.0, %v1029_v52  ;;  %vm884_vm4 = vweird.f32 %v1854_v54 }
 0x261   : > { %v1425_v53 = vpop.eup %1424  ;;  %v974_v8 = vmul.f32 %v966_v58, %v1833_v45  ;;  %v891_v22 = vor.u32 1.1754944e-38, %v890_v12  ;;  %v1001_v44 = vsub.f32 0.0, %v1838_v47  ;;  %vm889_vm6 = vcmp.eq.f32.partialorder %v888_v34, 8.507059e+37 }
 0x262   : > { %v872_v61 = vsel %vm871_vm1, %v1421_v62, %v868_v6  ;;  %v880_v3 = vmul.f32 %v1425_v53, %v1854_v54  ;;  %v951_v55 = vadd.f32 1.4214138, %v943_v51  ;;  %v1053_v14 = vsub.f32 0.0, %v1037_v63 }
 0x263   : > { %v877_v7 = vsel %vm874_vm2, %v876_v9, %v872_v61  ;;  %v1068_v62 = vadd.f32 1.0, %v1060_v28  ;;  %v982_v13 = vadd.f32 0.2548296, %v974_v8  ;;  %v1427_v43 = vpop.eup %1426  ;;  %vm885_vm3 = vweird.f32 %v1425_v53 }
 0x264   : > { %v881_v11 = vsub.f32 1.0, %v880_v3  ;;  %v928_v16 = vmul.f32 1.0614054, %v877_v7  ;;  %v959_v17 = vmul.f32 %v951_v55, %v1862_v33  ;;  %v1061_v1 = vsel %vm1045_vm15, %v1037_v63, %v1053_v14  ;;  %vm886_vm5 = vmor %vm884_vm4, %vm885_vm3 }
 0x265   : > { %v1069_v27 = vadd.f32 1.0, %v1061_v1  ;;  %v990_v36 = vmul.f32 %v982_v13, %v1833_v45  ;;  %v1429_v39 = vpop.eup %1428  ;;  %v1076_v29 = vmul.f32 %v1068_v62, %v1809_v24  ;;  %1430 = vpow2.f32 %v1020_v19 }
 0x266   : > { %v882_v18 = vmul.f32 %v1425_v53, %v881_v11  ;;  %v936_v21 = vadd.f32 -1.4531521, %v928_v16  ;;  %v967_v32 = vadd.f32 -0.28449672, %v959_v17  ;;  %v1009_v3 = vmul.f32 %v1001_v44, %v1838_v47 }
 0x267   : > { %v1077_v41 = vmul.f32 %v1069_v27, %v1824_v50  ;;  %v1030_v42 = vmul.f32 %v1427_v43, %v990_v36  ;;  %v766_v13 = vmul.f32 0.5, %v1726_v0  ;;  %v767_v34 = vmul.f32 0.5, %v1751_v23 }
 0x268   : > { %v883_v37 = vadd.f32 %v1425_v53, %v882_v18  ;;  %v944_v38 = vmul.f32 %v936_v21, %v877_v7  ;;  %v975_v57 = vmul.f32 %v967_v32, %v1862_v33  ;;  %v1022_v12 = vmul.f32 1.442695, %v1009_v3 }
 0x269   : > { %v1084_v45 = vpack.c.bf16 %v1077_v41, %v1076_v29  ;;  %v1038_v54 = vsub.f32 1.0, %v1030_v42  ;;  %vm1048_vm9 = vcmp.ge.f32.partialorder %v1790_v2, 0.0  ;;  %vm1049_vm10 = vcmp.ge.f32.partialorder %v1830_v48, 0.0 }
 0x26a   : > { %v887_v56 = vsel %vm886_vm5, %v1425_v53, %v883_v37  ;;  %v952_v46 = vadd.f32 1.4214138, %v944_v38  ;;  %v983_v6 = vadd.f32 0.2548296, %v975_v57  ;;  %1432 = vpow2.f32 %v1022_v12 }
 0x26b   : > { %v892_v9 = vsel %vm889_vm6, %v891_v22, %v887_v56  ;;  %1164 = vmatmul.bf16.vlgmr.msra.gmra.mxu2 %v1084_v45  ;;  %v1054_v24 = vsub.f32 0.0, %v1038_v54  ;;  %v1431_v17 = vpop.eup %1430  ;;  %v768_v41 = vmul.f32 0.5, %v1779_v26  ;;  %v769_v57 = vmul.f32 0.5, %v1818_v60 }
 0x26c   : > { %v929_v52 = vmul.f32 1.0614054, %v892_v9  ;;  %v960_v51 = vmul.f32 %v952_v46, %v877_v7  ;;  %v991_v58 = vmul.f32 %v983_v6, %v1862_v33 }
 0x26d   : > { %v1062_v55 = vsel %vm1046_vm7, %v1038_v54, %v1054_v24 }
 0x26e   : > { %v937_v61 = vadd.f32 -1.4531521, %v929_v52  ;;  %v968_v50 = vadd.f32 -0.28449672, %v960_v51  ;;  %v1031_v63 = vmul.f32 %v1429_v39, %v991_v58  ;;  %v1070_v33 = vadd.f32 1.0, %v1062_v55 }
 0x270   : > { %v945_v53 = vmul.f32 %v937_v61, %v892_v9  ;;  %v976_v28 = vmul.f32 %v968_v50, %v877_v7  ;;  %v1039_v5 = vsub.f32 1.0, %v1031_v63  ;;  %v1078_v1 = vmul.f32 %v1070_v33, %v766_v13 }
 0x272   : > { %v953_v8 = vadd.f32 1.4214138, %v945_v53  ;;  %v984_v11 = vadd.f32 0.2548296, %v976_v28  ;;  %v1055_v14 = vsub.f32 0.0, %v1039_v5 }
 0x274   : > { %v961_v16 = vmul.f32 %v953_v8, %v892_v9  ;;  %v992_v62 = vmul.f32 %v984_v11, %v877_v7  ;;  %v1063_v47 = vsel %vm1047_vm8, %v1039_v5, %v1055_v14  ;;  %v1433_v7 = vpop.eup %1432 }
 0x275   : > { %v1071_v4 = vadd.f32 1.0, %v1063_v47 }
 0x276   : > { %v969_v43 = vadd.f32 -0.28449672, %v961_v16  ;;  %v1032_v18 = vmul.f32 %v1431_v17, %v992_v62 }
 0x277   : > { %v1079_v21 = vmul.f32 %v1071_v4, %v767_v34 }
 0x278   : > { %v977_v19 = vmul.f32 %v969_v43, %v892_v9  ;;  %v1040_v27 = vsub.f32 1.0, %v1032_v18 }
 0x279   : > { %v1085_v32 = vpack.c.bf16 %v1079_v21, %v1078_v1 }
 0x27a   : > { %v985_v36 = vadd.f32 0.2548296, %v977_v19  ;;  %v1056_v22 = vsub.f32 0.0, %v1040_v27 }
 0x27b   : > { %1169 = vmatmul.bf16.vlgmr.msra.gmra.mxu3 %v1085_v32 }
 0x27c   : > { %v993_v31 = vmul.f32 %v985_v36, %v892_v9  ;;  %v1064_v38 = vsel %vm1048_vm9, %v1040_v27, %v1056_v22 }
 0x27d   : > { %v1072_v39 = vadd.f32 1.0, %v1064_v38 }
 0x27e   : > { %v1033_v37 = vmul.f32 %v1433_v7, %v993_v31 }
 0x27f   : > { %v1080_v44 = vmul.f32 %v1072_v39, %v768_v41 }
 0x280   : > { %v1041_v0 = vsub.f32 1.0, %v1033_v37 }
 0x282   : > { %v1057_v23 = vsub.f32 0.0, %v1041_v0 }
 0x284   : > { %v1065_v29 = vsel %vm1049_vm10, %v1041_v0, %v1057_v23 }
 0x285   : > { %v1073_v42 = vadd.f32 1.0, %v1065_v29 }
 0x287   : > { %v1081_v56 = vmul.f32 %v1073_v42, %v769_v57 }
 0x289   : > { %v1086_v46 = vpack.c.bf16 %v1081_v56, %v1080_v44 }
 0x28b   : > { %1174 = vmatmul.bf16.gmra.mxu3 %v1086_v46 }
 0x2a3   : > { %v759_v45 = vpop.f32.mrf.mxu1 }
 0x2a4   : > { %v1899_v6 = vadd.f32 %v1693_v49, %v759_v45 }
 0x2a6   : > { %v1902_v2 = vmul.f32 0.70710677, %v1899_v6 }
 0x2a8   : > { %v786_v48 = vand.u32 2147483647, %v1902_v2  ;;  %vm1050_vm4 = vcmp.ge.f32.partialorder %v1902_v2, 0.0  ;;  %v1391_v2 = vld [vmem:[%s1952_s9] ss:$0 sm:$0xff] }
 0x2aa   : > { %v794_v54 = vmul.f32 0.3275911, %v786_v48  ;;  %v1002_v11 = vsub.f32 0.0, %v786_v48 }
 0x2ab   : > { %v761_v9 = vpop.f32.mrf.mxu1 }
 0x2ac   : > { %v802_v52 = vadd.f32 1.0, %v794_v54  ;;  %v1906_v26 = vadd.f32 %v1693_v49, %v761_v9  ;;  %v1010_v13 = vmul.f32 %v1002_v11, %v786_v48 }
 0x2ae   : > { %1434 = vrcp.f32 %v802_v52  ;;  %v1909_v60 = vmul.f32 0.70710677, %v1906_v26  ;;  %v905_v63 = vand.u32 2147483648, %v802_v52  ;;  %v903_v28 = vand.u32 2147483647, %v802_v52 }
 0x2af   : > { %vm899_vm12 = vweird.f32 %v802_v52  ;;  %v1024_v21 = vmul.f32 1.442695, %v1010_v13 }
 0x2b0   : > { %v787_v51 = vand.u32 2147483647, %v1909_v60  ;;  %v906_v49 = vor.u32 1.1754944e-38, %v905_v63  ;;  %vm904_vm14 = vcmp.eq.f32.partialorder %v903_v28, 8.507059e+37  ;;  %vm1051_vm5 = vcmp.ge.f32.partialorder %v1909_v60, 0.0 }
 0x2b1   : > { %v770_v63 = vmul.f32 0.5, %v1899_v6 }
 0x2b2   : > { %v795_v58 = vmul.f32 0.3275911, %v787_v51  ;;  %v1003_v27 = vsub.f32 0.0, %v787_v51 }
 0x2b4   : > { %v1435_v24 = vpop.eup %1434  ;;  %v803_v50 = vadd.f32 1.0, %v795_v58  ;;  %v1011_v37 = vmul.f32 %v1003_v27, %v787_v51 }
 0x2b5   : > { %v895_v61 = vmul.f32 %v1435_v24, %v802_v52  ;;  %vm900_vm11 = vweird.f32 %v1435_v24 }
 0x2b6   : > { %1436 = vrcp.f32 %v803_v50  ;;  %vm901_vm13 = vmor %vm899_vm12, %vm900_vm11  ;;  %v920_v62 = vand.u32 2147483648, %v803_v50  ;;  %v918_v34 = vand.u32 2147483647, %v803_v50  ;;  %vm914_vm1 = vweird.f32 %v803_v50 }
 0x2b7   : > { %v896_v3 = vsub.f32 1.0, %v895_v61  ;;  %1438 = vpow2.f32 %v1024_v21  ;;  %v1026_v29 = vmul.f32 1.442695, %v1011_v37 }
 0x2b8   : > { %v921_v18 = vor.u32 1.1754944e-38, %v920_v62  ;;  %vm919_vm3 = vcmp.eq.f32.partialorder %v918_v34, 8.507059e+37 }
 0x2b9   : > { %v897_v53 = vmul.f32 %v1435_v24, %v896_v3  ;;  %1440 = vpow2.f32 %v1026_v29 }
 0x2bb   : > { %v898_v5 = vadd.f32 %v1435_v24, %v897_v53  ;;  %v771_v53 = vmul.f32 0.5, %v1906_v26 }
 0x2bc   : > { %v1437_v55 = vpop.eup %1436 }
 0x2bd   : > { %v902_v8 = vsel %vm901_vm13, %v1435_v24, %v898_v5  ;;  %v910_v12 = vmul.f32 %v1437_v55, %v803_v50  ;;  %vm915_vm15 = vweird.f32 %v1437_v55  ;;  %v1439_v57 = vpop.eup %1438 }
 0x2be   : > { %v907_v14 = vsel %vm904_vm14, %v906_v49, %v902_v8  ;;  %vm916_vm2 = vmor %vm914_vm1, %vm915_vm15 }
 0x2bf   : > { %v930_v33 = vmul.f32 1.0614054, %v907_v14  ;;  %v911_v16 = vsub.f32 1.0, %v910_v12  ;;  %v1441_v52 = vpop.eup %1440 }
 0x2c1   : > { %v938_v17 = vadd.f32 -1.4531521, %v930_v33  ;;  %v912_v47 = vmul.f32 %v1437_v55, %v911_v16 }
 0x2c3   : > { %v946_v4 = vmul.f32 %v938_v17, %v907_v14  ;;  %v913_v43 = vadd.f32 %v1437_v55, %v912_v47 }
 0x2c5   : > { %v954_v1 = vadd.f32 1.4214138, %v946_v4  ;;  %v917_v19 = vsel %vm916_vm2, %v1437_v55, %v913_v43 }
 0x2c6   : > { %v922_v32 = vsel %vm919_vm3, %v921_v18, %v917_v19 }
 0x2c7   : > { %v962_v36 = vmul.f32 %v954_v1, %v907_v14  ;;  %v931_v31 = vmul.f32 1.0614054, %v922_v32 }
 0x2c9   : > { %v970_v22 = vadd.f32 -0.28449672, %v962_v36  ;;  %v939_v7 = vadd.f32 -1.4531521, %v931_v31 }
 0x2cb   : > { %v978_v0 = vmul.f32 %v970_v22, %v907_v14  ;;  %v947_v38 = vmul.f32 %v939_v7, %v922_v32 }
 0x2cd   : > { %v986_v23 = vadd.f32 0.2548296, %v978_v0  ;;  %v955_v39 = vadd.f32 1.4214138, %v947_v38 }
 0x2cf   : > { %v994_v41 = vmul.f32 %v986_v23, %v907_v14  ;;  %v963_v42 = vmul.f32 %v955_v39, %v922_v32 }
 0x2d1   : > { %v1034_v44 = vmul.f32 %v1439_v57, %v994_v41  ;;  %v971_v56 = vadd.f32 -0.28449672, %v963_v42 }
 0x2d3   : > { %v979_v46 = vmul.f32 %v971_v56, %v922_v32  ;;  %v1042_v45 = vsub.f32 1.0, %v1034_v44 }
 0x2d5   : > { %v987_v48 = vadd.f32 0.2548296, %v979_v46  ;;  %v1058_v9 = vsub.f32 0.0, %v1042_v45 }
 0x2d7   : > { %v995_v54 = vmul.f32 %v987_v48, %v922_v32  ;;  %v1066_v24 = vsel %vm1050_vm4, %v1042_v45, %v1058_v9 }
 0x2d8   : > { %v1074_v50 = vadd.f32 1.0, %v1066_v24 }
 0x2d9   : > { %v1035_v58 = vmul.f32 %v1441_v52, %v995_v54 }
 0x2da   : > { %v1082_v5 = vmul.f32 %v1074_v50, %v770_v63 }
 0x2db   : > { %v1043_v51 = vsub.f32 1.0, %v1035_v58 }
 0x2dd   : > { %v1059_v61 = vsub.f32 0.0, %v1043_v51 }
 0x2df   : > { %v1067_v3 = vsel %vm1051_vm5, %v1043_v51, %v1059_v61 }
 0x2e0   : > { %v1075_v28 = vadd.f32 1.0, %v1067_v3 }
 0x2e2   : > { %v1083_v49 = vmul.f32 %v1075_v28, %v771_v53 }
 0x2e4   : > { %v1087_v55 = vpack.c.bf16 %v1083_v49, %v1082_v5 }
 0x2e6   : > { %1179 = vmatmul.bf16.gmra.mxu3 %v1087_v55 }
 0x2ee   : > { %v1165_v8 = vpop.f32.mrf.mxu2 }
 0x2ef   : > { %v1166_v11 = vadd.f32 %v1391_v2, %v1165_v8 }
 0x2f1   : > { %v1185_v6 = vadd.f32 %v1166_v11, %v1542_v10 }
 0x2f3   : > { %1193 = vst.msk [vmem:[%s383_s26] sm:$0xff] %vm434_vm0, %v1185_v6 }
 0x2f6   : > { %v1167_v26 = vpop.f32.mrf.mxu2 }
 0x2f7   : > { %v1168_v60 = vadd.f32 %v1391_v2, %v1167_v26 }
 0x2f9   : > { %v1186_v12 = vadd.f32 %v1168_v60, %v1547_v15 }
 0x2fb   : > { %1194 = vst.msk [vmem:[%s383_s26 + $0x8] sm:$0xff] %vm434_vm0, %v1186_v12 }
 0x2fe   : > { %v1170_v14 = vpop.f32.mrf.mxu3 }
 0x2ff   : > { %v1171_v33 = vadd.f32 %v1391_v2, %v1170_v14 }
 0x301   : > { %v1187_v16 = vadd.f32 %v1171_v33, %v1552_v20 }
 0x303   : > { %1195 = vst.msk [vmem:[%s383_s26 + $0x10] sm:$0xff] %vm434_vm0, %v1187_v16 }
 0x306   : > { %v1172_v62 = vpop.f32.mrf.mxu3 }
 0x307   : > { %v1173_v17 = vadd.f32 %v1391_v2, %v1172_v62 }
 0x309   : > { %v1188_v13 = vadd.f32 %v1173_v17, %v1557_v25 }
 0x30b   : > { %1196 = vst.msk [vmem:[%s383_s26 + $0x18] sm:$0xff] %vm434_vm0, %v1188_v13 }
 0x30e   : > { %v1175_v10 = vpop.f32.mrf.mxu3 }
 0x30f   : > { %v1176_v47 = vadd.f32 %v1391_v2, %v1175_v10 }
 0x311   : > { %v1189_v34 = vadd.f32 %v1176_v47, %v1562_v30 }
 0x313   : > { %1197 = vst.msk [vmem:[%s383_s26 + $0x20] sm:$0xff] %vm434_vm0, %v1189_v34 }
 0x316   : > { %v1177_v15 = vpop.f32.mrf.mxu3 }
 0x317   : > { %v1178_v4 = vadd.f32 %v1391_v2, %v1177_v15 }
 0x319   : > { %v1190_v43 = vadd.f32 %v1178_v4, %v1567_v35 }
 0x31b   : > { %1198 = vst.msk [vmem:[%s383_s26 + $0x28] sm:$0xff] %vm434_vm0, %v1190_v43 }
 0x369   : > { %v1180_v20 = vpop.f32.mrf.mxu3 }
 0x36a   : > { %v1181_v18 = vadd.f32 %v1391_v2, %v1180_v20 }
 0x36c   : > { %v1191_v1 = vadd.f32 %v1181_v18, %v1572_v40 }
 0x36e   : > { %1199 = vst.msk [vmem:[%s383_s26 + $0x30] sm:$0xff] %vm434_vm0, %v1191_v1 }
 0x371   : > { %v1182_v25 = vpop.f32.mrf.mxu3 }
 0x372   : > { %v1183_v21 = vadd.f32 %v1391_v2, %v1182_v25 }
 0x374   : > { %v1192_v19 = vadd.f32 %v1183_v21, %v1587_v59 }
 0x376   : > { %1200 = vst.msk [vmem:[%s383_s26 + $0x38] sm:$0xff] %vm434_vm0, %v1192_v19 }
 0x377 PF: > { %s20_s13 = sadd.s32 1, %s1448_s13  }
 0x378   : > { %p17_p4 = scmp.ge.s32.totalorder %s20_s13, 4  }
 0x37a   :  { %19 = sbr.rel (!%p17_p4) target bundleno = 1 (0x1), region = 93 }

// kernel: swin_block_pallas.4
= control target key start
LH: loop header
LB: loop body
LE: loop exit
PB: predicated region body
PF: predicated region fallthrough
CT: control target
= control target key end

     0   :  { %s2158_s18 = smov 0   ;;  %s2789_s0 = inlined_call_operand.vmem [shape: bf16[8,16,32], index: 0, kind: input, shape index: {}]   ;;  %s2790_s1 = inlined_call_operand.vmem [shape: bf16[8,16,32], index: 1, kind: input, shape index: {}]   ;;  %s2791_s2 = inlined_call_operand.vmem [shape: bf16[8,16,32], index: 2, kind: input, shape index: {}]   ;;  %s2792_s3 = inlined_call_operand.vmem [shape: f32[4,16,16], index: 3, kind: input, shape index: {}]   ;;  %s2793_s4 = inlined_call_operand.vmem [shape: f32[4,16,16], index: 4, kind: input, shape index: {}]   ;;  %s2794_s5 = inlined_call_operand.vmem [shape: bf16[8,16,32], index: 5, kind: output, shape index: {}]  }
   0x1 LB: > { %s1782_s19 = sadd.s32 4294967295, %s2120_s18   ;;  %p1786_p0 = scmp.ge.s32.totalorder %s2120_s18, 1  ;;  %s2120_s18 = sphi %s2158_s18, %s15_s18  }
   0x2   : > { %p213_p1 = scmp.lt.s32.totalorder %s2120_s18, 3 }
   0x4   : > { %p214_p2 = pnand %p1786_p0, %p213_p1 }
   0x5   : > { %s1787_s20 = sshll.u32 (!%p214_p2), %s1782_s19, 2  ;;  %s2122_s26 = smov (!%p214_p2), 120  }
   0x6   : > { %217 = sbr.rel (%p214_p2) target bundleno = 2025 (0x7e9), region = 40  ;;  %p256_p3 = scmp.lt.s32.totalorder (!%p214_p2), %s1787_s20, 7 }
   0x7   : > { %s2123_s10 = smov (!%p214_p2), 112   ;;  %s2124_s11 = smov (!%p214_p2), 104  }
   0x8   : > { %s2125_s15 = smov (!%p214_p2), 16  }
   0xb   : > { %s2796_s20 = smov (!%p256_p3, %s1787_s20), 7  ;;  %vm334_vm0 = vcmask 64512   ;;  %v308_v12 = vld [vmem:[%s2792_s3] sm:$0xff]  ;;  %vm453_vm1 = vcmask 130048   ;;  %v309_v20 = vld [vmem:[%s2792_s3 + $0x8] sm:$0xff]  ;;  %v2241_v24 = vld [vmem:[%s2793_s4 + $0x30] sm:$0xff] }
   0xc   : > { %s2166_s21 = sshll.u32 %s2796_s20, 3  ;;  %v2226_v14 = vld [vmem:[%s2793_s4] sm:$0xff]  ;;  %v2246_v27 = vld [vmem:[%s2793_s4 + $0x8] sm:$0xff]  ;;  %v2260_v37 = vld [vmem:[%s2793_s4 + $0x18] sm:$0xff]  ;;  %vm1674_vm2 = vcmask 195584   ;;  %vm1691_vm3 = vcmask 257024  }
   0xd   : > { %s2172_s24 = scalar_lea.vmem %s2790_s1, %s2166_s21  ;;  %s2198_s27 = scalar_lea.vmem %s2789_s0, %s2166_s21  ;;  %v2236_v21 = vld [vmem:[%s2793_s4 + $0x20] sm:$0xff]  ;;  %v2265_v39 = vld [vmem:[%s2793_s4 + $0x28] sm:$0xff]  ;;  %v2274_v48 = vld [vmem:[%s2793_s4 + $0x10] sm:$0xff] }
   0xe   : > { %v2175_v0 = vld [vmem:[%s2172_s24] sm:$0xff]  ;;  %v2178_v1 = vld [vmem:[%s2172_s24 + $0x10] sm:$0xff]  ;;  %v2181_v2 = vld [vmem:[%s2172_s24 + $0x18] sm:$0xff]  ;;  %s2317_s30 = scalar_lea.vmem %s2791_s2, %s2166_s21  ;;  %s2742_s16 = scalar_lea.vmem %s2794_s5, %s2166_s21 }
   0xf   : > { %v2184_v3 = vld [vmem:[%s2172_s24 + $0x8] sm:$0xff]  ;;  %v339_v4 = vsel %vm334_vm0, %v2175_v0, 0  ;;  %v399_v5 = vsel %vm334_vm0, %v2178_v1, 0  ;;  %v429_v6 = vsel %vm334_vm0, %v2181_v2, 0  ;;  %v2201_v8 = vld [vmem:[%s2198_s27] sm:$0xff]  ;;  %v2204_v9 = vld [vmem:[%s2198_s27 + $0x10] sm:$0xff] }
  0x10   : > { %348 = vmatpush.bf16.xpose.msra.mxu0 %v339_v4  ;;  %408 = vmatpush.bf16.xpose.msra.mxu2 %v399_v5  ;;  %v369_v7 = vsel %vm334_vm0, %v2184_v3, 0  ;;  %v2207_v10 = vld [vmem:[%s2198_s27 + $0x18] sm:$0xff]  ;;  %v2210_v11 = vld [vmem:[%s2198_s27 + $0x8] sm:$0xff] }
  0x11   : > { %438 = vmatpush.bf16.xpose.msra.mxu3 %v429_v6  ;;  %378 = vmatpush.bf16.xpose.msra.mxu1 %v369_v7  ;;  %v2279_v49 = vld [vmem:[%s2793_s4 + $0x38] sm:$0xff] }
  0x17   : > { %1807 = vmatmul.msk.bf16.vlgmr.msra.gmra.mxu0 %vm334_vm0, %v2201_v8  ;;  %1825 = vmatmul.msk.bf16.vlgmr.msra.gmra.mxu2 %vm334_vm0, %v2204_v9 }
  0x18   : > { %1834 = vmatmul.msk.bf16.vlgmr.msra.gmra.mxu3 %vm334_vm0, %v2207_v10  ;;  %1816 = vmatmul.msk.bf16.vlgmr.msra.gmra.mxu1 %vm334_vm0, %v2210_v11 }
  0x94   : > { %v350_v13 = vpop.f32.mrf.mxu0 }
  0x95   : > { %v351_v15 = vadd.f32 %v350_v13, %v308_v12  ;;  %v380_v16 = vpop.f32.mrf.mxu1 }
  0x96   : > { %v381_v44 = vadd.f32 %v380_v16, %v308_v12 }
  0x97   : > { %v445_v17 = vadd.f32 %v351_v15, %v2226_v14 }
  0x98   : > { %v447_v50 = vadd.f32 %v381_v44, %v2274_v48 }
  0x99   : > { %v454_v18 = vsel %vm453_vm1, %v445_v17, -inf }
  0x9a   : > { %v410_v19 = vpop.f32.mrf.mxu2  ;;  %455 = vmax.xlane.f32.xlu2 %v454_v18  ;;  %v460_v52 = vsel %vm453_vm1, %v447_v50, -inf }
  0x9b   : > { %v411_v22 = vadd.f32 %v410_v19, %v308_v12  ;;  %v440_v23 = vpop.f32.mrf.mxu3 }
  0x9c   : > { %v441_v25 = vadd.f32 %v440_v23, %v308_v12  ;;  %v352_v26 = vpop.f32.mrf.mxu0 }
  0x9d   : > { %v353_v28 = vadd.f32 %v352_v26, %v309_v20  ;;  %v382_v29 = vpop.f32.mrf.mxu1  ;;  %v2249_v30 = vadd.f32 %v411_v22, %v2236_v21 }
  0x9e   : > { %v451_v31 = vadd.f32 %v441_v25, %v2241_v24  ;;  %v383_v34 = vadd.f32 %v382_v29, %v309_v20 }
  0x9f   : > { %v466_v32 = vsel %vm453_vm1, %v2249_v30, -inf  ;;  %v446_v33 = vadd.f32 %v353_v28, %v2246_v27 }
  0xa0   : > { %v472_v35 = vsel %vm453_vm1, %v451_v31, -inf  ;;  %467 = vmax.xlane.f32.xlu0 %v466_v32  ;;  %v448_v41 = vadd.f32 %v383_v34, %v2260_v37 }
  0xa1   : > { %473 = vmax.xlane.f32.xlu1 %v472_v35  ;;  %v457_v36 = vsel %vm453_vm1, %v446_v33, -inf }
  0xa2   : > { %v412_v38 = vpop.f32.mrf.mxu2  ;;  %458 = vmax.xlane.f32.xlu2 %v457_v36  ;;  %v463_v47 = vsel %vm453_vm1, %v448_v41, -inf }
  0xa3   : > { %v413_v40 = vadd.f32 %v412_v38, %v309_v20  ;;  %v442_v42 = vpop.f32.mrf.mxu3 }
  0xa4   : > { %v443_v46 = vadd.f32 %v442_v42, %v309_v20 }
  0xa5   : > { %v450_v43 = vadd.f32 %v413_v40, %v2265_v39 }
  0xa6   : > { %v452_v51 = vadd.f32 %v443_v46, %v2279_v49 }
  0xa7   : > { %v469_v45 = vsel %vm453_vm1, %v450_v43, -inf }
  0xa8   : > { %470 = vmax.xlane.f32.xlu0 %v469_v45  ;;  %v475_v53 = vsel %vm453_vm1, %v452_v51, -inf }
  0xa9   : > { %464 = vmax.xlane.f32.xlu1 %v463_v47 }
  0xb0   : > { %461 = vmax.xlane.f32.xlu0 %v460_v52  ;;  %v2348_v52 = vld [vmem:[%s2317_s30] sm:$0xff] }
  0xb1   : > { %476 = vmax.xlane.f32.xlu1 %v475_v53  ;;  %571 = vmatpush.bf16.msrb.mxu0 %v2348_v52  ;;  %v2352_v53 = vld [vmem:[%s2317_s30 + $0x8] sm:$0xff] }
  0xb2   : > { %599 = vmatpush.bf16.msrb.mxu1 %v2352_v53 }
  0xba   : > { %736 = vrot.lane.b32.xlu2 %v2181_v2, %s2122_s26 }
  0xca   : > { %712 = vrot.lane.b32.xlu1 %v2178_v1, %s2122_s26 }
 0x10d   : > { %v456_v54 = vpop.xlane.xlu2 %455 }
 0x10e   : > { %v478_v55 = vsub.f32 %v445_v17, %v456_v54 }
 0x110   : > { %v486_v56 = vmul.f32 1.442695, %v478_v55 }
 0x112   : > { %1971 = vpow2.f32 %v486_v56 }
 0x113   : > { %v468_v57 = vpop.xlane.xlu0 %467 }
 0x114   : > { %v474_v58 = vpop.xlane.xlu1 %473  ;;  %v482_v23 = vsub.f32 %v2249_v30, %v468_v57 }
 0x115   : > { %v484_v59 = vsub.f32 %v451_v31, %v474_v58  ;;  %v459_v60 = vpop.xlane.xlu2 %458 }
 0x116   : > { %v479_v62 = vsub.f32 %v446_v33, %v459_v60  ;;  %v494_v31 = vmul.f32 1.442695, %v482_v23 }
 0x117   : > { %v498_v61 = vmul.f32 1.442695, %v484_v59 }
 0x118   : > { %v2289_v63 = vpop.eup %1971  ;;  %v488_v5 = vmul.f32 1.442695, %v479_v62 }
 0x119   : > { %1973 = vpow2.f32 %v498_v61  ;;  %v502_v4 = vsel %vm453_vm1, %v2289_v63, 0.0 }
 0x11a   : > { %503 = vadd.xlane.f32.xlu0 %v502_v4  ;;  %1975 = vpow2.f32 %v488_v5 }
 0x11b   : > { %v471_v6 = vpop.xlane.xlu0 %470 }
 0x11c   : > { %v465_v7 = vpop.xlane.xlu1 %464  ;;  %v483_v15 = vsub.f32 %v450_v43, %v471_v6  ;;  %v2322_v43 = vld [vmem:[%s2317_s30 + $0x18] sm:$0xff] }
 0x11d   : > { %v481_v12 = vsub.f32 %v448_v41, %v465_v7  ;;  %v737_v42 = vpop.permute.xlu2 %736  ;;  %655 = vmatpush.bf16.msrb.mxu3 %v2322_v43 }
 0x11e   : > { %v496_v18 = vmul.f32 1.442695, %v483_v15  ;;  %v742_v44 = vsel %vm334_vm0, %v737_v42, 0 }
 0x11f   : > { %v2293_v13 = vpop.eup %1973  ;;  %v492_v16 = vmul.f32 1.442695, %v481_v12 }
 0x120   : > { %v520_v17 = vsel %vm453_vm1, %v2293_v13, 0.0  ;;  %v2297_v22 = vpop.eup %1975 }
 0x121   : > { %1977 = vpow2.f32 %v492_v16  ;;  %521 = vadd.xlane.f32.xlu1 %v520_v17  ;;  %v505_v29 = vsel %vm453_vm1, %v2297_v22, 0.0  ;;  %751 = vmatpush.bf16.xpose.msra.mxu3 %v742_v44 }
 0x122   : > { %1979 = vpow2.f32 %v496_v18 }
 0x123   : > { %v462_v19 = vpop.xlane.xlu0 %461 }
 0x124   : > { %v480_v20 = vsub.f32 %v447_v50, %v462_v19  ;;  %v477_v32 = vpop.xlane.xlu1 %476  ;;  %v2331_v50 = vld [vmem:[%s2317_s30 + $0x10] sm:$0xff] }
 0x125   : > { %v485_v30 = vsub.f32 %v452_v51, %v477_v32  ;;  %627 = vmatpush.bf16.msrb.mxu2 %v2331_v50 }
 0x126   : > { %v490_v25 = vmul.f32 1.442695, %v480_v20 }
 0x127   : > { %v2300_v26 = vpop.eup %1977  ;;  %v500_v38 = vmul.f32 1.442695, %v485_v30 }
 0x128   : > { %1981 = vpow2.f32 %v490_v25  ;;  %v511_v28 = vsel %vm453_vm1, %v2300_v26, 0.0  ;;  %v2306_v33 = vpop.eup %1979 }
 0x129   : > { %512 = vadd.xlane.f32.xlu0 %v511_v28  ;;  %506 = vadd.xlane.f32.xlu1 %v505_v29  ;;  %1983 = vpow2.f32 %v494_v31  ;;  %v517_v36 = vsel %vm453_vm1, %v2306_v33, 0.0 }
 0x12a   : > { %1985 = vpow2.f32 %v500_v38 }
 0x12e   : > { %v1982_v34 = vpop.eup %1981 }
 0x12f   : > { %v508_v35 = vsel %vm453_vm1, %v1982_v34, 0.0  ;;  %v2311_v40 = vpop.eup %1983 }
 0x130   : > { %509 = vadd.xlane.f32.xlu2 %v508_v35  ;;  %v514_v41 = vsel %vm453_vm1, %v2311_v40, 0.0  ;;  %v2326_v45 = vpop.eup %1985 }
 0x131   : > { %518 = vadd.xlane.f32.xlu0 %v517_v36  ;;  %v523_v46 = vsel %vm453_vm1, %v2326_v45, 0.0 }
 0x138   : > { %515 = vadd.xlane.f32.xlu2 %v514_v41 }
 0x13c   : > { %v713_v47 = vpop.permute.xlu1 %712 }
 0x13d   : > { %v718_v51 = vsel %vm334_vm0, %v713_v47, 0 }
 0x13e   : > { %727 = vmatpush.bf16.xpose.msra.mxu2 %v718_v51 }
 0x140   : > { %524 = vadd.xlane.f32.xlu2 %v523_v46 }
 0x142   : > { %664 = vrot.lane.b32.xlu1 %v2175_v0, %s2122_s26 }
 0x145   : > { %710 = vrot.lane.b32.xlu0 %v2204_v9, %s2122_s26 }
 0x14a   : > { %686 = vrot.lane.b32.xlu1 %v2210_v11, %s2122_s26 }
 0x14d   : > { %688 = vrot.lane.b32.xlu0 %v2184_v3, %s2122_s26 }
 0x158   : > { %734 = vrot.lane.b32.xlu2 %v2207_v10, %s2122_s26 }
 0x160   : > { %662 = vrot.lane.b32.xlu2 %v2201_v8, %s2122_s26 }
 0x18d   : > { %v504_v54 = vpop.xlane.xlu0 %503 }
 0x18e   : > { %1987 = vrcp.f32 %v504_v54 }
 0x194   : > { %v522_v55 = vpop.xlane.xlu1 %521  ;;  %v1988_v58 = vpop.eup %1987 }
 0x195   : > { %v534_v59 = vmul.f32 %v1988_v58, %v2289_v63 }
 0x197   : > { %v542_v5 = vpack.c.bf16 %v534_v59, %v534_v59 }
 0x199   : > { %v552_v15 = vunpack.c.l.b16 %v542_v5 }
 0x19c   : > { %v513_v56 = vpop.xlane.xlu0 %512  ;;  %v507_v57 = vpop.xlane.xlu1 %506 }
 0x19d   : > { %1989 = vrcp.f32 %v513_v56 }
 0x19e   : > { %1991 = vrcp.f32 %v507_v57 }
 0x1a3   : > { %v1990_v60 = vpop.eup %1989  ;;  %v510_v61 = vpop.xlane.xlu2 %509 }
 0x1a4   : > { %v1992_v62 = vpop.eup %1991  ;;  %v519_v4 = vpop.xlane.xlu0 %518  ;;  %1993 = vrcp.f32 %v510_v61  ;;  %v537_v7 = vmul.f32 %v1990_v60, %v2300_v26 }
 0x1a5   : > { %v535_v6 = vmul.f32 %v1992_v62, %v2297_v22  ;;  %1995 = vrcp.f32 %v519_v4 }
 0x1a6   : > { %v545_v18 = vpack.c.bf16 %v537_v7, %v537_v7 }
 0x1a7   : > { %v543_v12 = vpack.c.bf16 %v535_v6, %v535_v6 }
 0x1a8   : > { %v581_v28 = vunpack.c.l.b16 %v545_v18 }
 0x1a9   : > { %v553_v16 = vunpack.c.l.b16 %v543_v12  ;;  %v310_v12 = vld [vmem:[%s2792_s3 + $0x10] sm:$0xff] }
 0x1aa   : > { %v1994_v17 = vpop.eup %1993 }
 0x1ab   : > { %v536_v19 = vmul.f32 %v1994_v17, %v1982_v34  ;;  %v554_v20 = vpack.c.b16 %v553_v16, %v552_v15  ;;  %v516_v23 = vpop.xlane.xlu2 %515  ;;  %v1996_v63 = vpop.eup %1995 }
 0x1ac   : > { %1997 = vrcp.f32 %v516_v23  ;;  %v539_v22 = vmul.f32 %v1996_v63, %v2306_v33 }
 0x1ad   : > { %v544_v25 = vpack.c.bf16 %v536_v19, %v536_v19  ;;  %1839 = vmatmul.msk.bf16.vlgmr.msrb.gmra.mxu0 %vm453_vm1, %v554_v20  ;;  %1999 = vrcp.f32 %v522_v55 }
 0x1ae   : > { %v547_v32 = vpack.c.bf16 %v539_v22, %v539_v22 }
 0x1af   : > { %v580_v29 = vunpack.c.l.b16 %v544_v25  ;;  %v311_v25 = vld [vmem:[%s2792_s3 + $0x18] sm:$0xff] }
 0x1b0   : > { %v609_v44 = vunpack.c.l.b16 %v547_v32 }
 0x1b1   : > { %v582_v31 = vpack.c.b16 %v581_v28, %v580_v29 }
 0x1b2   : > { %v1998_v26 = vpop.eup %1997 }
 0x1b3   : > { %v538_v30 = vmul.f32 %v1998_v26, %v2311_v40  ;;  %1844 = vmatmul.msk.bf16.vlgmr.msrb.gmra.mxu1 %vm453_vm1, %v582_v31  ;;  %v525_v34 = vpop.xlane.xlu2 %524  ;;  %v2000_v35 = vpop.eup %1999 }
 0x1b4   : > { %2001 = vrcp.f32 %v525_v34  ;;  %v665_v36 = vpop.permute.xlu1 %664  ;;  %v540_v42 = vmul.f32 %v2000_v35, %v2293_v13 }
 0x1b5   : > { %v546_v38 = vpack.c.bf16 %v538_v30, %v538_v30  ;;  %v670_v41 = vsel %vm334_vm0, %v665_v36, 0 }
 0x1b6   : > { %679 = vmatpush.bf16.xpose.msra.mxu0 %v670_v41  ;;  %v548_v54 = vpack.c.bf16 %v540_v42, %v540_v42 }
 0x1b7   : > { %v608_v33 = vunpack.c.l.b16 %v546_v38  ;;  %v711_v46 = vpop.permute.xlu0 %710 }
 0x1b8   : > { %v636_v57 = vunpack.c.l.b16 %v548_v54 }
 0x1b9   : > { %v610_v47 = vpack.c.b16 %v609_v44, %v608_v33 }
 0x1ba   : > { %v2002_v51 = vpop.eup %2001 }
 0x1bb   : > { %v541_v40 = vmul.f32 %v2002_v51, %v2326_v45  ;;  %1849 = vmatmul.msk.bf16.vlgmr.msrb.gmra.mxu2 %vm453_vm1, %v610_v47  ;;  %v735_v55 = vpop.permute.xlu2 %734 }
 0x1bc   : > { %v687_v62 = vpop.permute.xlu1 %686 }
 0x1bd   : > { %v549_v56 = vpack.c.bf16 %v541_v40, %v541_v40 }
 0x1bf   : > { %v637_v58 = vunpack.c.l.b16 %v549_v56  ;;  %v689_v59 = vpop.permute.xlu0 %688 }
 0x1c0   : > { %v694_v60 = vsel %vm334_vm0, %v689_v59, 0 }
 0x1c1   : > { %703 = vmatpush.bf16.xpose.msra.mxu1 %v694_v60  ;;  %v638_v61 = vpack.c.b16 %v637_v58, %v636_v57 }
 0x1c3   : > { %1854 = vmatmul.msk.bf16.vlgmr.msrb.gmra.mxu3 %vm453_vm1, %v638_v61  ;;  %v663_v13 = vpop.permute.xlu2 %662 }
 0x1c4   : > { %1855 = vmatmul.msk.bf16.vlgmr.msra.gmra.mxu0 %vm334_vm0, %v663_v13 }
 0x1c8   : > { %1856 = vmatmul.msk.bf16.vlgmr.msra.gmra.mxu1 %vm334_vm0, %v687_v62 }
 0x1cb   : > { %1857 = vmatmul.msk.bf16.vlgmr.msra.gmra.mxu2 %vm334_vm0, %v711_v46 }
 0x1d3   : > { %1858 = vmatmul.msk.bf16.vlgmr.msra.gmra.mxu3 %vm334_vm0, %v735_v55 }
 0x22a   : > { %v2372_v45 = vpop.f32.mrf.mxu0 }
 0x230   : > { %v2374_v4 = vpop.f32.mrf.mxu1 }
 0x232   : > { %v2376_v5 = vpop.f32.mrf.mxu0 }
 0x238   : > { %v2378_v6 = vpop.f32.mrf.mxu1 }
 0x23e   : > { %v2380_v7 = vpop.f32.mrf.mxu2 }
 0x241   : > { %v681_v15 = vpop.f32.mrf.mxu0 }
 0x242   : > { %v682_v16 = vadd.f32 %v681_v15, %v310_v12 }
 0x244   : > { %v758_v17 = vadd.f32 %v682_v16, %v2226_v14 }
 0x245   : > { %v705_v18 = vpop.f32.mrf.mxu1 }
 0x246   : > { %v706_v19 = vadd.f32 %v705_v18, %v310_v12  ;;  %v2386_v20 = vpop.f32.mrf.mxu2  ;;  %v2388_v23 = vpop.f32.mrf.mxu3  ;;  %v766_v63 = vsel %vm453_vm1, %v758_v17, -inf }
 0x247   : > { %767 = vmax.xlane.f32.xlu2 %v766_v63 }
 0x248   : > { %v760_v28 = vadd.f32 %v706_v19, %v2274_v48 }
 0x249   : > { %v683_v22 = vpop.f32.mrf.mxu0 }
 0x24a   : > { %v684_v29 = vadd.f32 %v683_v22, %v311_v25  ;;  %v772_v31 = vsel %vm453_vm1, %v760_v28, -inf }
 0x24b   : > { %773 = vmax.xlane.f32.xlu0 %v772_v31 }
 0x24c   : > { %v759_v26 = vadd.f32 %v684_v29, %v2246_v27 }
 0x24d   : > { %v707_v32 = vpop.f32.mrf.mxu1 }
 0x24e   : > { %v708_v30 = vadd.f32 %v707_v32, %v311_v25  ;;  %v2397_v34 = vpop.f32.mrf.mxu3  ;;  %v729_v35 = vpop.f32.mrf.mxu2  ;;  %v769_v36 = vsel %vm453_vm1, %v759_v26, -inf }
 0x24f   : > { %v730_v38 = vadd.f32 %v729_v35, %v310_v12  ;;  %770 = vmax.xlane.f32.xlu1 %v769_v36 }
 0x250   : > { %v761_v41 = vadd.f32 %v708_v30, %v2260_v37 }
 0x251   : > { %v762_v42 = vadd.f32 %v730_v38, %v2236_v21 }
 0x252   : > { %v775_v44 = vsel %vm453_vm1, %v761_v41, -inf }
 0x253   : > { %776 = vmax.xlane.f32.xlu2 %v775_v44  ;;  %v778_v33 = vsel %vm453_vm1, %v762_v42, -inf }
 0x254   : > { %779 = vmax.xlane.f32.xlu0 %v778_v33 }
 0x256   : > { %v731_v46 = vpop.f32.mrf.mxu2  ;;  %v753_v47 = vpop.f32.mrf.mxu3 }
 0x257   : > { %v732_v51 = vadd.f32 %v731_v46, %v311_v25  ;;  %v754_v54 = vadd.f32 %v753_v47, %v310_v12 }
 0x259   : > { %v764_v40 = vadd.f32 %v754_v54, %v2241_v24  ;;  %v763_v55 = vadd.f32 %v732_v51, %v2265_v39 }
 0x25b   : > { %v784_v56 = vsel %vm453_vm1, %v764_v40, -inf  ;;  %v781_v57 = vsel %vm453_vm1, %v763_v55, -inf }
 0x25c   : > { %785 = vmax.xlane.f32.xlu1 %v784_v56  ;;  %782 = vmax.xlane.f32.xlu2 %v781_v57 }
 0x25e   : > { %v755_v58 = vpop.f32.mrf.mxu3 }
 0x25f   : > { %v756_v59 = vadd.f32 %v755_v58, %v311_v25 }
 0x261   : > { %v765_v60 = vadd.f32 %v756_v59, %v2279_v49 }
 0x263   : > { %v787_v61 = vsel %vm453_vm1, %v765_v60, -inf }
 0x264   : > { %788 = vmax.xlane.f32.xlu0 %v787_v61 }
 0x274   : > { %942 = vrot.lane.b32.xlu2 %v2322_v43, %s2122_s26 }
 0x275   : > { %1036 = vrot.lane.b32.xlu1 %v2181_v2, %s2123_s10 }
 0x278   : > { %917 = vrot.lane.b32.xlu0 %v2331_v50, %s2122_s26 }
 0x27c   : > { %1012 = vrot.lane.b32.xlu2 %v2178_v1, %s2123_s10 }
 0x284   : > { %867 = vrot.lane.b32.xlu2 %v2348_v52, %s2122_s26 }
 0x28c   : > { %892 = vrot.lane.b32.xlu2 %v2352_v53, %s2122_s26 }
 0x294   : > { %1010 = vrot.lane.b32.xlu2 %v2204_v9, %s2123_s10 }
 0x2ba   : > { %v768_v13 = vpop.xlane.xlu2 %767 }
 0x2bb   : > { %v790_v62 = vsub.f32 %v758_v17, %v768_v13 }
 0x2bd   : > { %v798_v12 = vmul.f32 1.442695, %v790_v62 }
 0x2be   : > { %v774_v15 = vpop.xlane.xlu0 %773 }
 0x2bf   : > { %2003 = vpow2.f32 %v798_v12  ;;  %v792_v16 = vsub.f32 %v760_v28, %v774_v15 }
 0x2c1   : > { %v802_v18 = vmul.f32 1.442695, %v792_v16 }
 0x2c2   : > { %v771_v19 = vpop.xlane.xlu1 %770 }
 0x2c3   : > { %2005 = vpow2.f32 %v802_v18  ;;  %v791_v63 = vsub.f32 %v759_v26, %v771_v19 }
 0x2c5   : > { %v2424_v25 = vpop.eup %2003  ;;  %v800_v22 = vmul.f32 1.442695, %v791_v63 }
 0x2c6   : > { %v777_v29 = vpop.xlane.xlu2 %776  ;;  %v814_v31 = vsel %vm453_vm1, %v2424_v25, 0.0 }
 0x2c7   : > { %2007 = vpow2.f32 %v800_v22  ;;  %v793_v32 = vsub.f32 %v761_v41, %v777_v29  ;;  %815 = vadd.xlane.f32.xlu1 %v814_v31  ;;  %v780_v30 = vpop.xlane.xlu0 %779 }
 0x2c8   : > { %v794_v36 = vsub.f32 %v762_v42, %v780_v30 }
 0x2c9   : > { %v2428_v17 = vpop.eup %2005  ;;  %v804_v35 = vmul.f32 1.442695, %v793_v32 }
 0x2ca   : > { %v820_v28 = vsel %vm453_vm1, %v2428_v17, 0.0  ;;  %v806_v44 = vmul.f32 1.442695, %v794_v36 }
 0x2cb   : > { %821 = vadd.xlane.f32.xlu0 %v820_v28  ;;  %2009 = vpow2.f32 %v804_v35 }
 0x2cc   : > { %2011 = vpow2.f32 %v806_v44 }
 0x2cd   : > { %v2432_v26 = vpop.eup %2007 }
 0x2ce   : > { %v817_v38 = vsel %vm453_vm1, %v2432_v26, 0.0 }
 0x2cf   : > { %v786_v33 = vpop.xlane.xlu1 %785  ;;  %818 = vadd.xlane.f32.xlu1 %v817_v38  ;;  %v783_v41 = vpop.xlane.xlu2 %782 }
 0x2d0   : > { %v796_v46 = vsub.f32 %v764_v40, %v786_v33  ;;  %v795_v47 = vsub.f32 %v763_v55, %v783_v41 }
 0x2d1   : > { %v2436_v56 = vpop.eup %2009 }
 0x2d2   : > { %v810_v51 = vmul.f32 1.442695, %v796_v46  ;;  %v808_v54 = vmul.f32 1.442695, %v795_v47  ;;  %v823_v42 = vsel %vm453_vm1, %v2436_v56, 0.0  ;;  %v2440_v59 = vpop.eup %2011 }
 0x2d3   : > { %v826_v12 = vsel %vm453_vm1, %v2440_v59, 0.0 }
 0x2d4   : > { %2013 = vpow2.f32 %v810_v51 }
 0x2d5   : > { %2015 = vpow2.f32 %v808_v54 }
 0x2d7   : > { %v789_v57 = vpop.xlane.xlu0 %788  ;;  %824 = vadd.xlane.f32.xlu1 %v823_v42 }
 0x2d8   : > { %v797_v58 = vsub.f32 %v765_v60, %v789_v57  ;;  %v943_v60 = vpop.permute.xlu2 %942 }
 0x2d9   : > { %955 = vmatpush.bf16.msrb.mxu3 %v943_v60 }
 0x2da   : > { %v2442_v61 = vpop.eup %2013  ;;  %v812_v13 = vmul.f32 1.442695, %v797_v58 }
 0x2db   : > { %v2444_v40 = vpop.eup %2015  ;;  %v832_v55 = vsel %vm453_vm1, %v2442_v61, 0.0 }
 0x2dc   : > { %833 = vadd.xlane.f32.xlu2 %v832_v55  ;;  %v829_v62 = vsel %vm453_vm1, %v2444_v40, 0.0  ;;  %2017 = vpow2.f32 %v812_v13 }
 0x2dd   : > { %830 = vadd.xlane.f32.xlu0 %v829_v62 }
 0x2df   : > { %827 = vadd.xlane.f32.xlu1 %v826_v12 }
 0x2e0   : > { %v1013_v18 = vpop.permute.xlu2 %1012 }
 0x2e1   : > { %v1018_v63 = vsel %vm334_vm0, %v1013_v18, 0 }
 0x2e2   : > { %v2452_v15 = vpop.eup %2017 }
 0x2e3   : > { %v835_v16 = vsel %vm453_vm1, %v2452_v15, 0.0 }
 0x2e7   : > { %836 = vadd.xlane.f32.xlu1 %v835_v16  ;;  %v1037_v19 = vpop.permute.xlu1 %1036 }
 0x2e8   : > { %v1042_v22 = vsel %vm334_vm0, %v1037_v19, 0  ;;  %v868_v31 = vpop.permute.xlu2 %867 }
 0x2e9   : > { %1051 = vmatpush.bf16.xpose.msra.mxu3 %v1042_v22  ;;  %880 = vmatpush.bf16.msrb.mxu0 %v868_v31 }
 0x2ea   : > { %v918_v29 = vpop.permute.xlu0 %917 }
 0x2eb   : > { %930 = vmatpush.bf16.msrb.mxu2 %v918_v29 }
 0x2ef   : > { %1027 = vmatpush.bf16.xpose.msra.mxu2 %v1018_v63 }
 0x2f0   : > { %v893_v32 = vpop.permute.xlu2 %892 }
 0x2f1   : > { %988 = vrot.lane.b32.xlu0 %v2184_v3, %s2123_s10  ;;  %905 = vmatpush.bf16.msrb.mxu1 %v893_v32 }
 0x2f4   : > { %964 = vrot.lane.b32.xlu2 %v2175_v0, %s2123_s10 }
 0x2f8   : > { %v1011_v30 = vpop.permute.xlu2 %1010 }
 0x2f9   : > { %1167 = vrot.lane.b32.xlu0 %v2348_v52, %s2123_s10 }
 0x2fc   : > { %986 = vrot.lane.b32.xlu2 %v2210_v11, %s2123_s10 }
 0x300   : > { %1034 = vrot.lane.b32.xlu1 %v2207_v10, %s2123_s10 }
 0x301   : > { %1312 = vrot.lane.b32.xlu0 %v2178_v1, %s2124_s11 }
 0x304   : > { %1217 = vrot.lane.b32.xlu2 %v2331_v50, %s2123_s10 }
 0x308   : > { %962 = vrot.lane.b32.xlu1 %v2201_v8, %s2123_s10 }
 0x30c   : > { %1192 = vrot.lane.b32.xlu2 %v2352_v53, %s2123_s10 }
 0x310   : > { %1242 = vrot.lane.b32.xlu1 %v2322_v43, %s2123_s10 }
 0x318   : > { %1336 = vrot.lane.b32.xlu1 %v2181_v2, %s2124_s11 }
 0x33a   : > { %v816_v3 = vpop.xlane.xlu1 %815 }
 0x33b   : > { %2019 = vrcp.f32 %v816_v3 }
 0x33e   : > { %v822_v11 = vpop.xlane.xlu0 %821 }
 0x341   : > { %v2020_v1 = vpop.eup %2019 }
 0x342   : > { %v819_v52 = vpop.xlane.xlu1 %818  ;;  %v846_v50 = vmul.f32 %v2020_v1, %v2424_v25 }
 0x343   : > { %2021 = vrcp.f32 %v819_v52 }
 0x344   : > { %2023 = vrcp.f32 %v822_v11  ;;  %v854_v35 = vpack.c.bf16 %v846_v50, %v846_v50 }
 0x346   : > { %v864_v38 = vunpack.c.l.b16 %v854_v35 }
 0x349   : > { %v2022_v8 = vpop.eup %2021 }
 0x34a   : > { %v847_v53 = vmul.f32 %v2022_v8, %v2432_v26  ;;  %v825_v28 = vpop.xlane.xlu1 %824  ;;  %v2024_v36 = vpop.eup %2023 }
 0x34b   : > { %2025 = vrcp.f32 %v825_v28  ;;  %v848_v2 = vmul.f32 %v2024_v36, %v2428_v17 }
 0x34c   : > { %v855_v43 = vpack.c.bf16 %v847_v53, %v847_v53 }
 0x34d   : > { %v856_v51 = vpack.c.bf16 %v848_v2, %v848_v2 }
 0x34e   : > { %v865_v44 = vunpack.c.l.b16 %v855_v43 }
 0x34f   : > { %v834_v33 = vpop.xlane.xlu2 %833  ;;  %v889_v42 = vunpack.c.l.b16 %v856_v51 }
 0x350   : > { %v866_v41 = vpack.c.b16 %v865_v44, %v864_v38  ;;  %v831_v46 = vpop.xlane.xlu0 %830  ;;  %v312_v44 = vld [vmem:[%s2792_s3 + $0x20] sm:$0xff] }
 0x351   : > { %v2026_v47 = vpop.eup %2025  ;;  %2027 = vrcp.f32 %v831_v46 }
 0x352   : > { %v849_v25 = vmul.f32 %v2026_v47, %v2436_v56  ;;  %v828_v54 = vpop.xlane.xlu1 %827  ;;  %1859 = vmatmul.msk.bf16.vlgmr.msrb.gmra.mxu0 %vm453_vm1, %v866_v41 }
 0x353   : > { %2029 = vrcp.f32 %v828_v54 }
 0x354   : > { %v857_v26 = vpack.c.bf16 %v849_v25, %v849_v25  ;;  %2031 = vrcp.f32 %v834_v33 }
 0x356   : > { %v890_v57 = vunpack.c.l.b16 %v857_v26 }
 0x357   : > { %v2028_v58 = vpop.eup %2027  ;;  %v965_v13 = vpop.permute.xlu2 %964 }
 0x358   : > { %v891_v17 = vpack.c.b16 %v890_v57, %v889_v42  ;;  %v851_v55 = vmul.f32 %v2028_v58, %v2444_v40  ;;  %v970_v62 = vsel %vm334_vm0, %v965_v13, 0 }
 0x359   : > { %v2030_v12 = vpop.eup %2029  ;;  %979 = vmatpush.bf16.xpose.msra.mxu0 %v970_v62 }
 0x35a   : > { %v859_v60 = vpack.c.bf16 %v851_v55, %v851_v55  ;;  %v850_v56 = vmul.f32 %v2030_v12, %v2440_v59  ;;  %v837_v16 = vpop.xlane.xlu1 %836  ;;  %1860 = vmatmul.msk.bf16.vlgmr.msrb.gmra.mxu1 %vm453_vm1, %v891_v17  ;;  %v2032_v18 = vpop.eup %2031  ;;  %v313_v55 = vld [vmem:[%s2792_s3 + $0x28] sm:$0xff] }
 0x35b   : > { %2033 = vrcp.f32 %v837_v16  ;;  %v852_v22 = vmul.f32 %v2032_v18, %v2442_v61 }
 0x35c   : > { %v858_v19 = vpack.c.bf16 %v850_v56, %v850_v56  ;;  %v915_v63 = vunpack.c.l.b16 %v859_v60 }
 0x35d   : > { %v860_v40 = vpack.c.bf16 %v852_v22, %v852_v22 }
 0x35e   : > { %v914_v29 = vunpack.c.l.b16 %v858_v19 }
 0x35f   : > { %v939_v1 = vunpack.c.l.b16 %v860_v40  ;;  %v987_v35 = vpop.permute.xlu2 %986 }
 0x360   : > { %v916_v31 = vpack.c.b16 %v915_v63, %v914_v29 }
 0x361   : > { %v2034_v32 = vpop.eup %2033 }
 0x362   : > { %v853_v3 = vmul.f32 %v2034_v32, %v2452_v15  ;;  %1861 = vmatmul.msk.bf16.vlgmr.msrb.gmra.mxu2 %vm453_vm1, %v916_v31 }
 0x363   : > { %v989_v11 = vpop.permute.xlu0 %988 }
 0x364   : > { %v861_v52 = vpack.c.bf16 %v853_v3, %v853_v3  ;;  %v994_v59 = vsel %vm334_vm0, %v989_v11, 0 }
 0x365   : > { %1003 = vmatpush.bf16.xpose.msra.mxu1 %v994_v59 }
 0x366   : > { %v940_v50 = vunpack.c.l.b16 %v861_v52 }
 0x367   : > { %v1218_v57 = vpop.permute.xlu2 %1217 }
 0x368   : > { %v941_v8 = vpack.c.b16 %v940_v50, %v939_v1  ;;  %1230 = vmatpush.bf16.msrb.mxu2 %v1218_v57 }
 0x36a   : > { %1862 = vmatmul.msk.bf16.vlgmr.msrb.gmra.mxu3 %vm453_vm1, %v941_v8 }
 0x36c   : > { %1864 = vmatmul.msk.bf16.vlgmr.msra.gmra.mxu1 %vm334_vm0, %v987_v35  ;;  %v1168_v35 = vpop.permute.xlu0 %1167 }
 0x36d   : > { %1180 = vmatpush.bf16.msrb.mxu0 %v1168_v35 }
 0x36f   : > { %v1193_v18 = vpop.permute.xlu2 %1192 }
 0x370   : > { %1205 = vmatpush.bf16.msrb.mxu1 %v1193_v18 }
 0x372   : > { %v1035_v61 = vpop.permute.xlu1 %1034  ;;  %1865 = vmatmul.msk.bf16.vlgmr.msra.gmra.mxu2 %vm334_vm0, %v1011_v30 }
 0x37a   : > { %v963_v53 = vpop.permute.xlu1 %962  ;;  %1866 = vmatmul.msk.bf16.vlgmr.msra.gmra.mxu3 %vm334_vm0, %v1035_v61 }
 0x37b   : > { %1863 = vmatmul.msk.bf16.vlgmr.msra.gmra.mxu0 %vm334_vm0, %v963_v53 }
 0x3cf   : > { %v2498_v15 = vpop.f32.mrf.mxu0 }
 0x3d7   : > { %v2500_v28 = vpop.f32.mrf.mxu0  ;;  %v2502_v36 = vpop.f32.mrf.mxu1 }
 0x3d8   : > { %v1911_v43 = vpack.i.bf16 %v2500_v28, %v2498_v15 }
 0x3df   : > { %v2506_v38 = vpop.f32.mrf.mxu1 }
 0x3e0   : > { %v1916_v2 = vpack.i.bf16 %v2506_v38, %v2502_v36 }
 0x3e5   : > { %v2510_v30 = vpop.f32.mrf.mxu2 }
 0x3e9   : > { %v1005_v33 = vpop.f32.mrf.mxu1 }
 0x3ea   : > { %v1006_v41 = vadd.f32 %v1005_v33, %v312_v44 }
 0x3ec   : > { %v2516_v46 = vadd.f32 %v1006_v41, %v2274_v48 }
 0x3ed   : > { %v2518_v47 = vpop.f32.mrf.mxu2  ;;  %v2520_v51 = vpop.f32.mrf.mxu3 }
 0x3ee   : > { %v1926_v25 = vpack.i.bf16 %v2518_v47, %v2510_v30  ;;  %v1072_v54 = vsel %vm453_vm1, %v2516_v46, -inf }
 0x3ef   : > { %1073 = vmax.xlane.f32.xlu0 %v1072_v54 }
 0x3f1   : > { %v1007_v58 = vpop.f32.mrf.mxu1 }
 0x3f2   : > { %v1008_v12 = vadd.f32 %v1007_v58, %v313_v55 }
 0x3f4   : > { %v1061_v19 = vadd.f32 %v1008_v12, %v2260_v37 }
 0x3f5   : > { %v2526_v26 = vpop.f32.mrf.mxu3  ;;  %v1029_v48 = vpop.f32.mrf.mxu2 }
 0x3f6   : > { %v1936_v42 = vpack.i.bf16 %v2526_v26, %v2520_v51  ;;  %v1075_v40 = vsel %vm453_vm1, %v1061_v19, -inf  ;;  %v1030_v3 = vadd.f32 %v1029_v48, %v312_v44 }
 0x3f8   : > { %v981_v13 = vpop.f32.mrf.mxu0  ;;  %v1062_v37 = vadd.f32 %v1030_v3, %v2236_v21 }
 0x3f9   : > { %v982_v17 = vadd.f32 %v981_v13, %v312_v44 }
 0x3fa   : > { %v1078_v50 = vsel %vm453_vm1, %v1062_v37, -inf }
 0x3fb   : > { %v1058_v62 = vadd.f32 %v982_v17, %v2226_v14 }
 0x3fd   : > { %v1053_v60 = vpop.f32.mrf.mxu3  ;;  %v1066_v56 = vsel %vm453_vm1, %v1058_v62, -inf  ;;  %v1031_v31 = vpop.f32.mrf.mxu2 }
 0x3fe   : > { %v1054_v16 = vadd.f32 %v1053_v60, %v312_v44  ;;  %1067 = vmax.xlane.f32.xlu2 %v1066_v56  ;;  %v1032_v11 = vadd.f32 %v1031_v31, %v313_v55  ;;  %v1313_v44 = vpop.permute.xlu0 %1312 }
 0x3ff   : > { %v1318_v33 = vsel %vm334_vm0, %v1313_v44, 0 }
 0x400   : > { %v983_v63 = vpop.f32.mrf.mxu0  ;;  %v1064_v22 = vadd.f32 %v1054_v16, %v2241_v24  ;;  %v1063_v59 = vadd.f32 %v1032_v11, %v2265_v39  ;;  %1327 = vmatpush.bf16.xpose.msra.mxu2 %v1318_v33  ;;  %v2100_v33 = vld [vmem:[%s2172_s24 + $0x8] sm:$0xff]  ;;  %s2126_s24 = smov 8  }
 0x401   : > { %v984_v29 = vadd.f32 %v983_v63, %v313_v55 }
 0x402   : > { %v1084_v32 = vsel %vm453_vm1, %v1064_v22, -inf  ;;  %v1081_v8 = vsel %vm453_vm1, %v1063_v59, -inf }
 0x403   : > { %1085 = vmax.xlane.f32.xlu0 %v1084_v32  ;;  %v1059_v14 = vadd.f32 %v984_v29, %v2246_v27  ;;  %v1243_v27 = vpop.permute.xlu1 %1242 }
 0x404   : > { %1255 = vmatpush.bf16.msrb.mxu3 %v1243_v27 }
 0x405   : > { %v1069_v52 = vsel %vm453_vm1, %v1059_v14, -inf  ;;  %v1055_v24 = vpop.f32.mrf.mxu3 }
 0x406   : > { %1070 = vmax.xlane.f32.xlu1 %v1069_v52  ;;  %1076 = vmax.xlane.f32.xlu2 %v1075_v40  ;;  %v1056_v1 = vadd.f32 %v1055_v24, %v313_v55 }
 0x408   : > { %v1065_v61 = vadd.f32 %v1056_v1, %v2279_v49 }
 0x40a   : > { %v1087_v53 = vsel %vm453_vm1, %v1065_v61, -inf }
 0x40b   : > { %v1337_v21 = vpop.permute.xlu1 %1336 }
 0x40c   : > { %v1342_v39 = vsel %vm334_vm0, %v1337_v21, 0 }
 0x40d   : > { %1351 = vmatpush.bf16.xpose.msra.mxu3 %v1342_v39  ;;  %v2099_v39 = vld [vmem:[%s2198_s27] sm:$0xff] }
 0x40e   : > { %1079 = vmax.xlane.f32.xlu1 %v1078_v50  ;;  %1082 = vmax.xlane.f32.xlu2 %v1081_v8 }
 0x416   : > { %1088 = vmax.xlane.f32.xlu1 %v1087_v53 }
 0x417   : > { %1334 = vrot.lane.b32.xlu0 %v2207_v10, %s2124_s11 }
 0x426   : > { %1310 = vrot.lane.b32.xlu2 %v2204_v9, %s2124_s11 }
 0x42f   : > { %1264 = vrot.lane.b32.xlu1 %v2175_v0, %s2124_s11 }
 0x462   : > { %v1074_v49 = vpop.xlane.xlu0 %1073 }
 0x463   : > { %v1092_v41 = vsub.f32 %v2516_v46, %v1074_v49  ;;  %v2101_v49 = vld [vmem:[%s2198_s27 + $0x8] sm:$0xff] }
 0x465   : > { %v1102_v54 = vmul.f32 1.442695, %v1092_v41 }
 0x467   : > { %2035 = vpow2.f32 %v1102_v54 }
 0x46d   : > { %v2556_v57 = vpop.eup %2035 }
 0x46e   : > { %v1120_v10 = vsel %vm453_vm1, %v2556_v57, 0.0 }
 0x46f   : > { %1121 = vadd.xlane.f32.xlu1 %v1120_v10 }
 0x471   : > { %v1068_v58 = vpop.xlane.xlu2 %1067 }
 0x472   : > { %v1090_v48 = vsub.f32 %v1058_v62, %v1068_v58 }
 0x474   : > { %v1098_v13 = vmul.f32 1.442695, %v1090_v48 }
 0x476   : > { %2037 = vpow2.f32 %v1098_v13  ;;  %v1086_v17 = vpop.xlane.xlu0 %1085 }
 0x477   : > { %v1096_v56 = vsub.f32 %v1064_v22, %v1086_v17 }
 0x479   : > { %v1071_v9 = vpop.xlane.xlu1 %1070  ;;  %v1077_v55 = vpop.xlane.xlu2 %1076  ;;  %v1110_v63 = vmul.f32 1.442695, %v1096_v56 }
 0x47a   : > { %v1091_v12 = vsub.f32 %v1059_v14, %v1071_v9  ;;  %v1093_v0 = vsub.f32 %v1061_v19, %v1077_v55 }
 0x47c   : > { %v2038_v60 = vpop.eup %2037  ;;  %v1100_v46 = vmul.f32 1.442695, %v1091_v12  ;;  %v1104_v16 = vmul.f32 1.442695, %v1093_v0 }
 0x47d   : > { %v1114_v18 = vsel %vm453_vm1, %v2038_v60, 0.0 }
 0x47e   : > { %2039 = vpow2.f32 %v1100_v46  ;;  %1115 = vadd.xlane.f32.xlu0 %v1114_v18 }
 0x47f   : > { %2041 = vpow2.f32 %v1104_v16 }
 0x480   : > { %2043 = vpow2.f32 %v1110_v63 }
 0x481   : > { %v1080_v29 = vpop.xlane.xlu1 %1079  ;;  %v1083_v31 = vpop.xlane.xlu2 %1082 }
 0x482   : > { %v1094_v62 = vsub.f32 %v1062_v37, %v1080_v29  ;;  %v1095_v32 = vsub.f32 %v1063_v59, %v1083_v31 }
 0x484   : > { %v2040_v40 = vpop.eup %2039  ;;  %v1106_v3 = vmul.f32 1.442695, %v1094_v62  ;;  %v1108_v11 = vmul.f32 1.442695, %v1095_v32 }
 0x485   : > { %v2042_v14 = vpop.eup %2041  ;;  %v1117_v19 = vsel %vm453_vm1, %v2040_v40, 0.0 }
 0x486   : > { %2045 = vpow2.f32 %v1106_v3  ;;  %1118 = vadd.xlane.f32.xlu2 %v1117_v19  ;;  %v1123_v22 = vsel %vm453_vm1, %v2042_v14, 0.0  ;;  %v2563_v24 = vpop.eup %2043 }
 0x487   : > { %2047 = vpow2.f32 %v1108_v11  ;;  %1124 = vadd.xlane.f32.xlu0 %v1123_v22  ;;  %v1132_v27 = vsel %vm453_vm1, %v2563_v24, 0.0 }
 0x489   : > { %v1089_v52 = vpop.xlane.xlu1 %1088  ;;  %v2580_v41 = vpop.permute.xlu0 %1334 }
 0x48a   : > { %v1097_v1 = vsub.f32 %v1065_v61, %v1089_v52  ;;  %v2582_v54 = vpop.permute.xlu2 %1310 }
 0x48c   : > { %v2046_v37 = vpop.eup %2045  ;;  %v1112_v59 = vmul.f32 1.442695, %v1097_v1 }
 0x48d   : > { %v2048_v50 = vpop.eup %2047  ;;  %v1126_v8 = vsel %vm453_vm1, %v2046_v37, 0.0 }
 0x48e   : > { %2049 = vpow2.f32 %v1112_v59  ;;  %1127 = vadd.xlane.f32.xlu1 %v1126_v8  ;;  %1133 = vadd.xlane.f32.xlu2 %v1132_v27  ;;  %v1129_v35 = vsel %vm453_vm1, %v2048_v50, 0.0 }
 0x48f   : > { %1130 = vadd.xlane.f32.xlu0 %v1129_v35 }
 0x494   : > { %v2569_v53 = vpop.eup %2049 }
 0x495   : > { %v1135_v61 = vsel %vm453_vm1, %v2569_v53, 0.0 }
 0x496   : > { %1136 = vadd.xlane.f32.xlu1 %v1135_v61 }
 0x4a1   : > { %v1265_v21 = vpop.permute.xlu1 %1264 }
 0x4a2   : > { %v1270_v44 = vsel %vm334_vm0, %v1265_v21, 0 }
 0x4a3   : > { %1262 = vrot.lane.b32.xlu0 %v2099_v39, %s2124_s11  ;;  %1279 = vmatpush.bf16.xpose.msra.mxu0 %v1270_v44 }
 0x4a6   : > { %1288 = vrot.lane.b32.xlu2 %v2100_v33, %s2124_s11 }
 0x4af   : > { %1286 = vrot.lane.b32.xlu1 %v2101_v49, %s2124_s11 }
 0x4e2   : > { %v1122_v58 = vpop.xlane.xlu1 %1121 }
 0x4f1   : > { %v1116_v10 = vpop.xlane.xlu0 %1115 }
 0x4f2   : > { %2051 = vrcp.f32 %v1116_v10 }
 0x4f3   : > { %2053 = vrcp.f32 %v1122_v58 }
 0x4f8   : > { %v2052_v13 = vpop.eup %2051 }
 0x4f9   : > { %v1119_v48 = vpop.xlane.xlu2 %1118  ;;  %v2054_v9 = vpop.eup %2053  ;;  %v1146_v55 = vmul.f32 %v2052_v13, %v2038_v60 }
 0x4fa   : > { %v1125_v17 = vpop.xlane.xlu0 %1124  ;;  %2055 = vrcp.f32 %v1119_v48  ;;  %v1148_v12 = vmul.f32 %v2054_v9, %v2556_v57 }
 0x4fb   : > { %2057 = vrcp.f32 %v1125_v17  ;;  %v1154_v46 = vpack.c.bf16 %v1146_v55, %v1146_v55 }
 0x4fc   : > { %v1156_v29 = vpack.c.bf16 %v1148_v12, %v1148_v12 }
 0x4fd   : > { %v1164_v11 = vunpack.c.l.b16 %v1154_v46 }
 0x4fe   : > { %v1189_v22 = vunpack.c.l.b16 %v1156_v29  ;;  %v2102_v29 = vld [vmem:[%s2793_s4] sm:$0xff] }
 0x500   : > { %v2056_v0 = vpop.eup %2055 }
 0x501   : > { %v2058_v56 = vpop.eup %2057  ;;  %v1147_v16 = vmul.f32 %v2056_v0, %v2040_v40  ;;  %v1128_v18 = vpop.xlane.xlu1 %1127 }
 0x502   : > { %v1134_v63 = vpop.xlane.xlu2 %1133  ;;  %v1149_v31 = vmul.f32 %v2058_v56, %v2042_v14  ;;  %2059 = vrcp.f32 %v1128_v18  ;;  %v1131_v62 = vpop.xlane.xlu0 %1130 }
 0x503   : > { %v1155_v32 = vpack.c.bf16 %v1147_v16, %v1147_v16  ;;  %2061 = vrcp.f32 %v1131_v62 }
 0x504   : > { %v1157_v3 = vpack.c.bf16 %v1149_v31, %v1149_v31  ;;  %2063 = vrcp.f32 %v1134_v63 }
 0x505   : > { %v1165_v19 = vunpack.c.l.b16 %v1155_v32 }
 0x506   : > { %v1190_v60 = vunpack.c.l.b16 %v1157_v3  ;;  %v315_v3 = vld [vmem:[%s2792_s3 + $0x38] sm:$0xff] }
 0x507   : > { %v1166_v52 = vpack.c.b16 %v1165_v19, %v1164_v11 }
 0x508   : > { %v2060_v57 = vpop.eup %2059  ;;  %v1191_v1 = vpack.c.b16 %v1190_v60, %v1189_v22 }
 0x509   : > { %v2062_v59 = vpop.eup %2061  ;;  %v1150_v8 = vmul.f32 %v2060_v57, %v2046_v37  ;;  %v1137_v40 = vpop.xlane.xlu1 %1136  ;;  %1867 = vmatmul.msk.bf16.vlgmr.msrb.gmra.mxu0 %vm453_vm1, %v1166_v52  ;;  %v2103_v52 = vld [vmem:[%s2793_s4 + $0x8] sm:$0xff] }
 0x50a   : > { %v1289_v27 = vpop.permute.xlu2 %1288  ;;  %v2064_v14 = vpop.eup %2063  ;;  %v1151_v35 = vmul.f32 %v2062_v59, %v2048_v50  ;;  %2065 = vrcp.f32 %v1137_v40  ;;  %1868 = vmatmul.msk.bf16.vlgmr.msrb.gmra.mxu1 %vm453_vm1, %v1191_v1 }
 0x50b   : > { %v1294_v61 = vsel %vm334_vm0, %v1289_v27, 0  ;;  %v1158_v21 = vpack.c.bf16 %v1150_v8, %v1150_v8  ;;  %v1152_v33 = vmul.f32 %v2064_v14, %v2563_v24 }
 0x50c   : > { %1303 = vmatpush.bf16.xpose.msra.mxu1 %v1294_v61  ;;  %v1159_v44 = vpack.c.bf16 %v1151_v35, %v1151_v35  ;;  %v2104_v35 = vld [vmem:[%s2793_s4 + $0x20] sm:$0xff] }
 0x50d   : > { %v1214_v39 = vunpack.c.l.b16 %v1158_v21  ;;  %v1160_v58 = vpack.c.bf16 %v1152_v33, %v1152_v33 }
 0x50e   : > { %v1215_v49 = vunpack.c.l.b16 %v1159_v44 }
 0x50f   : > { %v1239_v13 = vunpack.c.l.b16 %v1160_v58 }
 0x510   : > { %v2066_v10 = vpop.eup %2065  ;;  %v1216_v37 = vpack.c.b16 %v1215_v49, %v1214_v39 }
 0x511   : > { %v1153_v48 = vmul.f32 %v2066_v10, %v2569_v53 }
 0x512   : > { %1869 = vmatmul.msk.bf16.vlgmr.msrb.gmra.mxu2 %vm453_vm1, %v1216_v37  ;;  %v2105_v37 = vld [vmem:[%s2793_s4 + $0x30] sm:$0xff] }
 0x513   : > { %v1161_v50 = vpack.c.bf16 %v1153_v48, %v1153_v48  ;;  %v2106_v48 = vld [vmem:[%s2793_s4 + $0x28] sm:$0xff] }
 0x515   : > { %v1240_v17 = vunpack.c.l.b16 %v1161_v50  ;;  %v1263_v9 = vpop.permute.xlu0 %1262 }
 0x517   : > { %v1241_v55 = vpack.c.b16 %v1240_v17, %v1239_v13 }
 0x519   : > { %1870 = vmatmul.msk.bf16.vlgmr.msrb.gmra.mxu3 %vm453_vm1, %v1241_v55  ;;  %1871 = vmatmul.msk.bf16.vlgmr.msra.gmra.mxu0 %vm334_vm0, %v1263_v9 }
 0x521   : > { %v1287_v12 = vpop.permute.xlu1 %1286 }
 0x522   : > { %1873 = vmatmul.msk.bf16.vlgmr.msra.gmra.mxu2 %vm334_vm0, %v2582_v54  ;;  %1872 = vmatmul.msk.bf16.vlgmr.msra.gmra.mxu1 %vm334_vm0, %v1287_v12  ;;  %v314_v54 = vld [vmem:[%s2792_s3 + $0x30] sm:$0xff]  ;;  %v2107_v12 = vld [vmem:[%s2793_s4 + $0x18] sm:$0xff] }
 0x529   : > { %1874 = vmatmul.msk.bf16.vlgmr.msra.gmra.mxu3 %vm334_vm0, %v2580_v41 }
 0x586   : > { %v2598_v24 = vpop.f32.mrf.mxu0 }
 0x587   : > { %v2600_v53 = vpop.f32.mrf.mxu1 }
 0x58e   : > { %v2602_v0 = vpop.f32.mrf.mxu0 }
 0x58f   : > { %v1921_v56 = vpack.i.bf16 %v2602_v0, %v2598_v24  ;;  %v2606_v46 = vpop.f32.mrf.mxu1 }
 0x590   : > { %v1931_v16 = vpack.i.bf16 %v2606_v46, %v2600_v53 }
 0x595   : > { %v2613_v18 = vpop.f32.mrf.mxu2 }
 0x596   : > { %v1281_v41 = vpop.f32.mrf.mxu0 }
 0x597   : > { %v1282_v63 = vadd.f32 %v1281_v41, %v314_v54 }
 0x599   : > { %v1358_v31 = vadd.f32 %v2102_v29, %v1282_v63 }
 0x59b   : > { %v1366_v62 = vsel %vm453_vm1, %v1358_v31, -inf }
 0x59c   : > { %1367 = vmax.xlane.f32.xlu0 %v1366_v62  ;;  %v2619_v32 = vpop.f32.mrf.mxu3  ;;  %v2108_v62 = vld [vmem:[%s2793_s4 + $0x38] sm:$0xff] }
 0x59d   : > { %v2624_v11 = vpop.f32.mrf.mxu2 }
 0x59e   : > { %v1941_v19 = vpack.i.bf16 %v2624_v11, %v2613_v18  ;;  %v1283_v22 = vpop.f32.mrf.mxu0 }
 0x59f   : > { %v1284_v60 = vadd.f32 %v1283_v22, %v315_v3  ;;  %v1305_v59 = vpop.f32.mrf.mxu1 }
 0x5a0   : > { %v1306_v29 = vadd.f32 %v1305_v59, %v314_v54 }
 0x5a1   : > { %v1359_v57 = vadd.f32 %v2103_v52, %v1284_v60 }
 0x5a3   : > { %v1369_v1 = vsel %vm453_vm1, %v1359_v57, -inf }
 0x5a4   : > { %1370 = vmax.xlane.f32.xlu1 %v1369_v1  ;;  %v2632_v8 = vpop.f32.mrf.mxu3  ;;  %v2109_v1 = vld [vmem:[%s2793_s4 + $0x10] sm:$0xff] }
 0x5a5   : > { %v1329_v40 = vpop.f32.mrf.mxu2  ;;  %v1956_v27 = vpack.i.bf16 %v2632_v8, %v2619_v32 }
 0x5a6   : > { %v1330_v14 = vadd.f32 %v1329_v40, %v314_v54  ;;  %v1360_v40 = vadd.f32 %v2109_v1, %v1306_v29 }
 0x5a7   : > { %v1307_v49 = vpop.f32.mrf.mxu1 }
 0x5a8   : > { %v2639_v61 = vadd.f32 %v2104_v35, %v1330_v14  ;;  %v1308_v13 = vadd.f32 %v1307_v49, %v315_v3  ;;  %v1372_v14 = vsel %vm453_vm1, %v1360_v40, -inf }
 0x5aa   : > { %v1378_v21 = vsel %vm453_vm1, %v2639_v61, -inf  ;;  %v1361_v41 = vadd.f32 %v2107_v12, %v1308_v13 }
 0x5ab   : > { %1379 = vmax.xlane.f32.xlu2 %v1378_v21 }
 0x5ac   : > { %v1353_v44 = vpop.f32.mrf.mxu3  ;;  %v1375_v60 = vsel %vm453_vm1, %v1361_v41, -inf }
 0x5ad   : > { %v1331_v39 = vpop.f32.mrf.mxu2  ;;  %v1354_v33 = vadd.f32 %v1353_v44, %v314_v54  ;;  %v2110_v54 = vld [vmem:[%s2317_s30 + $0x10] sm:$0xff] }
 0x5ae   : > { %v1332_v10 = vadd.f32 %v1331_v39, %v315_v3 }
 0x5af   : > { %v1364_v58 = vadd.f32 %v2105_v37, %v1354_v33 }
 0x5b0   : > { %v1363_v50 = vadd.f32 %v2106_v48, %v1332_v10 }
 0x5b1   : > { %v1384_v17 = vsel %vm453_vm1, %v1364_v58, -inf }
 0x5b2   : > { %v1381_v9 = vsel %vm453_vm1, %v1363_v50, -inf  ;;  %1385 = vmax.xlane.f32.xlu1 %v1384_v17 }
 0x5b3   : > { %1382 = vmax.xlane.f32.xlu0 %v1381_v9 }
 0x5b4   : > { %v1355_v55 = vpop.f32.mrf.mxu3 }
 0x5b5   : > { %v1356_v63 = vadd.f32 %v1355_v55, %v315_v3 }
 0x5b7   : > { %v1365_v22 = vadd.f32 %v2108_v62, %v1356_v63 }
 0x5b9   : > { %v1387_v52 = vsel %vm453_vm1, %v1365_v22, -inf }
 0x5ba   : > { %1388 = vmax.xlane.f32.xlu2 %v1387_v52 }
 0x5bb   : > { %1376 = vmax.xlane.f32.xlu0 %v1375_v60 }
 0x5c2   : > { %1373 = vmax.xlane.f32.xlu2 %v1372_v14 }
 0x5cf   : > { %1517 = vrot.lane.b32.xlu0 %v2110_v54, %s2124_s11 }
 0x60f   : > { %v1368_v3 = vpop.xlane.xlu0 %1367 }
 0x610   : > { %v1390_v59 = vsub.f32 %v1358_v31, %v1368_v3 }
 0x612   : > { %v1398_v35 = vmul.f32 1.442695, %v1390_v59 }
 0x614   : > { %2067 = vpow2.f32 %v1398_v35 }
 0x617   : > { %v1371_v21 = vpop.xlane.xlu1 %1370 }
 0x618   : > { %v1391_v44 = vsub.f32 %v1359_v57, %v1371_v21 }
 0x61a   : > { %v2665_v39 = vpop.eup %2067  ;;  %v1400_v33 = vmul.f32 1.442695, %v1391_v44 }
 0x61b   : > { %v1414_v49 = vsel %vm453_vm1, %v2665_v39, 0.0 }
 0x61c   : > { %2069 = vpow2.f32 %v1400_v33  ;;  %1415 = vadd.xlane.f32.xlu2 %v1414_v49  ;;  %v2111_v49 = vld [vmem:[%s2317_s30 + $0x8] sm:$0xff] }
 0x61e   : > { %v1380_v48 = vpop.xlane.xlu2 %1379 }
 0x61f   : > { %v1394_v54 = vsub.f32 %v2639_v61, %v1380_v48 }
 0x622   : > { %v2669_v10 = vpop.eup %2069 }
 0x623   : > { %v1417_v37 = vsel %vm453_vm1, %v2669_v10, 0.0 }
 0x624   : > { %1418 = vadd.xlane.f32.xlu0 %v1417_v37 }
 0x625   : > { %v1386_v31 = vpop.xlane.xlu1 %1385 }
 0x626   : > { %v1383_v13 = vpop.xlane.xlu0 %1382  ;;  %v1396_v17 = vsub.f32 %v1364_v58, %v1386_v31  ;;  %v2112_v31 = vld [vmem:[%s2317_s30] sm:$0xff] }
 0x627   : > { %v1395_v29 = vsub.f32 %v1363_v50, %v1383_v13  ;;  %v1406_v50 = vmul.f32 1.442695, %v1394_v54  ;;  %v2113_v13 = vld [vmem:[%s2317_s30 + $0x18] sm:$0xff]  ;;  %s2127_s30 = smov 24  }
 0x628   : > { %v1410_v9 = vmul.f32 1.442695, %v1396_v17 }
 0x629   : > { %v1408_v52 = vmul.f32 1.442695, %v1395_v29 }
 0x62a   : > { %2071 = vpow2.f32 %v1410_v9 }
 0x62d   : > { %v1389_v57 = vpop.xlane.xlu2 %1388 }
 0x62e   : > { %v1377_v55 = vpop.xlane.xlu0 %1376  ;;  %v1397_v21 = vsub.f32 %v1365_v22, %v1389_v57 }
 0x62f   : > { %v1393_v12 = vsub.f32 %v1361_v41, %v1377_v55 }
 0x630   : > { %v2673_v63 = vpop.eup %2071 }
 0x631   : > { %v1404_v62 = vmul.f32 1.442695, %v1393_v12  ;;  %v1432_v60 = vsel %vm453_vm1, %v2673_v63, 0.0 }
 0x632   : > { %1433 = vadd.xlane.f32.xlu0 %v1432_v60 }
 0x633   : > { %2073 = vpow2.f32 %v1404_v62 }
 0x634   : > { %2075 = vpow2.f32 %v1408_v52 }
 0x635   : > { %v1374_v1 = vpop.xlane.xlu2 %1373 }
 0x636   : > { %v1392_v14 = vsub.f32 %v1360_v40, %v1374_v1  ;;  %v1412_v40 = vmul.f32 1.442695, %v1397_v21 }
 0x638   : > { %v1402_v58 = vmul.f32 1.442695, %v1392_v14 }
 0x639   : > { %v2074_v3 = vpop.eup %2073 }
 0x63a   : > { %2077 = vpow2.f32 %v1402_v58  ;;  %v1423_v41 = vsel %vm453_vm1, %v2074_v3, 0.0  ;;  %v2679_v59 = vpop.eup %2075 }
 0x63b   : > { %1424 = vadd.xlane.f32.xlu2 %v1423_v41  ;;  %2079 = vpow2.f32 %v1406_v50  ;;  %v1429_v61 = vsel %vm453_vm1, %v2679_v59, 0.0 }
 0x63c   : > { %2081 = vpow2.f32 %v1412_v40 }
 0x640   : > { %v2078_v35 = vpop.eup %2077 }
 0x641   : > { %v1420_v44 = vsel %vm453_vm1, %v2078_v35, 0.0  ;;  %v2684_v33 = vpop.eup %2079  ;;  %v1518_v24 = vpop.permute.xlu0 %1517 }
 0x642   : > { %1421 = vadd.xlane.f32.xlu1 %v1420_v44  ;;  %v1426_v37 = vsel %vm453_vm1, %v2684_v33, 0.0  ;;  %v2690_v22 = vpop.eup %2081  ;;  %1530 = vmatpush.bf16.msrb.mxu2 %v1518_v24 }
 0x643   : > { %1430 = vadd.xlane.f32.xlu2 %v1429_v61  ;;  %v1435_v48 = vsel %vm453_vm1, %v2690_v22, 0.0 }
 0x646   : > { %1492 = vrot.lane.b32.xlu0 %v2111_v49, %s2124_s11 }
 0x64a   : > { %1427 = vadd.xlane.f32.xlu1 %v1426_v37 }
 0x64e   : > { %1922 = vrot.lane.b32.xlu0 %v1921_v56, %s2125_s15 }
 0x652   : > { %1436 = vadd.xlane.f32.xlu1 %v1435_v48 }
 0x65b   : > { %1467 = vrot.lane.b32.xlu2 %v2112_v31, %s2124_s11 }
 0x663   : > { %1917 = vrot.lane.b32.xlu2 %v1916_v2, %s2126_s24 }
 0x66b   : > { %1932 = vrot.lane.b32.xlu2 %v1931_v16, %s2125_s15  ;;  %1542 = vrot.lane.b32.xlu1 %v2113_v13, %s2124_s11 }
 0x673   : > { %1942 = vrot.lane.b32.xlu2 %v1941_v19, %s2125_s15  ;;  %1912 = vrot.lane.b32.xlu1 %v1911_v43, %s2126_s24 }
 0x67b   : > { %1927 = vrot.lane.b32.xlu1 %v1926_v25, %s2126_s24 }
 0x683   : > { %1937 = vrot.lane.b32.xlu1 %v1936_v42, %s2126_s24 }
 0x68b   : > { %1957 = vrot.lane.b32.xlu1 %v1956_v27, %s2125_s15 }
 0x68f   : > { %v1416_v36 = vpop.xlane.xlu2 %1415 }
 0x697   : > { %v1419_v38 = vpop.xlane.xlu0 %1418 }
 0x698   : > { %2083 = vrcp.f32 %v1419_v38 }
 0x699   : > { %2085 = vrcp.f32 %v1416_v36 }
 0x69e   : > { %v2084_v15 = vpop.eup %2083 }
 0x69f   : > { %v2086_v28 = vpop.eup %2085  ;;  %v1447_v43 = vmul.f32 %v2084_v15, %v2669_v10 }
 0x6a0   : > { %v1446_v51 = vmul.f32 %v2086_v28, %v2665_v39 }
 0x6a1   : > { %v1455_v26 = vpack.c.bf16 %v1447_v43, %v1447_v43 }
 0x6a2   : > { %v1454_v56 = vpack.c.bf16 %v1446_v51, %v1446_v51 }
 0x6a3   : > { %v1465_v16 = vunpack.c.l.b16 %v1455_v26 }
 0x6a4   : > { %v1464_v8 = vunpack.c.l.b16 %v1454_v56 }
 0x6a5   : > { %v1434_v53 = vpop.xlane.xlu0 %1433 }
 0x6a6   : > { %v1466_v39 = vpack.c.b16 %v1465_v16, %v1464_v8 }
 0x6ae   : > { %v1425_v2 = vpop.xlane.xlu2 %1424 }
 0x6af   : > { %2087 = vrcp.f32 %v1425_v2 }
 0x6b5   : > { %v1422_v30 = vpop.xlane.xlu1 %1421  ;;  %v2088_v47 = vpop.eup %2087 }
 0x6b6   : > { %2089 = vrcp.f32 %v1422_v30  ;;  %v1431_v25 = vpop.xlane.xlu2 %1430  ;;  %v1449_v0 = vmul.f32 %v2088_v47, %v2074_v3 }
 0x6b7   : > { %2091 = vrcp.f32 %v1431_v25 }
 0x6b8   : > { %v1493_v42 = vpop.permute.xlu0 %1492  ;;  %v1457_v18 = vpack.c.bf16 %v1449_v0, %v1449_v0 }
 0x6b9   : > { %1505 = vmatpush.bf16.msrb.mxu1 %v1493_v42 }
 0x6ba   : > { %v1490_v17 = vunpack.c.l.b16 %v1457_v18 }
 0x6bc   : > { %v2090_v46 = vpop.eup %2089 }
 0x6bd   : > { %v1448_v32 = vmul.f32 %v2090_v46, %v2078_v35  ;;  %v1428_v11 = vpop.xlane.xlu1 %1427  ;;  %v2092_v19 = vpop.eup %2091 }
 0x6be   : > { %2093 = vrcp.f32 %v1428_v11  ;;  %v1468_v27 = vpop.permute.xlu2 %1467  ;;  %v1451_v57 = vmul.f32 %v2092_v19, %v2679_v59 }
 0x6bf   : > { %v1456_v10 = vpack.c.bf16 %v1448_v32, %v1448_v32  ;;  %1480 = vmatpush.bf16.msrb.mxu0 %v1468_v27 }
 0x6c0   : > { %v1459_v29 = vpack.c.bf16 %v1451_v57, %v1451_v57  ;;  %v1923_v43 = vpop.permute.xlu0 %1922 }
 0x6c1   : > { %v1489_v9 = vunpack.c.l.b16 %v1456_v10  ;;  %v1925_v42 = vunpack.i.h.bf16 %v1923_v43  ;;  %v1924_v0 = vunpack.i.l.bf16 %v1923_v43 }
 0x6c2   : > { %1875 = vmatmul.msk.bf16.vlgmr.msrb.gmra.mxu0 %vm453_vm1, %v1466_v39  ;;  %v1515_v1 = vunpack.c.l.b16 %v1459_v29 }
 0x6c3   : > { %v1491_v55 = vpack.c.b16 %v1490_v17, %v1489_v9 }
 0x6c4   : > { %v2094_v12 = vpop.eup %2093 }
 0x6c5   : > { %v1450_v62 = vmul.f32 %v2094_v12, %v2684_v33  ;;  %1876 = vmatmul.msk.bf16.vlgmr.msrb.gmra.mxu1 %vm453_vm1, %v1491_v55  ;;  %v1437_v52 = vpop.xlane.xlu1 %1436 }
 0x6c6   : > { %2095 = vrcp.f32 %v1437_v52 }
 0x6c7   : > { %v1458_v60 = vpack.c.bf16 %v1450_v62, %v1450_v62  ;;  %2097 = vrcp.f32 %v1434_v53  ;;  %v1918_v53 = vpop.permute.xlu2 %1917 }
 0x6c8   : > { %v1920_v8 = vunpack.i.h.bf16 %v1918_v53  ;;  %v1919_v9 = vunpack.i.l.bf16 %v1918_v53 }
 0x6c9   : > { %v1514_v14 = vunpack.c.l.b16 %v1458_v60 }
 0x6ca   : > { %v1661_v62 = vsel %vm334_vm0, %v2378_v6, %v1920_v8 }
 0x6cb   : > { %v1516_v54 = vpack.c.b16 %v1515_v1, %v1514_v14 }
 0x6cc   : > { %v2096_v58 = vpop.eup %2095 }
 0x6cd   : > { %1877 = vmatmul.msk.bf16.vlgmr.msrb.gmra.mxu2 %vm453_vm1, %v1516_v54  ;;  %v2098_v3 = vpop.eup %2097  ;;  %v1453_v41 = vmul.f32 %v2096_v58, %v2690_v22  ;;  %v1660_v54 = vsel %vm334_vm0, %v2374_v4, %v1919_v9 }
 0x6ce   : > { %v1452_v50 = vmul.f32 %v2098_v3, %v2673_v63 }
 0x6cf   : > { %v1461_v59 = vpack.c.bf16 %v1453_v41, %v1453_v41  ;;  %v1933_v15 = vpop.permute.xlu2 %1932 }
 0x6d0   : > { %v1460_v35 = vpack.c.bf16 %v1452_v50, %v1452_v50  ;;  %v1935_v57 = vunpack.i.h.bf16 %v1933_v15  ;;  %v1934_v55 = vunpack.i.l.bf16 %v1933_v15 }
 0x6d1   : > { %v1540_v21 = vunpack.c.l.b16 %v1461_v59 }
 0x6d2   : > { %v1539_v44 = vunpack.c.l.b16 %v1460_v35  ;;  %v1668_v41 = vsel %vm453_vm1, %v1660_v54, %v1934_v55  ;;  %v1669_v6 = vsel %vm453_vm1, %v1661_v62, %v1935_v57 }
 0x6d4   : > { %v1541_v40 = vpack.c.b16 %v1540_v21, %v1539_v44 }
 0x6d7   : > { %v1943_v51 = vpop.permute.xlu2 %1942 }
 0x6d8   : > { %v1944_v60 = vunpack.i.l.bf16 %v1943_v51  ;;  %v1945_v58 = vunpack.i.h.bf16 %v1943_v51 }
 0x6dd   : > { %v1543_v61 = vpop.permute.xlu1 %1542 }
 0x6de   : > { %1555 = vmatpush.bf16.msrb.mxu3 %v1543_v61 }
 0x6e1   : > { %1878 = vmatmul.msk.bf16.vlgmr.msrb.gmra.mxu3 %vm453_vm1, %v1541_v40 }
 0x6e5   : > { %v1913_v28 = vpop.permute.xlu1 %1912 }
 0x6e6   : > { %v1915_v30 = vunpack.i.h.bf16 %v1913_v28  ;;  %v1914_v47 = vunpack.i.l.bf16 %v1913_v28 }
 0x6e8   : > { %v1659_v25 = vsel %vm334_vm0, %v2376_v5, %v1915_v30  ;;  %v1658_v26 = vsel %vm334_vm0, %v2372_v45, %v1914_v47 }
 0x6e9   : > { %v1666_v32 = vsel %vm453_vm1, %v1658_v26, %v1924_v0  ;;  %v1667_v11 = vsel %vm453_vm1, %v1659_v25, %v1925_v42 }
 0x6ed   : > { %v1928_v56 = vpop.permute.xlu1 %1927 }
 0x6ee   : > { %v1929_v19 = vunpack.i.l.bf16 %v1928_v56  ;;  %v1930_v27 = vunpack.i.h.bf16 %v1928_v56 }
 0x6f0   : > { %v1662_v12 = vsel %vm334_vm0, %v2380_v7, %v1929_v19  ;;  %v1663_v52 = vsel %vm334_vm0, %v2386_v20, %v1930_v27 }
 0x6f1   : > { %v1670_v50 = vsel %vm453_vm1, %v1662_v12, %v1944_v60  ;;  %v1671_v20 = vsel %vm453_vm1, %v1663_v52, %v1945_v58 }
 0x73f   : > { %v1482_v33 = vpop.f32.mrf.mxu0 }
 0x742   : > { %v1507_v49 = vpop.f32.mrf.mxu1 }
 0x747   : > { %v1484_v37 = vpop.f32.mrf.mxu0 }
 0x748   : > { %v1946_v48 = vpack.i.bf16 %v1484_v37, %v1482_v33 }
 0x74a   : > { %1947 = vrot.lane.b32.xlu0 %v1946_v48, %s2127_s30  ;;  %v1509_v31 = vpop.f32.mrf.mxu1 }
 0x74b   : > { %v1951_v13 = vpack.i.bf16 %v1509_v31, %v1507_v49  ;;  %v1938_v49 = vpop.permute.xlu1 %1937 }
 0x74c   : > { %v1940_v48 = vunpack.i.h.bf16 %v1938_v49  ;;  %v1939_v31 = vunpack.i.l.bf16 %v1938_v49 }
 0x750   : > { %v1532_v22 = vpop.f32.mrf.mxu2 }
 0x752   : > { %1952 = vrot.lane.b32.xlu0 %v1951_v13, %s2127_s30 }
 0x753   : > { %v1958_v37 = vpop.permute.xlu1 %1957 }
 0x754   : > { %v1960_v13 = vunpack.i.h.bf16 %v1958_v37 }
 0x758   : > { %v1534_v63 = vpop.f32.mrf.mxu2 }
 0x759   : > { %v1961_v24 = vpack.i.bf16 %v1534_v63, %v1532_v22  ;;  %v1959_v22 = vunpack.i.l.bf16 %v1958_v37 }
 0x75b   : > { %1962 = vrot.lane.b32.xlu2 %v1961_v24, %s2127_s30  ;;  %v1665_v24 = vsel %vm334_vm0, %v2397_v34, %v1940_v48 }
 0x75c   : > { %v1673_v15 = vsel %vm453_vm1, %v1665_v24, %v1960_v13 }
 0x764   : > { %v1557_v36 = vpop.f32.mrf.mxu3 }
 0x76c   : > { %v1559_v38 = vpop.f32.mrf.mxu3 }
 0x76d   : > { %v1966_v2 = vpack.i.bf16 %v1559_v38, %v1557_v36  ;;  %v1664_v36 = vsel %vm334_vm0, %v2388_v23, %v1939_v31 }
 0x76e   : > { %v1672_v53 = vsel %vm453_vm1, %v1664_v36, %v1959_v22 }
 0x76f   : > { %1967 = vrot.lane.b32.xlu0 %v1966_v2, %s2127_s30 }
 0x7b5   : > { %v1963_v10 = vpop.permute.xlu2 %1962 }
 0x7b6   : > { %v1964_v29 = vunpack.i.l.bf16 %v1963_v10  ;;  %v1965_v1 = vunpack.i.h.bf16 %v1963_v10 }
 0x7b8   : > { %v1679_v59 = vsel %vm1674_vm2, %v1670_v50, %v1964_v29  ;;  %v1680_v21 = vsel %vm1674_vm2, %v1671_v20, %v1965_v1 }
 0x7b9   : > { %v1687_v40 = vpack.c.bf16 %v1679_v59, %v1679_v59  ;;  %v1688_v33 = vpack.c.bf16 %v1680_v21, %v1680_v21 }
 0x7bb   : > { %1696 = vst.msk [vmem:[%s2742_s16 + $0x10] sm:$0xf] %vm1691_vm3, %v1687_v40 }
 0x7bc   : > { %v1948_v46 = vpop.permute.xlu0 %1947  ;;  %1697 = vst.msk [vmem:[%s2742_s16 + $0x14] sm:$0xf] %vm1691_vm3, %v1688_v33 }
 0x7bd   : > { %v1950_v16 = vunpack.i.h.bf16 %v1948_v46  ;;  %v1949_v18 = vunpack.i.l.bf16 %v1948_v46 }
 0x7bf   : > { %v1676_v45 = vsel %vm1674_vm2, %v1667_v11, %v1950_v16  ;;  %v1675_v5 = vsel %vm1674_vm2, %v1666_v32, %v1949_v18 }
 0x7c0   : > { %v1684_v39 = vpack.c.bf16 %v1676_v45, %v1676_v45  ;;  %v1683_v17 = vpack.c.bf16 %v1675_v5, %v1675_v5 }
 0x7c2   : > { %1693 = vst.msk [vmem:[%s2742_s16 + $0x4] sm:$0xf] %vm1691_vm3, %v1684_v39 }
 0x7c3   : > { %1692 = vst.msk [vmem:[%s2742_s16] sm:$0xf] %vm1691_vm3, %v1683_v17 }
 0x7c4   : > { %v1953_v14 = vpop.permute.xlu0 %1952 }
 0x7c5   : > { %v1955_v3 = vunpack.i.h.bf16 %v1953_v14  ;;  %v1954_v7 = vunpack.i.l.bf16 %v1953_v14 }
 0x7c7   : > { %v1677_v35 = vsel %vm1674_vm2, %v1668_v41, %v1954_v7  ;;  %v1678_v4 = vsel %vm1674_vm2, %v1669_v6, %v1955_v3 }
 0x7c8   : > { %v1685_v44 = vpack.c.bf16 %v1677_v35, %v1677_v35  ;;  %v1686_v61 = vpack.c.bf16 %v1678_v4, %v1678_v4 }
 0x7ca   : > { %1694 = vst.msk [vmem:[%s2742_s16 + $0x8] sm:$0xf] %vm1691_vm3, %v1685_v44 }
 0x7cb   : > { %1695 = vst.msk [vmem:[%s2742_s16 + $0xc] sm:$0xf] %vm1691_vm3, %v1686_v61 }
 0x7e1   : > { %v1968_v63 = vpop.permute.xlu0 %1967 }
 0x7e2   : > { %v1970_v38 = vunpack.i.h.bf16 %v1968_v63  ;;  %v1969_v2 = vunpack.i.l.bf16 %v1968_v63 }
 0x7e4   : > { %v1682_v28 = vsel %vm1674_vm2, %v1673_v15, %v1970_v38  ;;  %v1681_v43 = vsel %vm1674_vm2, %v1672_v53, %v1969_v2 }
 0x7e5   : > { %v1690_v30 = vpack.c.bf16 %v1682_v28, %v1682_v28  ;;  %v1689_v47 = vpack.c.bf16 %v1681_v43, %v1681_v43 }
 0x7e7   : > { %1698 = vst.msk [vmem:[%s2742_s16 + $0x18] sm:$0xf] %vm1691_vm3, %v1689_v47 }
 0x7e8   : > { %1699 = vst.msk [vmem:[%s2742_s16 + $0x1c] sm:$0xf] %vm1691_vm3, %v1690_v30 }
 0x7e9 PF: > { %s15_s18 = sadd.s32 1, %s2120_s18  }
 0x7ea   : > { %p12_p4 = scmp.ge.s32.totalorder %s15_s18, 4  }
 0x7ec   :  { %14 = sbr.rel (!%p12_p4) target bundleno = 1 (0x1), region = 76 }

</bundles_post_ra>
